<compile_context>
chip_gen: v5e
topology: v5e:2x2
jax: 0.10.0
libtpu: 0.0.40
codegen_flags: <defaults>
</compile_context>

<pallas_src>
import jax
import jax.numpy as jnp
import jax.scipy.linalg as jsl
from jax.experimental import pallas as pl
from jax.experimental.pallas import tpu as pltpu


def _round_up(x, m):
    return ((x + m - 1) // m) * m


# ----------------------------- in-kernel math --------------------------------

def _cheb_stack(cat, sT_list, gcn_order):
    """Chebyshev diffusion features stacked along the channel (sublane) axis.

    cat : (C, W) f32   channels x lanes (block-diag batch/node packing)
    sT  : (W, W) bf16  padded / block-diagonal transposed transition matrix
    out : (M*C, W) bf16, M = num_supports * gcn_order + 1
    """
    terms = [cat]
    if gcn_order >= 1:
        for sT in sT_list:
            x0 = cat
            x1 = jnp.dot(cat.astype(jnp.bfloat16), sT,
                         preferred_element_type=jnp.float32)
            terms.append(x1)
            xkm2, xkm1 = x0, x1
            for _ in range(2, gcn_order + 1):
                xk = 2.0 * jnp.dot(xkm1.astype(jnp.bfloat16), sT,
                                   preferred_element_type=jnp.float32) - xkm2
                terms.append(xk)
                xkm2, xkm1 = xkm1, xk
    # f32 concat (C is a multiple of 8 -> aligned), one cast to bf16 afterwards.
    return jnp.concatenate(terms, axis=0).astype(jnp.bfloat16)


def _gconv(cat, sT_list, w, b, gcn_order):
    """Diffusion graph convolution as ONE big-K matmul.

    w : (O, M*C) bf16 pre-stacked weight, b : (O, 1) f32  ->  (O, W) f32
    """
    stack = _cheb_stack(cat, sT_list, gcn_order)
    return jnp.dot(w, stack, preferred_element_type=jnp.float32) + b


def _dcgru_cell(x, h, sT_list, wg, bg, wc, bc, gcn_order, hid):
    """One DCGRU cell step. x: (Din, W) f32, h: (hid, W) f32 -> (hid, W) f32."""
    cat = jnp.concatenate([x, h], axis=0)
    ru = _gconv(cat, sT_list, wg, bg, gcn_order)              # (2*hid, W)
    r = jax.nn.sigmoid(ru[:hid, :])
    u = jax.nn.sigmoid(ru[hid:, :])
    cat2 = jnp.concatenate([x, r * h], axis=0)
    c = jnp.tanh(_gconv(cat2, sT_list, wc, bc, gcn_order))    # (hid, W)
    return u * h + (1.0 - u) * c


# ----------------------------- fused seq2seq kernel ---------------------------

def _make_seq2seq_kernel(num_layers, gcn_order, num_supports, hid, seq_len):
    n_w = 4 * num_layers

    def kernel(*refs):
        # refs = (x_seq, sT,
        #         [Wg, bg, Wc, bc] * L (encoder), [Wg, bg, Wc, bc] * L (decoder),
        #         Wp, bp, y_out, h_scratch, x_scratch)
        x_ref = refs[0]
        sT_ref = refs[1]
        enc_w = refs[2:2 + n_w]
        dec_w = refs[2 + n_w:2 + 2 * n_w]
        wp_ref = refs[2 + 2 * n_w]
        bp_ref = refs[3 + 2 * n_w]
        y_ref = refs[4 + 2 * n_w]
        h_s = refs[5 + 2 * n_w]
        x_s = refs[6 + 2 * n_w]

        t = pl.program_id(1)
        sT_list = [sT_ref[s] for s in range(num_supports)]

        @pl.when(t == 0)                       # new batch block -> zero hidden
        def _():
            h_s[...] = jnp.zeros_like(h_s)

        @pl.when(t == seq_len)                 # decoder go_symbol
        def _():
            x_s[...] = jnp.zeros_like(x_s)

        @pl.when(t < seq_len)                  # ------------- encoder step
        def _():
            nxt = x_ref[0, 0]                                  # (Din, W)
            for l in range(num_layers):
                nxt = _dcgru_cell(nxt, h_s[l], sT_list,
                                  enc_w[4 * l + 0][...], enc_w[4 * l + 1][...],
                                  enc_w[4 * l + 2][...], enc_w[4 * l + 3][...],
                                  gcn_order, hid)
                h_s[l] = nxt

        @pl.when(t >= seq_len)                 # ------------- decoder step
        def _():
            nxt = x_s[...]                                     # (Dout, W)
            for l in range(num_layers):
                nxt = _dcgru_cell(nxt, h_s[l], sT_list,
                                  dec_w[4 * l + 0][...], dec_w[4 * l + 1][...],
                                  dec_w[4 * l + 2][...], dec_w[4 * l + 3][...],
                                  gcn_order, hid)
                h_s[l] = nxt
            # fused 1x1-conv projection (rnn_units -> out_dim)
            y = jnp.dot(wp_ref[...], nxt.astype(jnp.bfloat16),
                        preferred_element_type=jnp.float32) + bp_ref[...]
            y_ref[0, 0] = y
            x_s[...] = y                                       # next dec input

    return kernel


# ----------------------------- model glue -------------------------------------

def double_transition_matrix(adj):
    """Forward / backward random-walk transition matrices (guarded division)."""
    d_fwd = jnp.sum(adj, axis=1)
    d_bwd = jnp.sum(adj.T, axis=1)
    inv_f = jnp.where(d_fwd > 0, 1.0 / jnp.where(d_fwd > 0, d_fwd, 1.0), 0.0)
    inv_b = jnp.where(d_bwd > 0, 1.0 / jnp.where(d_bwd > 0, d_bwd, 1.0), 0.0)
    return [adj * inv_f[:, None], adj.T * inv_b[:, None]]


def _const_spec(shape):
    nd = len(shape)
    return pl.BlockSpec(shape, lambda b, t, _nd=nd: (0,) * _nd)


def _init_cell_params(key, in_dim, hid_dim, num_matrices):
    """in_dim is the (padded) input channel count of this cell."""
    c = in_dim + hid_dim
    k1, k2 = jax.random.split(key, 2)
    wg = 0.1 * jax.random.normal(k1, (num_matrices, 2 * hid_dim, c), jnp.float32)
    wc = 0.1 * jax.random.normal(k2, (num_matrices, hid_dim, c), jnp.float32)
    # (M, O, C) -> (O, M*C): one big-K matmul per gconv in-kernel.
    wg = wg.transpose(1, 0, 2).reshape(2 * hid_dim, num_matrices * c)
    wc = wc.transpose(1, 0, 2).reshape(hid_dim, num_matrices * c)
    return dict(
        Wg=wg.astype(jnp.bfloat16),
        bg=jnp.ones((2 * hid_dim, 1), jnp.float32),   # DCRNN gate bias_start = 1.0
        Wc=wc.astype(jnp.bfloat16),
        bc=jnp.zeros((hid_dim, 1), jnp.float32),
    )


class DCRNNModelPallas:
    """DCRNNModel forward pass (autoregressive inference path)."""

    def __init__(self, adj_mx, input_dim, output_dim, rnn_units, num_rnn_layers,
                 max_diffusion_step, horizon, key):
        assert rnn_units % 8 == 0, "rnn_units must be a multiple of 8"
        self.in_dim = input_dim
        self.out_dim = output_dim
        self.rnn_units = rnn_units
        self.num_rnn_layers = num_rnn_layers
        self.K = max_diffusion_step
        self.horizon = horizon
        self.din_pad = _round_up(input_dim, 8)     # 8-aligned channel concats
        self.dout_pad = _round_up(output_dim, 8)

        adj = jnp.asarray(adj_mx, jnp.float32)
        n = adj.shape[0]
        self.num_nodes = n
        # Lane packing: several batch elements per 128-lane block for small
        # graphs (block-diagonal S^T), otherwise one batch element per block.
        if n <= 128:
            self.lane_w = 128
            self.batch_per_block = max(1, 128 // n)
        else:
            self.lane_w = _round_up(n, 128)
            self.batch_per_block = 1

        supports = double_transition_matrix(adj)
        self.num_supports = len(supports)
        self.num_matrices = self.num_supports * self.K + 1

        g, W = self.batch_per_block, self.lane_w
        sT_blocks = []
        for s in supports:
            bd = jsl.block_diag(*([s.T] * g))      # (g*n, g*n)
            bd = jnp.pad(bd, ((0, W - bd.shape[0]), (0, W - bd.shape[1])))
            sT_blocks.append(bd)
        self.sT = jnp.stack(sT_blocks, axis=0).astype(jnp.bfloat16)  # (S, W, W)

        keys = jax.random.split(key, 2 * num_rnn_layers + 1)
        self.encoder_cells = [
            _init_cell_params(keys[i],
                              self.din_pad if i == 0 else rnn_units,
                              rnn_units, self.num_matrices)
            for i in range(num_rnn_layers)
        ]
        self.decoder_cells = [
            _init_cell_params(keys[num_rnn_layers + i],
                              self.dout_pad if i == 0 else rnn_units,
                              rnn_units, self.num_matrices)
            for i in range(num_rnn_layers)
        ]
        # projector = nn.Conv1d(rnn_units, output_dim, 1); padded rows are zero
        # so the autoregressive decoder input stays zero on padded channels.
        wp = jnp.zeros((self.dout_pad, rnn_units), jnp.float32)
        wp = wp.at[:output_dim].set(
            0.1 * jax.random.normal(keys[-1], (output_dim, rnn_units),
                                    jnp.float32))
        self.Wp = wp.astype(jnp.bfloat16)
        self.bp = jnp.zeros((self.dout_pad, 1), jnp.float32)

    # ---- host-side lane packing ------------------------------------------
    def _pack_inputs(self, inputs):
        """(B, in_dim, N, T) -> (num_blocks, T, din_pad, W) lane-dense slabs."""
        B, din, n, T = inputs.shape
        g, W = self.batch_per_block, self.lane_w
        nb = -(-B // g)
        x = inputs.astype(jnp.float32)
        x = jnp.pad(x, ((0, nb * g - B), (0, self.din_pad - din),
                        (0, 0), (0, 0)))
        x = x.reshape(nb, g, self.din_pad, n, T).transpose(0, 4, 2, 1, 3)
        x = x.reshape(nb, T, self.din_pad, g * n)
        x = jnp.pad(x, ((0, 0), (0, 0), (0, 0), (0, W - g * n)))
        return x, nb

    def _unpack_outputs(self, y, B):
        """(num_blocks, horizon, dout_pad, W) -> (B, out_dim, N, horizon)."""
        nb, Th = y.shape[0], y.shape[1]
        g, n = self.batch_per_block, self.num_nodes
        y = y[:, :, :self.out_dim, :g * n]
        y = y.reshape(nb, Th, self.out_dim, g, n).transpose(0, 3, 2, 4, 1)
        return y.reshape(nb * g, self.out_dim, n, Th)[:B]

    # ---- fused encoder+decoder: grid = (batch blocks, T + horizon) ---------
    def _run_seq2seq(self, x_seq, seq_len):
        nb, T, dp, W = x_seq.shape
        L, H = self.num_rnn_layers, self.rnn_units
        Ht, Op = self.horizon, self.dout_pad

        args = [x_seq, self.sT]
        in_specs = [
            pl.BlockSpec((1, 1, dp, W),
                         lambda b, t: (b, jnp.minimum(t, seq_len - 1), 0, 0)),
            _const_spec(self.sT.shape),
        ]
        for cells in (self.encoder_cells, self.decoder_cells):
            for p in cells:
                for name in ("Wg", "bg", "Wc", "bc"):
                    args.append(p[name])
                    in_specs.append(_const_spec(p[name].shape))
        args += [self.Wp, self.bp]
        in_specs += [_const_spec(self.Wp.shape), _const_spec(self.bp.shape)]

        out_spec = pl.BlockSpec(
            (1, 1, Op, W), lambda b, t: (b, jnp.maximum(t - seq_len, 0), 0, 0))

        # Explicit VMEM budget: double-buffered resident operands + streamed
        # blocks + scratch + headroom for the in-kernel Chebyshev/gate slabs.
        resident = sum(int(a.size) * a.dtype.itemsize for a in args[1:])
        streamed = (dp * W + Op * W) * 4
        scratch = (L * H * W + Op * W) * 4
        stack = self.num_matrices * (self.din_pad + 2 * H + Op) * W * 4
        vmem_limit = int(min(max(2 * (resident + streamed) + scratch
                                 + 8 * stack + (8 << 20), 32 << 20), 64 << 20))

        return pl.pallas_call(
            _make_seq2seq_kernel(L, self.K, self.num_supports, H, seq_len),
            grid=(nb, seq_len + Ht),
            in_specs=in_specs,
            out_specs=out_spec,
            out_shape=jax.ShapeDtypeStruct((nb, Ht, Op, W), jnp.float32),
            scratch_shapes=[pltpu.VMEM((L, H, W), jnp.float32),   # hidden state
                            pltpu.VMEM((Op, W), jnp.float32)],    # dec input
            compiler_params=pltpu.CompilerParams(
                dimension_semantics=("parallel", "arbitrary"),
                vmem_limit_bytes=vmem_limit),
        )(*args)

    def forward(self, inputs, labels=None, teacher_forcing=False):
        # TODO(synk): teacher_forcing / scheduled-sampling branch not implemented;
        # this is the inference (autoregressive) path (teacher_forcing=False).
        B = inputs.shape[0]
        T = inputs.shape[-1]
        x_seq, _ = self._pack_inputs(inputs)
        y = self._run_seq2seq(x_seq, T)               # (nb, horizon, Op, W)
        return self._unpack_outputs(y, B)             # (B, out_dim, N, horizon)


# --------------------------------- main ---------------------------------------

if __name__ == "__main__":
    key = jax.random.PRNGKey(0)
    k_adj, k_x, k_params = jax.random.split(key, 3)

    B, IN_DIM, OUT_DIM = 2, 2, 2
    N_NODES, SEQ_LEN, HORIZON = 16, 4, 3
    RNN_UNITS, NUM_LAYERS, MAX_DIFFUSION = 16, 2, 2

    adj = jax.random.uniform(k_adj, (N_NODES, N_NODES), jnp.float32) \
        + jnp.eye(N_NODES)

    model = DCRNNModelPallas(adj, IN_DIM, OUT_DIM, RNN_UNITS, NUM_LAYERS,
                             MAX_DIFFUSION, HORIZON, key=k_params)

    x = jax.random.normal(k_x, (B, IN_DIM, N_NODES, SEQ_LEN), jnp.float32)

    out = jax.jit(model.forward)(x)
    out = jax.block_until_ready(out)
    assert out.shape == (B, OUT_DIM, N_NODES, HORIZON), out.shape
    assert bool(jnp.all(jnp.isfinite(out)))
    print("KERNEL_OK")
</pallas_src>

<mosaic_0001>
module attributes {stable_mosaic.version = 11 : i64} {
  func.func @kernel(%arg0: i32, %arg1: i32, %arg2: memref<1x1x8x128xf32, #tpu.memory_space<vmem>>, %arg3: memref<2x128x128xbf16, #tpu.memory_space<vmem>>, %arg4: memref<32x120xbf16, #tpu.memory_space<vmem>>, %arg5: memref<32x1xf32, #tpu.memory_space<vmem>>, %arg6: memref<16x120xbf16, #tpu.memory_space<vmem>>, %arg7: memref<16x1xf32, #tpu.memory_space<vmem>>, %arg8: memref<32x160xbf16, #tpu.memory_space<vmem>>, %arg9: memref<32x1xf32, #tpu.memory_space<vmem>>, %arg10: memref<16x160xbf16, #tpu.memory_space<vmem>>, %arg11: memref<16x1xf32, #tpu.memory_space<vmem>>, %arg12: memref<32x120xbf16, #tpu.memory_space<vmem>>, %arg13: memref<32x1xf32, #tpu.memory_space<vmem>>, %arg14: memref<16x120xbf16, #tpu.memory_space<vmem>>, %arg15: memref<16x1xf32, #tpu.memory_space<vmem>>, %arg16: memref<32x160xbf16, #tpu.memory_space<vmem>>, %arg17: memref<32x1xf32, #tpu.memory_space<vmem>>, %arg18: memref<16x160xbf16, #tpu.memory_space<vmem>>, %arg19: memref<16x1xf32, #tpu.memory_space<vmem>>, %arg20: memref<8x16xbf16, #tpu.memory_space<vmem>>, %arg21: memref<8x1xf32, #tpu.memory_space<vmem>>, %arg22: memref<1x1x8x128xf32, #tpu.memory_space<vmem>>, %arg23: memref<2x16x128xf32, #tpu.memory_space<vmem>>, %arg24: memref<8x128xf32, #tpu.memory_space<vmem>>) attributes {dimension_semantics = [#tpu.dimension_semantics<parallel>, #tpu.dimension_semantics<arbitrary>], iteration_bounds = array<i64: 1, 7>, scalar_prefetch = 0 : i64, scratch_operands = 2 : i64, tpu.core_type = #tpu.core_type<tc>, window_params = [{transform_indices = @transform_0, window_bounds = array<i64: 1, 1, 8, 128>}, {pipeline_mode = #tpu.pipeline_mode<synchronous>, transform_indices = @transform_1, window_bounds = array<i64: 2, 128, 128>}, {pipeline_mode = #tpu.pipeline_mode<synchronous>, transform_indices = @transform_2, window_bounds = array<i64: 32, 120>}, {pipeline_mode = #tpu.pipeline_mode<synchronous>, transform_indices = @transform_3, window_bounds = array<i64: 32, 1>}, {pipeline_mode = #tpu.pipeline_mode<synchronous>, transform_indices = @transform_4, window_bounds = array<i64: 16, 120>}, {pipeline_mode = #tpu.pipeline_mode<synchronous>, transform_indices = @transform_5, window_bounds = array<i64: 16, 1>}, {pipeline_mode = #tpu.pipeline_mode<synchronous>, transform_indices = @transform_6, window_bounds = array<i64: 32, 160>}, {pipeline_mode = #tpu.pipeline_mode<synchronous>, transform_indices = @transform_7, window_bounds = array<i64: 32, 1>}, {pipeline_mode = #tpu.pipeline_mode<synchronous>, transform_indices = @transform_8, window_bounds = array<i64: 16, 160>}, {pipeline_mode = #tpu.pipeline_mode<synchronous>, transform_indices = @transform_9, window_bounds = array<i64: 16, 1>}, {pipeline_mode = #tpu.pipeline_mode<synchronous>, transform_indices = @transform_10, window_bounds = array<i64: 32, 120>}, {pipeline_mode = #tpu.pipeline_mode<synchronous>, transform_indices = @transform_11, window_bounds = array<i64: 32, 1>}, {pipeline_mode = #tpu.pipeline_mode<synchronous>, transform_indices = @transform_12, window_bounds = array<i64: 16, 120>}, {pipeline_mode = #tpu.pipeline_mode<synchronous>, transform_indices = @transform_13, window_bounds = array<i64: 16, 1>}, {pipeline_mode = #tpu.pipeline_mode<synchronous>, transform_indices = @transform_14, window_bounds = array<i64: 32, 160>}, {pipeline_mode = #tpu.pipeline_mode<synchronous>, transform_indices = @transform_15, window_bounds = array<i64: 32, 1>}, {pipeline_mode = #tpu.pipeline_mode<synchronous>, transform_indices = @transform_16, window_bounds = array<i64: 16, 160>}, {pipeline_mode = #tpu.pipeline_mode<synchronous>, transform_indices = @transform_17, window_bounds = array<i64: 16, 1>}, {pipeline_mode = #tpu.pipeline_mode<synchronous>, transform_indices = @transform_18, window_bounds = array<i64: 8, 16>}, {pipeline_mode = #tpu.pipeline_mode<synchronous>, transform_indices = @transform_19, window_bounds = array<i64: 8, 1>}, {transform_indices = @transform_20, window_bounds = array<i64: 1, 1, 8, 128>}]} {
    %c0 = arith.constant 0 : index
    %c0_0 = arith.constant 0 : index
    %c0_1 = arith.constant 0 : index
    %0 = vector.load %arg3[%c0, %c0_0, %c0_1] : memref<2x128x128xbf16, #tpu.memory_space<vmem>>, vector<1x128x128xbf16>
    %1 = vector.shape_cast %0 : vector<1x128x128xbf16> to vector<128x128xbf16>
    %c1 = arith.constant 1 : index
    %c0_2 = arith.constant 0 : index
    %c0_3 = arith.constant 0 : index
    %2 = vector.load %arg3[%c1, %c0_2, %c0_3] : memref<2x128x128xbf16, #tpu.memory_space<vmem>>, vector<1x128x128xbf16>
    %3 = vector.shape_cast %2 : vector<1x128x128xbf16> to vector<128x128xbf16>
    %c0_i32 = arith.constant 0 : i32
    %4 = arith.cmpi eq, %arg1, %c0_i32 : i32
    %5 = arith.extui %4 : i1 to i32
    %c0_i32_4 = arith.constant 0 : i32
    %6 = arith.cmpi ne, %5, %c0_i32_4 : i32
    scf.if %6 {
      %cst = arith.constant 0.000000e+00 : f32
      %16 = vector.broadcast %cst : f32 to vector<2x16x128xf32>
      %c0_10 = arith.constant 0 : index
      %c0_11 = arith.constant 0 : index
      %c0_12 = arith.constant 0 : index
      %17 = vector.load %arg23[%c0_10, %c0_11, %c0_12] : memref<2x16x128xf32, #tpu.memory_space<vmem>>, vector<2x16x128xf32>
      tpu.vector_store %arg23[%c0_10, %c0_11, %c0_12], %16 {strides = array<i32>} : memref<2x16x128xf32, #tpu.memory_space<vmem>>, vector<2x16x128xf32>,
    } else {
    }
    %c4_i32 = arith.constant 4 : i32
    %7 = arith.cmpi eq, %arg1, %c4_i32 : i32
    %8 = arith.extui %7 : i1 to i32
    %c0_i32_5 = arith.constant 0 : i32
    %9 = arith.cmpi ne, %8, %c0_i32_5 : i32
    scf.if %9 {
      %cst = arith.constant 0.000000e+00 : f32
      %16 = vector.broadcast %cst : f32 to vector<8x128xf32>
      %c0_10 = arith.constant 0 : index
      %c0_11 = arith.constant 0 : index
      %17 = vector.load %arg24[%c0_10, %c0_11] : memref<8x128xf32, #tpu.memory_space<vmem>>, vector<8x128xf32>
      tpu.vector_store %arg24[%c0_10, %c0_11], %16 {strides = array<i32>} : memref<8x128xf32, #tpu.memory_space<vmem>>, vector<8x128xf32>,
    } else {
    }
    %c4_i32_6 = arith.constant 4 : i32
    %10 = arith.cmpi slt, %arg1, %c4_i32_6 : i32
    %11 = arith.extui %10 : i1 to i32
    %c0_i32_7 = arith.constant 0 : i32
    %12 = arith.cmpi ne, %11, %c0_i32_7 : i32
    scf.if %12 {
      %c0_10 = arith.constant 0 : index
      %c0_11 = arith.constant 0 : index
      %c0_12 = arith.constant 0 : index
      %c0_13 = arith.constant 0 : index
      %16 = vector.load %arg2[%c0_10, %c0_11, %c0_12, %c0_13] : memref<1x1x8x128xf32, #tpu.memory_space<vmem>>, vector<1x1x8x128xf32>
      %17 = vector.shape_cast %16 : vector<1x1x8x128xf32> to vector<8x128xf32>
      %c0_14 = arith.constant 0 : index
      %c0_15 = arith.constant 0 : index
      %c0_16 = arith.constant 0 : index
      %18 = vector.load %arg23[%c0_14, %c0_15, %c0_16] : memref<2x16x128xf32, #tpu.memory_space<vmem>>, vector<1x16x128xf32>
      %19 = vector.shape_cast %18 : vector<1x16x128xf32> to vector<16x128xf32>
      %c0_17 = arith.constant 0 : index
      %c0_18 = arith.constant 0 : index
      %20 = vector.load %arg4[%c0_17, %c0_18] : memref<32x120xbf16, #tpu.memory_space<vmem>>, vector<32x120xbf16>
      %c0_19 = arith.constant 0 : index
      %c0_20 = arith.constant 0 : index
      %21 = vector.load %arg5[%c0_19, %c0_20] : memref<32x1xf32, #tpu.memory_space<vmem>>, vector<32x1xf32>
      %c0_21 = arith.constant 0 : index
      %c0_22 = arith.constant 0 : index
      %22 = vector.load %arg6[%c0_21, %c0_22] : memref<16x120xbf16, #tpu.memory_space<vmem>>, vector<16x120xbf16>
      %c0_23 = arith.constant 0 : index
      %c0_24 = arith.constant 0 : index
      %23 = vector.load %arg7[%c0_23, %c0_24] : memref<16x1xf32, #tpu.memory_space<vmem>>, vector<16x1xf32>
      %24 = tpu.concatenate %17, %19 in 0 : vector<8x128xf32>, vector<16x128xf32> -> vector<24x128xf32>
      %25 = arith.truncf %24 : vector<24x128xf32> to vector<24x128xbf16>
      %cst = arith.constant dense<0.000000e+00> : vector<24x128xf32>
      %26 = tpu.matmul %25, %1, %cst {dimension_numbers = #tpu.dot_dimension_numbers<[1], [0], [0], [1], [0, 0, 1, 1], [], []>} : vector<24x128xbf16>, vector<128x128xbf16>, vector<24x128xf32> -> vector<24x128xf32>
      %27 = arith.truncf %26 : vector<24x128xf32> to vector<24x128xbf16>
      %cst_25 = arith.constant dense<0.000000e+00> : vector<24x128xf32>
      %28 = tpu.matmul %27, %1, %cst_25 {dimension_numbers = #tpu.dot_dimension_numbers<[1], [0], [0], [1], [0, 0, 1, 1], [], []>} : vector<24x128xbf16>, vector<128x128xbf16>, vector<24x128xf32> -> vector<24x128xf32>
      %cst_26 = arith.constant 2.000000e+00 : f32
      %29 = vector.broadcast %cst_26 : f32 to vector<24x128xf32>
      %30 = arith.mulf %29, %28 : vector<24x128xf32>
      %31 = arith.subf %30, %24 : vector<24x128xf32>
      %32 = arith.truncf %24 : vector<24x128xf32> to vector<24x128xbf16>
      %cst_27 = arith.constant dense<0.000000e+00> : vector<24x128xf32>
      %33 = tpu.matmul %32, %3, %cst_27 {dimension_numbers = #tpu.dot_dimension_numbers<[1], [0], [0], [1], [0, 0, 1, 1], [], []>} : vector<24x128xbf16>, vector<128x128xbf16>, vector<24x128xf32> -> vector<24x128xf32>
      %34 = arith.truncf %33 : vector<24x128xf32> to vector<24x128xbf16>
      %cst_28 = arith.constant dense<0.000000e+00> : vector<24x128xf32>
      %35 = tpu.matmul %34, %3, %cst_28 {dimension_numbers = #tpu.dot_dimension_numbers<[1], [0], [0], [1], [0, 0, 1, 1], [], []>} : vector<24x128xbf16>, vector<128x128xbf16>, vector<24x128xf32> -> vector<24x128xf32>
      %cst_29 = arith.constant 2.000000e+00 : f32
      %36 = vector.broadcast %cst_29 : f32 to vector<24x128xf32>
      %37 = arith.mulf %36, %35 : vector<24x128xf32>
      %38 = arith.subf %37, %24 : vector<24x128xf32>
      %39 = tpu.concatenate %24, %26, %31, %33, %38 in 0 : vector<24x128xf32>, vector<24x128xf32>, vector<24x128xf32>, vector<24x128xf32>, vector<24x128xf32> -> vector<120x128xf32>
      %40 = arith.truncf %39 : vector<120x128xf32> to vector<120x128xbf16>
      %cst_30 = arith.constant dense<0.000000e+00> : vector<32x128xf32>
      %41 = tpu.matmul %20, %40, %cst_30 {dimension_numbers = #tpu.dot_dimension_numbers<[1], [0], [0], [1], [0, 0, 1, 1], [], []>} : vector<32x120xbf16>, vector<120x128xbf16>, vector<32x128xf32> -> vector<32x128xf32>
      %42 = vector.broadcast %21 : vector<32x1xf32> to vector<32x128xf32>
      %43 = arith.addf %41, %42 : vector<32x128xf32>
      %44 = vector.extract_strided_slice %43 {offsets = [0, 0], sizes = [16, 128], strides = [1, 1]} : vector<32x128xf32> to vector<16x128xf32>
      %45 = arith.negf %44 : vector<16x128xf32>
      %46 = math.exp %45 : vector<16x128xf32>
      %cst_31 = arith.constant 1.000000e+00 : f32
      %47 = vector.broadcast %cst_31 : f32 to vector<16x128xf32>
      %48 = arith.addf %47, %46 : vector<16x128xf32>
      %49 = arith.divf %47, %48 : vector<16x128xf32>
      %50 = vector.extract_strided_slice %43 {offsets = [16, 0], sizes = [16, 128], strides = [1, 1]} : vector<32x128xf32> to vector<16x128xf32>
      %51 = arith.negf %50 : vector<16x128xf32>
      %52 = math.exp %51 : vector<16x128xf32>
      %cst_32 = arith.constant 1.000000e+00 : f32
      %53 = vector.broadcast %cst_32 : f32 to vector<16x128xf32>
      %54 = arith.addf %53, %52 : vector<16x128xf32>
      %55 = arith.divf %53, %54 : vector<16x128xf32>
      %56 = arith.mulf %49, %19 : vector<16x128xf32>
      %57 = tpu.concatenate %17, %56 in 0 : vector<8x128xf32>, vector<16x128xf32> -> vector<24x128xf32>
      %58 = arith.truncf %57 : vector<24x128xf32> to vector<24x128xbf16>
      %cst_33 = arith.constant dense<0.000000e+00> : vector<24x128xf32>
      %59 = tpu.matmul %58, %1, %cst_33 {dimension_numbers = #tpu.dot_dimension_numbers<[1], [0], [0], [1], [0, 0, 1, 1], [], []>} : vector<24x128xbf16>, vector<128x128xbf16>, vector<24x128xf32> -> vector<24x128xf32>
      %60 = arith.truncf %59 : vector<24x128xf32> to vector<24x128xbf16>
      %cst_34 = arith.constant dense<0.000000e+00> : vector<24x128xf32>
      %61 = tpu.matmul %60, %1, %cst_34 {dimension_numbers = #tpu.dot_dimension_numbers<[1], [0], [0], [1], [0, 0, 1, 1], [], []>} : vector<24x128xbf16>, vector<128x128xbf16>, vector<24x128xf32> -> vector<24x128xf32>
      %cst_35 = arith.constant 2.000000e+00 : f32
      %62 = vector.broadcast %cst_35 : f32 to vector<24x128xf32>
      %63 = arith.mulf %62, %61 : vector<24x128xf32>
      %64 = arith.subf %63, %57 : vector<24x128xf32>
      %65 = arith.truncf %57 : vector<24x128xf32> to vector<24x128xbf16>
      %cst_36 = arith.constant dense<0.000000e+00> : vector<24x128xf32>
      %66 = tpu.matmul %65, %3, %cst_36 {dimension_numbers = #tpu.dot_dimension_numbers<[1], [0], [0], [1], [0, 0, 1, 1], [], []>} : vector<24x128xbf16>, vector<128x128xbf16>, vector<24x128xf32> -> vector<24x128xf32>
      %67 = arith.truncf %66 : vector<24x128xf32> to vector<24x128xbf16>
      %cst_37 = arith.constant dense<0.000000e+00> : vector<24x128xf32>
      %68 = tpu.matmul %67, %3, %cst_37 {dimension_numbers = #tpu.dot_dimension_numbers<[1], [0], [0], [1], [0, 0, 1, 1], [], []>} : vector<24x128xbf16>, vector<128x128xbf16>, vector<24x128xf32> -> vector<24x128xf32>
      %cst_38 = arith.constant 2.000000e+00 : f32
      %69 = vector.broadcast %cst_38 : f32 to vector<24x128xf32>
      %70 = arith.mulf %69, %68 : vector<24x128xf32>
      %71 = arith.subf %70, %57 : vector<24x128xf32>
      %72 = tpu.concatenate %57, %59, %64, %66, %71 in 0 : vector<24x128xf32>, vector<24x128xf32>, vector<24x128xf32>, vector<24x128xf32>, vector<24x128xf32> -> vector<120x128xf32>
      %73 = arith.truncf %72 : vector<120x128xf32> to vector<120x128xbf16>
      %cst_39 = arith.constant dense<0.000000e+00> : vector<16x128xf32>
      %74 = tpu.matmul %22, %73, %cst_39 {dimension_numbers = #tpu.dot_dimension_numbers<[1], [0], [0], [1], [0, 0, 1, 1], [], []>} : vector<16x120xbf16>, vector<120x128xbf16>, vector<16x128xf32> -> vector<16x128xf32>
      %75 = vector.broadcast %23 : vector<16x1xf32> to vector<16x128xf32>
      %76 = arith.addf %74, %75 : vector<16x128xf32>
      %77 = math.tanh %76 : vector<16x128xf32>
      %78 = arith.mulf %55, %19 : vector<16x128xf32>
      %cst_40 = arith.constant 1.000000e+00 : f32
      %79 = vector.broadcast %cst_40 : f32 to vector<16x128xf32>
      %80 = arith.subf %79, %55 : vector<16x128xf32>
      %81 = arith.mulf %80, %77 : vector<16x128xf32>
      %82 = arith.addf %78, %81 : vector<16x128xf32>
      %c0_41 = arith.constant 0 : index
      %c0_42 = arith.constant 0 : index
      %c0_43 = arith.constant 0 : index
      %83 = vector.load %arg23[%c0_41, %c0_42, %c0_43] : memref<2x16x128xf32, #tpu.memory_space<vmem>>, vector<1x16x128xf32>
      %84 = vector.shape_cast %83 : vector<1x16x128xf32> to vector<16x128xf32>
      %85 = vector.shape_cast %82 : vector<16x128xf32> to vector<1x16x128xf32>
      tpu.vector_store %arg23[%c0_41, %c0_42, %c0_43], %85 {strides = array<i32>} : memref<2x16x128xf32, #tpu.memory_space<vmem>>, vector<1x16x128xf32>,
      %c1_44 = arith.constant 1 : index
      %c0_45 = arith.constant 0 : index
      %c0_46 = arith.constant 0 : index
      %86 = vector.load %arg23[%c1_44, %c0_45, %c0_46] : memref<2x16x128xf32, #tpu.memory_space<vmem>>, vector<1x16x128xf32>
      %87 = vector.shape_cast %86 : vector<1x16x128xf32> to vector<16x128xf32>
      %c0_47 = arith.constant 0 : index
      %c0_48 = arith.constant 0 : index
      %88 = vector.load %arg8[%c0_47, %c0_48] : memref<32x160xbf16, #tpu.memory_space<vmem>>, vector<32x160xbf16>
      %c0_49 = arith.constant 0 : index
      %c0_50 = arith.constant 0 : index
      %89 = vector.load %arg9[%c0_49, %c0_50] : memref<32x1xf32, #tpu.memory_space<vmem>>, vector<32x1xf32>
      %c0_51 = arith.constant 0 : index
      %c0_52 = arith.constant 0 : index
      %90 = vector.load %arg10[%c0_51, %c0_52] : memref<16x160xbf16, #tpu.memory_space<vmem>>, vector<16x160xbf16>
      %c0_53 = arith.constant 0 : index
      %c0_54 = arith.constant 0 : index
      %91 = vector.load %arg11[%c0_53, %c0_54] : memref<16x1xf32, #tpu.memory_space<vmem>>, vector<16x1xf32>
      %92 = tpu.concatenate %82, %87 in 0 : vector<16x128xf32>, vector<16x128xf32> -> vector<32x128xf32>
      %93 = arith.truncf %92 : vector<32x128xf32> to vector<32x128xbf16>
      %cst_55 = arith.constant dense<0.000000e+00> : vector<32x128xf32>
      %94 = tpu.matmul %93, %1, %cst_55 {dimension_numbers = #tpu.dot_dimension_numbers<[1], [0], [0], [1], [0, 0, 1, 1], [], []>} : vector<32x128xbf16>, vector<128x128xbf16>, vector<32x128xf32> -> vector<32x128xf32>
      %95 = arith.truncf %94 : vector<32x128xf32> to vector<32x128xbf16>
      %cst_56 = arith.constant dense<0.000000e+00> : vector<32x128xf32>
      %96 = tpu.matmul %95, %1, %cst_56 {dimension_numbers = #tpu.dot_dimension_numbers<[1], [0], [0], [1], [0, 0, 1, 1], [], []>} : vector<32x128xbf16>, vector<128x128xbf16>, vector<32x128xf32> -> vector<32x128xf32>
      %cst_57 = arith.constant 2.000000e+00 : f32
      %97 = vector.broadcast %cst_57 : f32 to vector<32x128xf32>
      %98 = arith.mulf %97, %96 : vector<32x128xf32>
      %99 = arith.subf %98, %92 : vector<32x128xf32>
      %100 = arith.truncf %92 : vector<32x128xf32> to vector<32x128xbf16>
      %cst_58 = arith.constant dense<0.000000e+00> : vector<32x128xf32>
      %101 = tpu.matmul %100, %3, %cst_58 {dimension_numbers = #tpu.dot_dimension_numbers<[1], [0], [0], [1], [0, 0, 1, 1], [], []>} : vector<32x128xbf16>, vector<128x128xbf16>, vector<32x128xf32> -> vector<32x128xf32>
      %102 = arith.truncf %101 : vector<32x128xf32> to vector<32x128xbf16>
      %cst_59 = arith.constant dense<0.000000e+00> : vector<32x128xf32>
      %103 = tpu.matmul %102, %3, %cst_59 {dimension_numbers = #tpu.dot_dimension_numbers<[1], [0], [0], [1], [0, 0, 1, 1], [], []>} : vector<32x128xbf16>, vector<128x128xbf16>, vector<32x128xf32> -> vector<32x128xf32>
      %cst_60 = arith.constant 2.000000e+00 : f32
      %104 = vector.broadcast %cst_60 : f32 to vector<32x128xf32>
      %105 = arith.mulf %104, %103 : vector<32x128xf32>
      %106 = arith.subf %105, %92 : vector<32x128xf32>
      %107 = tpu.concatenate %92, %94, %99, %101, %106 in 0 : vector<32x128xf32>, vector<32x128xf32>, vector<32x128xf32>, vector<32x128xf32>, vector<32x128xf32> -> vector<160x128xf32>
      %108 = arith.truncf %107 : vector<160x128xf32> to vector<160x128xbf16>
      %cst_61 = arith.constant dense<0.000000e+00> : vector<32x128xf32>
      %109 = tpu.matmul %88, %108, %cst_61 {dimension_numbers = #tpu.dot_dimension_numbers<[1], [0], [0], [1], [0, 0, 1, 1], [], []>} : vector<32x160xbf16>, vector<160x128xbf16>, vector<32x128xf32> -> vector<32x128xf32>
      %110 = vector.broadcast %89 : vector<32x1xf32> to vector<32x128xf32>
      %111 = arith.addf %109, %110 : vector<32x128xf32>
      %112 = vector.extract_strided_slice %111 {offsets = [0, 0], sizes = [16, 128], strides = [1, 1]} : vector<32x128xf32> to vector<16x128xf32>
      %113 = arith.negf %112 : vector<16x128xf32>
      %114 = math.exp %113 : vector<16x128xf32>
      %cst_62 = arith.constant 1.000000e+00 : f32
      %115 = vector.broadcast %cst_62 : f32 to vector<16x128xf32>
      %116 = arith.addf %115, %114 : vector<16x128xf32>
      %117 = arith.divf %115, %116 : vector<16x128xf32>
      %118 = vector.extract_strided_slice %111 {offsets = [16, 0], sizes = [16, 128], strides = [1, 1]} : vector<32x128xf32> to vector<16x128xf32>
      %119 = arith.negf %118 : vector<16x128xf32>
      %120 = math.exp %119 : vector<16x128xf32>
      %cst_63 = arith.constant 1.000000e+00 : f32
      %121 = vector.broadcast %cst_63 : f32 to vector<16x128xf32>
      %122 = arith.addf %121, %120 : vector<16x128xf32>
      %123 = arith.divf %121, %122 : vector<16x128xf32>
      %124 = arith.mulf %117, %87 : vector<16x128xf32>
      %125 = tpu.concatenate %82, %124 in 0 : vector<16x128xf32>, vector<16x128xf32> -> vector<32x128xf32>
      %126 = arith.truncf %125 : vector<32x128xf32> to vector<32x128xbf16>
      %cst_64 = arith.constant dense<0.000000e+00> : vector<32x128xf32>
      %127 = tpu.matmul %126, %1, %cst_64 {dimension_numbers = #tpu.dot_dimension_numbers<[1], [0], [0], [1], [0, 0, 1, 1], [], []>} : vector<32x128xbf16>, vector<128x128xbf16>, vector<32x128xf32> -> vector<32x128xf32>
      %128 = arith.truncf %127 : vector<32x128xf32> to vector<32x128xbf16>
      %cst_65 = arith.constant dense<0.000000e+00> : vector<32x128xf32>
      %129 = tpu.matmul %128, %1, %cst_65 {dimension_numbers = #tpu.dot_dimension_numbers<[1], [0], [0], [1], [0, 0, 1, 1], [], []>} : vector<32x128xbf16>, vector<128x128xbf16>, vector<32x128xf32> -> vector<32x128xf32>
      %cst_66 = arith.constant 2.000000e+00 : f32
      %130 = vector.broadcast %cst_66 : f32 to vector<32x128xf32>
      %131 = arith.mulf %130, %129 : vector<32x128xf32>
      %132 = arith.subf %131, %125 : vector<32x128xf32>
      %133 = arith.truncf %125 : vector<32x128xf32> to vector<32x128xbf16>
      %cst_67 = arith.constant dense<0.000000e+00> : vector<32x128xf32>
      %134 = tpu.matmul %133, %3, %cst_67 {dimension_numbers = #tpu.dot_dimension_numbers<[1], [0], [0], [1], [0, 0, 1, 1], [], []>} : vector<32x128xbf16>, vector<128x128xbf16>, vector<32x128xf32> -> vector<32x128xf32>
      %135 = arith.truncf %134 : vector<32x128xf32> to vector<32x128xbf16>
      %cst_68 = arith.constant dense<0.000000e+00> : vector<32x128xf32>
      %136 = tpu.matmul %135, %3, %cst_68 {dimension_numbers = #tpu.dot_dimension_numbers<[1], [0], [0], [1], [0, 0, 1, 1], [], []>} : vector<32x128xbf16>, vector<128x128xbf16>, vector<32x128xf32> -> vector<32x128xf32>
      %cst_69 = arith.constant 2.000000e+00 : f32
      %137 = vector.broadcast %cst_69 : f32 to vector<32x128xf32>
      %138 = arith.mulf %137, %136 : vector<32x128xf32>
      %139 = arith.subf %138, %125 : vector<32x128xf32>
      %140 = tpu.concatenate %125, %127, %132, %134, %139 in 0 : vector<32x128xf32>, vector<32x128xf32>, vector<32x128xf32>, vector<32x128xf32>, vector<32x128xf32> -> vector<160x128xf32>
      %141 = arith.truncf %140 : vector<160x128xf32> to vector<160x128xbf16>
      %cst_70 = arith.constant dense<0.000000e+00> : vector<16x128xf32>
      %142 = tpu.matmul %90, %141, %cst_70 {dimension_numbers = #tpu.dot_dimension_numbers<[1], [0], [0], [1], [0, 0, 1, 1], [], []>} : vector<16x160xbf16>, vector<160x128xbf16>, vector<16x128xf32> -> vector<16x128xf32>
      %143 = vector.broadcast %91 : vector<16x1xf32> to vector<16x128xf32>
      %144 = arith.addf %142, %143 : vector<16x128xf32>
      %145 = math.tanh %144 : vector<16x128xf32>
      %146 = arith.mulf %123, %87 : vector<16x128xf32>
      %cst_71 = arith.constant 1.000000e+00 : f32
      %147 = vector.broadcast %cst_71 : f32 to vector<16x128xf32>
      %148 = arith.subf %147, %123 : vector<16x128xf32>
      %149 = arith.mulf %148, %145 : vector<16x128xf32>
      %150 = arith.addf %146, %149 : vector<16x128xf32>
      %c1_72 = arith.constant 1 : index
      %c0_73 = arith.constant 0 : index
      %c0_74 = arith.constant 0 : index
      %151 = vector.load %arg23[%c1_72, %c0_73, %c0_74] : memref<2x16x128xf32, #tpu.memory_space<vmem>>, vector<1x16x128xf32>
      %152 = vector.shape_cast %151 : vector<1x16x128xf32> to vector<16x128xf32>
      %153 = vector.shape_cast %150 : vector<16x128xf32> to vector<1x16x128xf32>
      tpu.vector_store %arg23[%c1_72, %c0_73, %c0_74], %153 {strides = array<i32>} : memref<2x16x128xf32, #tpu.memory_space<vmem>>, vector<1x16x128xf32>,
    } else {
    }
    %c4_i32_8 = arith.constant 4 : i32
    %13 = arith.cmpi sge, %arg1, %c4_i32_8 : i32
    %14 = arith.extui %13 : i1 to i32
    %c0_i32_9 = arith.constant 0 : i32
    %15 = arith.cmpi ne, %14, %c0_i32_9 : i32
    scf.if %15 {
      %c0_10 = arith.constant 0 : index
      %c0_11 = arith.constant 0 : index
      %16 = vector.load %arg24[%c0_10, %c0_11] : memref<8x128xf32, #tpu.memory_space<vmem>>, vector<8x128xf32>
      %c0_12 = arith.constant 0 : index
      %c0_13 = arith.constant 0 : index
      %c0_14 = arith.constant 0 : index
      %17 = vector.load %arg23[%c0_12, %c0_13, %c0_14] : memref<2x16x128xf32, #tpu.memory_space<vmem>>, vector<1x16x128xf32>
      %18 = vector.shape_cast %17 : vector<1x16x128xf32> to vector<16x128xf32>
      %c0_15 = arith.constant 0 : index
      %c0_16 = arith.constant 0 : index
      %19 = vector.load %arg12[%c0_15, %c0_16] : memref<32x120xbf16, #tpu.memory_space<vmem>>, vector<32x120xbf16>
      %c0_17 = arith.constant 0 : index
      %c0_18 = arith.constant 0 : index
      %20 = vector.load %arg13[%c0_17, %c0_18] : memref<32x1xf32, #tpu.memory_space<vmem>>, vector<32x1xf32>
      %c0_19 = arith.constant 0 : index
      %c0_20 = arith.constant 0 : index
      %21 = vector.load %arg14[%c0_19, %c0_20] : memref<16x120xbf16, #tpu.memory_space<vmem>>, vector<16x120xbf16>
      %c0_21 = arith.constant 0 : index
      %c0_22 = arith.constant 0 : index
      %22 = vector.load %arg15[%c0_21, %c0_22] : memref<16x1xf32, #tpu.memory_space<vmem>>, vector<16x1xf32>
      %23 = tpu.concatenate %16, %18 in 0 : vector<8x128xf32>, vector<16x128xf32> -> vector<24x128xf32>
      %24 = arith.truncf %23 : vector<24x128xf32> to vector<24x128xbf16>
      %cst = arith.constant dense<0.000000e+00> : vector<24x128xf32>
      %25 = tpu.matmul %24, %1, %cst {dimension_numbers = #tpu.dot_dimension_numbers<[1], [0], [0], [1], [0, 0, 1, 1], [], []>} : vector<24x128xbf16>, vector<128x128xbf16>, vector<24x128xf32> -> vector<24x128xf32>
      %26 = arith.truncf %25 : vector<24x128xf32> to vector<24x128xbf16>
      %cst_23 = arith.constant dense<0.000000e+00> : vector<24x128xf32>
      %27 = tpu.matmul %26, %1, %cst_23 {dimension_numbers = #tpu.dot_dimension_numbers<[1], [0], [0], [1], [0, 0, 1, 1], [], []>} : vector<24x128xbf16>, vector<128x128xbf16>, vector<24x128xf32> -> vector<24x128xf32>
      %cst_24 = arith.constant 2.000000e+00 : f32
      %28 = vector.broadcast %cst_24 : f32 to vector<24x128xf32>
      %29 = arith.mulf %28, %27 : vector<24x128xf32>
      %30 = arith.subf %29, %23 : vector<24x128xf32>
      %31 = arith.truncf %23 : vector<24x128xf32> to vector<24x128xbf16>
      %cst_25 = arith.constant dense<0.000000e+00> : vector<24x128xf32>
      %32 = tpu.matmul %31, %3, %cst_25 {dimension_numbers = #tpu.dot_dimension_numbers<[1], [0], [0], [1], [0, 0, 1, 1], [], []>} : vector<24x128xbf16>, vector<128x128xbf16>, vector<24x128xf32> -> vector<24x128xf32>
      %33 = arith.truncf %32 : vector<24x128xf32> to vector<24x128xbf16>
      %cst_26 = arith.constant dense<0.000000e+00> : vector<24x128xf32>
      %34 = tpu.matmul %33, %3, %cst_26 {dimension_numbers = #tpu.dot_dimension_numbers<[1], [0], [0], [1], [0, 0, 1, 1], [], []>} : vector<24x128xbf16>, vector<128x128xbf16>, vector<24x128xf32> -> vector<24x128xf32>
      %cst_27 = arith.constant 2.000000e+00 : f32
      %35 = vector.broadcast %cst_27 : f32 to vector<24x128xf32>
      %36 = arith.mulf %35, %34 : vector<24x128xf32>
      %37 = arith.subf %36, %23 : vector<24x128xf32>
      %38 = tpu.concatenate %23, %25, %30, %32, %37 in 0 : vector<24x128xf32>, vector<24x128xf32>, vector<24x128xf32>, vector<24x128xf32>, vector<24x128xf32> -> vector<120x128xf32>
      %39 = arith.truncf %38 : vector<120x128xf32> to vector<120x128xbf16>
      %cst_28 = arith.constant dense<0.000000e+00> : vector<32x128xf32>
      %40 = tpu.matmul %19, %39, %cst_28 {dimension_numbers = #tpu.dot_dimension_numbers<[1], [0], [0], [1], [0, 0, 1, 1], [], []>} : vector<32x120xbf16>, vector<120x128xbf16>, vector<32x128xf32> -> vector<32x128xf32>
      %41 = vector.broadcast %20 : vector<32x1xf32> to vector<32x128xf32>
      %42 = arith.addf %40, %41 : vector<32x128xf32>
      %43 = vector.extract_strided_slice %42 {offsets = [0, 0], sizes = [16, 128], strides = [1, 1]} : vector<32x128xf32> to vector<16x128xf32>
      %44 = arith.negf %43 : vector<16x128xf32>
      %45 = math.exp %44 : vector<16x128xf32>
      %cst_29 = arith.constant 1.000000e+00 : f32
      %46 = vector.broadcast %cst_29 : f32 to vector<16x128xf32>
      %47 = arith.addf %46, %45 : vector<16x128xf32>
      %48 = arith.divf %46, %47 : vector<16x128xf32>
      %49 = vector.extract_strided_slice %42 {offsets = [16, 0], sizes = [16, 128], strides = [1, 1]} : vector<32x128xf32> to vector<16x128xf32>
      %50 = arith.negf %49 : vector<16x128xf32>
      %51 = math.exp %50 : vector<16x128xf32>
      %cst_30 = arith.constant 1.000000e+00 : f32
      %52 = vector.broadcast %cst_30 : f32 to vector<16x128xf32>
      %53 = arith.addf %52, %51 : vector<16x128xf32>
      %54 = arith.divf %52, %53 : vector<16x128xf32>
      %55 = arith.mulf %48, %18 : vector<16x128xf32>
      %56 = tpu.concatenate %16, %55 in 0 : vector<8x128xf32>, vector<16x128xf32> -> vector<24x128xf32>
      %57 = arith.truncf %56 : vector<24x128xf32> to vector<24x128xbf16>
      %cst_31 = arith.constant dense<0.000000e+00> : vector<24x128xf32>
      %58 = tpu.matmul %57, %1, %cst_31 {dimension_numbers = #tpu.dot_dimension_numbers<[1], [0], [0], [1], [0, 0, 1, 1], [], []>} : vector<24x128xbf16>, vector<128x128xbf16>, vector<24x128xf32> -> vector<24x128xf32>
      %59 = arith.truncf %58 : vector<24x128xf32> to vector<24x128xbf16>
      %cst_32 = arith.constant dense<0.000000e+00> : vector<24x128xf32>
      %60 = tpu.matmul %59, %1, %cst_32 {dimension_numbers = #tpu.dot_dimension_numbers<[1], [0], [0], [1], [0, 0, 1, 1], [], []>} : vector<24x128xbf16>, vector<128x128xbf16>, vector<24x128xf32> -> vector<24x128xf32>
      %cst_33 = arith.constant 2.000000e+00 : f32
      %61 = vector.broadcast %cst_33 : f32 to vector<24x128xf32>
      %62 = arith.mulf %61, %60 : vector<24x128xf32>
      %63 = arith.subf %62, %56 : vector<24x128xf32>
      %64 = arith.truncf %56 : vector<24x128xf32> to vector<24x128xbf16>
      %cst_34 = arith.constant dense<0.000000e+00> : vector<24x128xf32>
      %65 = tpu.matmul %64, %3, %cst_34 {dimension_numbers = #tpu.dot_dimension_numbers<[1], [0], [0], [1], [0, 0, 1, 1], [], []>} : vector<24x128xbf16>, vector<128x128xbf16>, vector<24x128xf32> -> vector<24x128xf32>
      %66 = arith.truncf %65 : vector<24x128xf32> to vector<24x128xbf16>
      %cst_35 = arith.constant dense<0.000000e+00> : vector<24x128xf32>
      %67 = tpu.matmul %66, %3, %cst_35 {dimension_numbers = #tpu.dot_dimension_numbers<[1], [0], [0], [1], [0, 0, 1, 1], [], []>} : vector<24x128xbf16>, vector<128x128xbf16>, vector<24x128xf32> -> vector<24x128xf32>
      %cst_36 = arith.constant 2.000000e+00 : f32
      %68 = vector.broadcast %cst_36 : f32 to vector<24x128xf32>
      %69 = arith.mulf %68, %67 : vector<24x128xf32>
      %70 = arith.subf %69, %56 : vector<24x128xf32>
      %71 = tpu.concatenate %56, %58, %63, %65, %70 in 0 : vector<24x128xf32>, vector<24x128xf32>, vector<24x128xf32>, vector<24x128xf32>, vector<24x128xf32> -> vector<120x128xf32>
      %72 = arith.truncf %71 : vector<120x128xf32> to vector<120x128xbf16>
      %cst_37 = arith.constant dense<0.000000e+00> : vector<16x128xf32>
      %73 = tpu.matmul %21, %72, %cst_37 {dimension_numbers = #tpu.dot_dimension_numbers<[1], [0], [0], [1], [0, 0, 1, 1], [], []>} : vector<16x120xbf16>, vector<120x128xbf16>, vector<16x128xf32> -> vector<16x128xf32>
      %74 = vector.broadcast %22 : vector<16x1xf32> to vector<16x128xf32>
      %75 = arith.addf %73, %74 : vector<16x128xf32>
      %76 = math.tanh %75 : vector<16x128xf32>
      %77 = arith.mulf %54, %18 : vector<16x128xf32>
      %cst_38 = arith.constant 1.000000e+00 : f32
      %78 = vector.broadcast %cst_38 : f32 to vector<16x128xf32>
      %79 = arith.subf %78, %54 : vector<16x128xf32>
      %80 = arith.mulf %79, %76 : vector<16x128xf32>
      %81 = arith.addf %77, %80 : vector<16x128xf32>
      %c0_39 = arith.constant 0 : index
      %c0_40 = arith.constant 0 : index
      %c0_41 = arith.constant 0 : index
      %82 = vector.load %arg23[%c0_39, %c0_40, %c0_41] : memref<2x16x128xf32, #tpu.memory_space<vmem>>, vector<1x16x128xf32>
      %83 = vector.shape_cast %82 : vector<1x16x128xf32> to vector<16x128xf32>
      %84 = vector.shape_cast %81 : vector<16x128xf32> to vector<1x16x128xf32>
      tpu.vector_store %arg23[%c0_39, %c0_40, %c0_41], %84 {strides = array<i32>} : memref<2x16x128xf32, #tpu.memory_space<vmem>>, vector<1x16x128xf32>,
      %c1_42 = arith.constant 1 : index
      %c0_43 = arith.constant 0 : index
      %c0_44 = arith.constant 0 : index
      %85 = vector.load %arg23[%c1_42, %c0_43, %c0_44] : memref<2x16x128xf32, #tpu.memory_space<vmem>>, vector<1x16x128xf32>
      %86 = vector.shape_cast %85 : vector<1x16x128xf32> to vector<16x128xf32>
      %c0_45 = arith.constant 0 : index
      %c0_46 = arith.constant 0 : index
      %87 = vector.load %arg16[%c0_45, %c0_46] : memref<32x160xbf16, #tpu.memory_space<vmem>>, vector<32x160xbf16>
      %c0_47 = arith.constant 0 : index
      %c0_48 = arith.constant 0 : index
      %88 = vector.load %arg17[%c0_47, %c0_48] : memref<32x1xf32, #tpu.memory_space<vmem>>, vector<32x1xf32>
      %c0_49 = arith.constant 0 : index
      %c0_50 = arith.constant 0 : index
      %89 = vector.load %arg18[%c0_49, %c0_50] : memref<16x160xbf16, #tpu.memory_space<vmem>>, vector<16x160xbf16>
      %c0_51 = arith.constant 0 : index
      %c0_52 = arith.constant 0 : index
      %90 = vector.load %arg19[%c0_51, %c0_52] : memref<16x1xf32, #tpu.memory_space<vmem>>, vector<16x1xf32>
      %91 = tpu.concatenate %81, %86 in 0 : vector<16x128xf32>, vector<16x128xf32> -> vector<32x128xf32>
      %92 = arith.truncf %91 : vector<32x128xf32> to vector<32x128xbf16>
      %cst_53 = arith.constant dense<0.000000e+00> : vector<32x128xf32>
      %93 = tpu.matmul %92, %1, %cst_53 {dimension_numbers = #tpu.dot_dimension_numbers<[1], [0], [0], [1], [0, 0, 1, 1], [], []>} : vector<32x128xbf16>, vector<128x128xbf16>, vector<32x128xf32> -> vector<32x128xf32>
      %94 = arith.truncf %93 : vector<32x128xf32> to vector<32x128xbf16>
      %cst_54 = arith.constant dense<0.000000e+00> : vector<32x128xf32>
      %95 = tpu.matmul %94, %1, %cst_54 {dimension_numbers = #tpu.dot_dimension_numbers<[1], [0], [0], [1], [0, 0, 1, 1], [], []>} : vector<32x128xbf16>, vector<128x128xbf16>, vector<32x128xf32> -> vector<32x128xf32>
      %cst_55 = arith.constant 2.000000e+00 : f32
      %96 = vector.broadcast %cst_55 : f32 to vector<32x128xf32>
      %97 = arith.mulf %96, %95 : vector<32x128xf32>
      %98 = arith.subf %97, %91 : vector<32x128xf32>
      %99 = arith.truncf %91 : vector<32x128xf32> to vector<32x128xbf16>
      %cst_56 = arith.constant dense<0.000000e+00> : vector<32x128xf32>
      %100 = tpu.matmul %99, %3, %cst_56 {dimension_numbers = #tpu.dot_dimension_numbers<[1], [0], [0], [1], [0, 0, 1, 1], [], []>} : vector<32x128xbf16>, vector<128x128xbf16>, vector<32x128xf32> -> vector<32x128xf32>
      %101 = arith.truncf %100 : vector<32x128xf32> to vector<32x128xbf16>
      %cst_57 = arith.constant dense<0.000000e+00> : vector<32x128xf32>
      %102 = tpu.matmul %101, %3, %cst_57 {dimension_numbers = #tpu.dot_dimension_numbers<[1], [0], [0], [1], [0, 0, 1, 1], [], []>} : vector<32x128xbf16>, vector<128x128xbf16>, vector<32x128xf32> -> vector<32x128xf32>
      %cst_58 = arith.constant 2.000000e+00 : f32
      %103 = vector.broadcast %cst_58 : f32 to vector<32x128xf32>
      %104 = arith.mulf %103, %102 : vector<32x128xf32>
      %105 = arith.subf %104, %91 : vector<32x128xf32>
      %106 = tpu.concatenate %91, %93, %98, %100, %105 in 0 : vector<32x128xf32>, vector<32x128xf32>, vector<32x128xf32>, vector<32x128xf32>, vector<32x128xf32> -> vector<160x128xf32>
      %107 = arith.truncf %106 : vector<160x128xf32> to vector<160x128xbf16>
      %cst_59 = arith.constant dense<0.000000e+00> : vector<32x128xf32>
      %108 = tpu.matmul %87, %107, %cst_59 {dimension_numbers = #tpu.dot_dimension_numbers<[1], [0], [0], [1], [0, 0, 1, 1], [], []>} : vector<32x160xbf16>, vector<160x128xbf16>, vector<32x128xf32> -> vector<32x128xf32>
      %109 = vector.broadcast %88 : vector<32x1xf32> to vector<32x128xf32>
      %110 = arith.addf %108, %109 : vector<32x128xf32>
      %111 = vector.extract_strided_slice %110 {offsets = [0, 0], sizes = [16, 128], strides = [1, 1]} : vector<32x128xf32> to vector<16x128xf32>
      %112 = arith.negf %111 : vector<16x128xf32>
      %113 = math.exp %112 : vector<16x128xf32>
      %cst_60 = arith.constant 1.000000e+00 : f32
      %114 = vector.broadcast %cst_60 : f32 to vector<16x128xf32>
      %115 = arith.addf %114, %113 : vector<16x128xf32>
      %116 = arith.divf %114, %115 : vector<16x128xf32>
      %117 = vector.extract_strided_slice %110 {offsets = [16, 0], sizes = [16, 128], strides = [1, 1]} : vector<32x128xf32> to vector<16x128xf32>
      %118 = arith.negf %117 : vector<16x128xf32>
      %119 = math.exp %118 : vector<16x128xf32>
      %cst_61 = arith.constant 1.000000e+00 : f32
      %120 = vector.broadcast %cst_61 : f32 to vector<16x128xf32>
      %121 = arith.addf %120, %119 : vector<16x128xf32>
      %122 = arith.divf %120, %121 : vector<16x128xf32>
      %123 = arith.mulf %116, %86 : vector<16x128xf32>
      %124 = tpu.concatenate %81, %123 in 0 : vector<16x128xf32>, vector<16x128xf32> -> vector<32x128xf32>
      %125 = arith.truncf %124 : vector<32x128xf32> to vector<32x128xbf16>
      %cst_62 = arith.constant dense<0.000000e+00> : vector<32x128xf32>
      %126 = tpu.matmul %125, %1, %cst_62 {dimension_numbers = #tpu.dot_dimension_numbers<[1], [0], [0], [1], [0, 0, 1, 1], [], []>} : vector<32x128xbf16>, vector<128x128xbf16>, vector<32x128xf32> -> vector<32x128xf32>
      %127 = arith.truncf %126 : vector<32x128xf32> to vector<32x128xbf16>
      %cst_63 = arith.constant dense<0.000000e+00> : vector<32x128xf32>
      %128 = tpu.matmul %127, %1, %cst_63 {dimension_numbers = #tpu.dot_dimension_numbers<[1], [0], [0], [1], [0, 0, 1, 1], [], []>} : vector<32x128xbf16>, vector<128x128xbf16>, vector<32x128xf32> -> vector<32x128xf32>
      %cst_64 = arith.constant 2.000000e+00 : f32
      %129 = vector.broadcast %cst_64 : f32 to vector<32x128xf32>
      %130 = arith.mulf %129, %128 : vector<32x128xf32>
      %131 = arith.subf %130, %124 : vector<32x128xf32>
      %132 = arith.truncf %124 : vector<32x128xf32> to vector<32x128xbf16>
      %cst_65 = arith.constant dense<0.000000e+00> : vector<32x128xf32>
      %133 = tpu.matmul %132, %3, %cst_65 {dimension_numbers = #tpu.dot_dimension_numbers<[1], [0], [0], [1], [0, 0, 1, 1], [], []>} : vector<32x128xbf16>, vector<128x128xbf16>, vector<32x128xf32> -> vector<32x128xf32>
      %134 = arith.truncf %133 : vector<32x128xf32> to vector<32x128xbf16>
      %cst_66 = arith.constant dense<0.000000e+00> : vector<32x128xf32>
      %135 = tpu.matmul %134, %3, %cst_66 {dimension_numbers = #tpu.dot_dimension_numbers<[1], [0], [0], [1], [0, 0, 1, 1], [], []>} : vector<32x128xbf16>, vector<128x128xbf16>, vector<32x128xf32> -> vector<32x128xf32>
      %cst_67 = arith.constant 2.000000e+00 : f32
      %136 = vector.broadcast %cst_67 : f32 to vector<32x128xf32>
      %137 = arith.mulf %136, %135 : vector<32x128xf32>
      %138 = arith.subf %137, %124 : vector<32x128xf32>
      %139 = tpu.concatenate %124, %126, %131, %133, %138 in 0 : vector<32x128xf32>, vector<32x128xf32>, vector<32x128xf32>, vector<32x128xf32>, vector<32x128xf32> -> vector<160x128xf32>
      %140 = arith.truncf %139 : vector<160x128xf32> to vector<160x128xbf16>
      %cst_68 = arith.constant dense<0.000000e+00> : vector<16x128xf32>
      %141 = tpu.matmul %89, %140, %cst_68 {dimension_numbers = #tpu.dot_dimension_numbers<[1], [0], [0], [1], [0, 0, 1, 1], [], []>} : vector<16x160xbf16>, vector<160x128xbf16>, vector<16x128xf32> -> vector<16x128xf32>
      %142 = vector.broadcast %90 : vector<16x1xf32> to vector<16x128xf32>
      %143 = arith.addf %141, %142 : vector<16x128xf32>
      %144 = math.tanh %143 : vector<16x128xf32>
      %145 = arith.mulf %122, %86 : vector<16x128xf32>
      %cst_69 = arith.constant 1.000000e+00 : f32
      %146 = vector.broadcast %cst_69 : f32 to vector<16x128xf32>
      %147 = arith.subf %146, %122 : vector<16x128xf32>
      %148 = arith.mulf %147, %144 : vector<16x128xf32>
      %149 = arith.addf %145, %148 : vector<16x128xf32>
      %c1_70 = arith.constant 1 : index
      %c0_71 = arith.constant 0 : index
      %c0_72 = arith.constant 0 : index
      %150 = vector.load %arg23[%c1_70, %c0_71, %c0_72] : memref<2x16x128xf32, #tpu.memory_space<vmem>>, vector<1x16x128xf32>
      %151 = vector.shape_cast %150 : vector<1x16x128xf32> to vector<16x128xf32>
      %152 = vector.shape_cast %149 : vector<16x128xf32> to vector<1x16x128xf32>
      tpu.vector_store %arg23[%c1_70, %c0_71, %c0_72], %152 {strides = array<i32>} : memref<2x16x128xf32, #tpu.memory_space<vmem>>, vector<1x16x128xf32>,
      %c0_73 = arith.constant 0 : index
      %c0_74 = arith.constant 0 : index
      %153 = vector.load %arg20[%c0_73, %c0_74] : memref<8x16xbf16, #tpu.memory_space<vmem>>, vector<8x16xbf16>
      %154 = arith.truncf %149 : vector<16x128xf32> to vector<16x128xbf16>
      %cst_75 = arith.constant dense<0.000000e+00> : vector<8x128xf32>
      %155 = tpu.matmul %153, %154, %cst_75 {dimension_numbers = #tpu.dot_dimension_numbers<[1], [0], [0], [1], [0, 0, 1, 1], [], []>} : vector<8x16xbf16>, vector<16x128xbf16>, vector<8x128xf32> -> vector<8x128xf32>
      %c0_76 = arith.constant 0 : index
      %c0_77 = arith.constant 0 : index
      %156 = vector.load %arg21[%c0_76, %c0_77] : memref<8x1xf32, #tpu.memory_space<vmem>>, vector<8x1xf32>
      %157 = vector.broadcast %156 : vector<8x1xf32> to vector<8x128xf32>
      %158 = arith.addf %155, %157 : vector<8x128xf32>
      %c0_78 = arith.constant 0 : index
      %c0_79 = arith.constant 0 : index
      %c0_80 = arith.constant 0 : index
      %c0_81 = arith.constant 0 : index
      %159 = vector.load %arg22[%c0_78, %c0_79, %c0_80, %c0_81] : memref<1x1x8x128xf32, #tpu.memory_space<vmem>>, vector<1x1x8x128xf32>
      %160 = vector.shape_cast %159 : vector<1x1x8x128xf32> to vector<8x128xf32>
      %161 = vector.shape_cast %158 : vector<8x128xf32> to vector<1x1x8x128xf32>
      tpu.vector_store %arg22[%c0_78, %c0_79, %c0_80, %c0_81], %161 {strides = array<i32>} : memref<1x1x8x128xf32, #tpu.memory_space<vmem>>, vector<1x1x8x128xf32>,
      %c0_82 = arith.constant 0 : index
      %c0_83 = arith.constant 0 : index
      %162 = vector.load %arg24[%c0_82, %c0_83] : memref<8x128xf32, #tpu.memory_space<vmem>>, vector<8x128xf32>
      tpu.vector_store %arg24[%c0_82, %c0_83], %158 {strides = array<i32>} : memref<8x128xf32, #tpu.memory_space<vmem>>, vector<8x128xf32>,
    } else {
    }
    return
  }
  func.func @transform_0(%arg0: i32, %arg1: i32) -> (i32, i32, i32, i32) {
    %c3_i32 = arith.constant 3 : i32
    %0 = arith.minsi %arg1, %c3_i32 : i32
    %c0_i32 = arith.constant 0 : i32
    %c0_i32_0 = arith.constant 0 : i32
    %c0_i32_1 = arith.constant 0 : i32
    return %arg0, %0, %c0_i32, %c0_i32_0 : i32, i32, i32, i32
  }
  func.func @transform_1(%arg0: i32, %arg1: i32) -> (i32, i32, i32) {
    %c0_i32 = arith.constant 0 : i32
    %c0_i32_0 = arith.constant 0 : i32
    %c0_i32_1 = arith.constant 0 : i32
    %c0_i32_2 = arith.constant 0 : i32
    return %c0_i32, %c0_i32_0, %c0_i32_1 : i32, i32, i32
  }
  func.func @transform_2(%arg0: i32, %arg1: i32) -> (i32, i32) {
    %c0_i32 = arith.constant 0 : i32
    %c0_i32_0 = arith.constant 0 : i32
    %c0_i32_1 = arith.constant 0 : i32
    return %c0_i32, %c0_i32_0 : i32, i32
  }
  func.func @transform_3(%arg0: i32, %arg1: i32) -> (i32, i32) {
    %c0_i32 = arith.constant 0 : i32
    %c0_i32_0 = arith.constant 0 : i32
    %c0_i32_1 = arith.constant 0 : i32
    return %c0_i32, %c0_i32_0 : i32, i32
  }
  func.func @transform_4(%arg0: i32, %arg1: i32) -> (i32, i32) {
    %c0_i32 = arith.constant 0 : i32
    %c0_i32_0 = arith.constant 0 : i32
    %c0_i32_1 = arith.constant 0 : i32
    return %c0_i32, %c0_i32_0 : i32, i32
  }
  func.func @transform_5(%arg0: i32, %arg1: i32) -> (i32, i32) {
    %c0_i32 = arith.constant 0 : i32
    %c0_i32_0 = arith.constant 0 : i32
    %c0_i32_1 = arith.constant 0 : i32
    return %c0_i32, %c0_i32_0 : i32, i32
  }
  func.func @transform_6(%arg0: i32, %arg1: i32) -> (i32, i32) {
    %c0_i32 = arith.constant 0 : i32
    %c0_i32_0 = arith.constant 0 : i32
    %c0_i32_1 = arith.constant 0 : i32
    return %c0_i32, %c0_i32_0 : i32, i32
  }
  func.func @transform_7(%arg0: i32, %arg1: i32) -> (i32, i32) {
    %c0_i32 = arith.constant 0 : i32
    %c0_i32_0 = arith.constant 0 : i32
    %c0_i32_1 = arith.constant 0 : i32
    return %c0_i32, %c0_i32_0 : i32, i32
  }
  func.func @transform_8(%arg0: i32, %arg1: i32) -> (i32, i32) {
    %c0_i32 = arith.constant 0 : i32
    %c0_i32_0 = arith.constant 0 : i32
    %c0_i32_1 = arith.constant 0 : i32
    return %c0_i32, %c0_i32_0 : i32, i32
  }
  func.func @transform_9(%arg0: i32, %arg1: i32) -> (i32, i32) {
    %c0_i32 = arith.constant 0 : i32
    %c0_i32_0 = arith.constant 0 : i32
    %c0_i32_1 = arith.constant 0 : i32
    return %c0_i32, %c0_i32_0 : i32, i32
  }
  func.func @transform_10(%arg0: i32, %arg1: i32) -> (i32, i32) {
    %c0_i32 = arith.constant 0 : i32
    %c0_i32_0 = arith.constant 0 : i32
    %c0_i32_1 = arith.constant 0 : i32
    return %c0_i32, %c0_i32_0 : i32, i32
  }
  func.func @transform_11(%arg0: i32, %arg1: i32) -> (i32, i32) {
    %c0_i32 = arith.constant 0 : i32
    %c0_i32_0 = arith.constant 0 : i32
    %c0_i32_1 = arith.constant 0 : i32
    return %c0_i32, %c0_i32_0 : i32, i32
  }
  func.func @transform_12(%arg0: i32, %arg1: i32) -> (i32, i32) {
    %c0_i32 = arith.constant 0 : i32
    %c0_i32_0 = arith.constant 0 : i32
    %c0_i32_1 = arith.constant 0 : i32
    return %c0_i32, %c0_i32_0 : i32, i32
  }
  func.func @transform_13(%arg0: i32, %arg1: i32) -> (i32, i32) {
    %c0_i32 = arith.constant 0 : i32
    %c0_i32_0 = arith.constant 0 : i32
    %c0_i32_1 = arith.constant 0 : i32
    return %c0_i32, %c0_i32_0 : i32, i32
  }
  func.func @transform_14(%arg0: i32, %arg1: i32) -> (i32, i32) {
    %c0_i32 = arith.constant 0 : i32
    %c0_i32_0 = arith.constant 0 : i32
    %c0_i32_1 = arith.constant 0 : i32
    return %c0_i32, %c0_i32_0 : i32, i32
  }
  func.func @transform_15(%arg0: i32, %arg1: i32) -> (i32, i32) {
    %c0_i32 = arith.constant 0 : i32
    %c0_i32_0 = arith.constant 0 : i32
    %c0_i32_1 = arith.constant 0 : i32
    return %c0_i32, %c0_i32_0 : i32, i32
  }
  func.func @transform_16(%arg0: i32, %arg1: i32) -> (i32, i32) {
    %c0_i32 = arith.constant 0 : i32
    %c0_i32_0 = arith.constant 0 : i32
    %c0_i32_1 = arith.constant 0 : i32
    return %c0_i32, %c0_i32_0 : i32, i32
  }
  func.func @transform_17(%arg0: i32, %arg1: i32) -> (i32, i32) {
    %c0_i32 = arith.constant 0 : i32
    %c0_i32_0 = arith.constant 0 : i32
    %c0_i32_1 = arith.constant 0 : i32
    return %c0_i32, %c0_i32_0 : i32, i32
  }
  func.func @transform_18(%arg0: i32, %arg1: i32) -> (i32, i32) {
    %c0_i32 = arith.constant 0 : i32
    %c0_i32_0 = arith.constant 0 : i32
    %c0_i32_1 = arith.constant 0 : i32
    return %c0_i32, %c0_i32_0 : i32, i32
  }
  func.func @transform_19(%arg0: i32, %arg1: i32) -> (i32, i32) {
    %c0_i32 = arith.constant 0 : i32
    %c0_i32_0 = arith.constant 0 : i32
    %c0_i32_1 = arith.constant 0 : i32
    return %c0_i32, %c0_i32_0 : i32, i32
  }
  func.func @transform_20(%arg0: i32, %arg1: i32) -> (i32, i32, i32, i32) {
    %c4_i32 = arith.constant 4 : i32
    %0 = arith.subi %arg1, %c4_i32 : i32
    %c0_i32 = arith.constant 0 : i32
    %1 = arith.maxsi %0, %c0_i32 : i32
    %c0_i32_0 = arith.constant 0 : i32
    %c0_i32_1 = arith.constant 0 : i32
    %c0_i32_2 = arith.constant 0 : i32
    return %arg0, %1, %c0_i32_0, %c0_i32_1 : i32, i32, i32, i32
  }
}

</mosaic_0001>

<bundles_post_ra>
// kernel: forward.1
= control target key start
LH: loop header
LB: loop body
LE: loop exit
PB: predicated region body
PF: predicated region fallthrough
CT: control target
= control target key end

     0   :  { %s3297_s22 = smov 0   ;;  %s3299_s23 = smov 0   ;;  %s4456_s0 = inlined_call_operand.vmem [shape: f32[1,4,8,128], index: 0, kind: input, shape index: {}]   ;;  %s4457_s1 = inlined_call_operand.vmem [shape: bf16[2,128,128], index: 1, kind: input, shape index: {}]   ;;  %s4458_s2 = inlined_call_operand.vmem [shape: bf16[32,120], index: 2, kind: input, shape index: {}]   ;;  %s4459_s3 = inlined_call_operand.vmem [shape: f32[32,1], index: 3, kind: input, shape index: {}, may-alias: {3,7,11,15}]   ;;  %s4460_s4 = inlined_call_operand.vmem [shape: bf16[16,120], index: 4, kind: input, shape index: {}]   ;;  %s4461_s5 = inlined_call_operand.vmem [shape: f32[16,1], index: 5, kind: input, shape index: {}, may-alias: {5,9,13,17}]   ;;  %s4462_s6 = inlined_call_operand.vmem [shape: bf16[32,160], index: 6, kind: input, shape index: {}]   ;;  %s4463_s7 = inlined_call_operand.vmem [shape: f32[32,1], index: 7, kind: input, shape index: {}, may-alias: {3,7,11,15}]   ;;  %s4464_s8 = inlined_call_operand.vmem [shape: bf16[16,160], index: 8, kind: input, shape index: {}]   ;;  %s4465_s9 = inlined_call_operand.vmem [shape: f32[16,1], index: 9, kind: input, shape index: {}, may-alias: {5,9,13,17}]   ;;  %s4466_s10 = inlined_call_operand.vmem [shape: bf16[32,120], index: 10, kind: input, shape index: {}]   ;;  %s4467_s11 = inlined_call_operand.vmem [shape: f32[32,1], index: 11, kind: input, shape index: {}, may-alias: {3,7,11,15}]   ;;  %s4468_s12 = inlined_call_operand.vmem [shape: bf16[16,120], index: 12, kind: input, shape index: {}]   ;;  %s4469_s13 = inlined_call_operand.vmem [shape: f32[16,1], index: 13, kind: input, shape index: {}, may-alias: {5,9,13,17}]   ;;  %s4470_s14 = inlined_call_operand.vmem [shape: bf16[32,160], index: 14, kind: input, shape index: {}]   ;;  %s4471_s15 = inlined_call_operand.vmem [shape: f32[32,1], index: 15, kind: input, shape index: {}, may-alias: {3,7,11,15}]   ;;  %s4472_s16 = inlined_call_operand.vmem [shape: bf16[16,160], index: 16, kind: input, shape index: {}]   ;;  %s4473_s17 = inlined_call_operand.vmem [shape: f32[16,1], index: 17, kind: input, shape index: {}, may-alias: {5,9,13,17}]   ;;  %s4474_s18 = inlined_call_operand.vmem [shape: bf16[8,16], index: 18, kind: input, shape index: {}]   ;;  %s4475_s19 = inlined_call_operand.vmem [shape: f32[8,1], index: 19, kind: input, shape index: {}]   ;;  %s4476_s20 = inlined_call_operand.vmem [shape: f32[1,3,8,128], index: 20, kind: output, shape index: {}]  }
   0x1   :  { %4483 = sst [smem:[#allocation20_spill]] %s4456_s0 }
   0x2   :  { %4484 = sst [smem:[#allocation21_spill]] %s4457_s1  ;;  %s3295_s1 = smov 0  }
   0x3   :  { %4485 = sst [smem:[#allocation22_spill]] %s4458_s2 }
   0x4   :  { %4486 = sst [smem:[#allocation23_spill]] %s4459_s3 }
   0x5   :  { %4487 = sst [smem:[#allocation24_spill]] %s4460_s4 }
   0x6   :  { %4488 = sst [smem:[#allocation25_spill]] %s4472_s16 }
   0x7   :  { %4489 = sst [smem:[#allocation26_spill]] %s4474_s18 }
   0x8 LB: > { %4490 = sst [smem:[#allocation4_spill]] %s3180_s22  ;;  %s39_s24 = sadd.s32 1, %s3180_s22  ;;  %s3184_s23 = sphi %s3299_s23, %s30_s23   ;;  %s3180_s22 = sphi %s3297_s22, %s4528_s22   ;;  %s3176_s1 = sphi %s3295_s1, %s4527_s1  }
   0x9   : > { %4491 = sst [smem:[#allocation5_spill]] %s3184_s23  ;;  %p2733_p0 = scmp.ge.s32.totalorder %s3184_s23, 1 }
   0xa   : > { %p40_p1 = scmp.ge.s32.totalorder %s39_s24, 7  ;;  %p595_p2 = scmp.lt.s32.totalorder %s3184_s23, 8 }
   0xc   : > { %s4530_s24 = smov (%p40_p1, %s39_s24), 0  ;;  %p596_p3 = pnand %p2733_p0, %p595_p2 }
   0xd   : > { %4492 = sst [smem:[#allocation6_spill]] %s4530_s24 }
   0xe   : > { %599 = sbr.rel (%p596_p3) target bundleno = 4116 (0x1014), region = 100 }
  0x13   : > { %p664_p4 = scmp.lt.s32.totalorder %s3176_s1, 3  ;;  %s2738_s2 = sadd.s32 4294967292, %s3176_s1 }
  0x14   : > { %s4493_s26 = sld [smem:[#allocation21_spill]]  ;;  %p677_p5 = scmp.gt.s32.totalorder %s2738_s2, 0 }
  0x15   : > { %p2739_p6 = scmp.lt.s32.totalorder %s2738_s2, 2  ;;  %s4500_s29 = sld [smem:[#allocation20_spill]] }
  0x16   : > { %s665_s21 = scalar_select %p664_p4, %s3176_s1, 3 }
  0x17   : > { %s4532_s2 = smov (!%p677_p5, %s2738_s2), 0  ;;  %p2761_p7 = scmp.ne.s32.totalorder %s3176_s1, 0 }
  0x18   : > { %s4534_s21 = smov (!%p664_p4, %s665_s21), 3  ;;  %s4536_s2 = smov (!%p2739_p6, %s4532_s2), 2 }
  0x19   : > { %s2737_s24 = sshll.u32 %s4534_s21, 3  ;;  %s2744_s18 = sshll.u32 %s4536_s2, 3 }
  0x1a   : > { %v3320_v0 = vld [vmem:[%s4493_s26] sm:$0xf]  ;;  %v3330_v2 = vld [vmem:[%s4493_s26] sm:$0xf0]  ;;  %v3343_v4 = vld [vmem:[%s4493_s26 + $0x8] sm:$0xf]  ;;  %s3410_s28 = scalar_lea.vmem %s4476_s20, %s2744_s18 }
  0x1b   : > { %4494 = vst [vmem:[#allocation7_spill] sm:$0xff] %v3320_v0  ;;  %v3325_v1 = vld [vmem:[%s4493_s26] sm:$0xf]  ;;  %v3335_v3 = vld [vmem:[%s4493_s26] sm:$0xf0]  ;;  %s3395_s23 = scalar_lea.vmem %s4500_s29, %s2737_s24 }
  0x1c   : > { %4495 = vst [vmem:[#allocation8_spill] sm:$0xff] %v3330_v2  ;;  %v3348_v5 = vld [vmem:[%s4493_s26 + $0x8] sm:$0xf]  ;;  %v3353_v6 = vld [vmem:[%s4493_s26 + $0x8] sm:$0xf0] }
  0x1d   : > { %4496 = vst [vmem:[#allocation9_spill] sm:$0xff] %v3343_v4  ;;  %v3358_v7 = vld [vmem:[%s4493_s26 + $0x8] sm:$0xf0]  ;;  %v3365_v8 = vld [vmem:[%s4493_s26 + $0x10] sm:$0xf] }
  0x1e   : > { %4497 = vst [vmem:[#allocation10_spill] sm:$0xff] %v3353_v6  ;;  %v3370_v9 = vld [vmem:[%s4493_s26 + $0x10] sm:$0xf]  ;;  %v3375_v10 = vld [vmem:[%s4493_s26 + $0x10] sm:$0xf0] }
  0x1f   : > { %4498 = vst [vmem:[#allocation11_spill] sm:$0xff] %v3365_v8  ;;  %v3380_v11 = vld [vmem:[%s4493_s26 + $0x10] sm:$0xf0]  ;;  %v3385_v12 = vld [vmem:[%s4493_s26 + $0x18] sm:$0xf] }
  0x20   : > { %4499 = vst [vmem:[#allocation12_spill] sm:$0xff] %v3375_v10  ;;  %v3390_v13 = vld [vmem:[%s4493_s26 + $0x18] sm:$0xf]  ;;  %v3400_v14 = vld [vmem:[%s4493_s26 + $0x18] sm:$0xf0] }
  0x21   : > { %v3405_v15 = vld [vmem:[%s4493_s26 + $0x18] sm:$0xf0]  ;;  %v3415_v16 = vld [vmem:[%s4493_s26 + $0x20] sm:$0xf]  ;;  %v3425_v18 = vld [vmem:[%s4493_s26 + $0x20] sm:$0xf0] }
  0x22   : > { %v3420_v17 = vld [vmem:[%s4493_s26 + $0x20] sm:$0xf]  ;;  %v3430_v19 = vld [vmem:[%s4493_s26 + $0x20] sm:$0xf0]  ;;  %v3435_v20 = vld [vmem:[%s4493_s26 + $0x28] sm:$0xf] }
  0x23   : > { %v3440_v21 = vld [vmem:[%s4493_s26 + $0x28] sm:$0xf]  ;;  %v3445_v22 = vld [vmem:[%s4493_s26 + $0x28] sm:$0xf0]  ;;  %v3455_v24 = vld [vmem:[%s4493_s26 + $0x30] sm:$0xf] }
  0x24   : > { %v3450_v23 = vld [vmem:[%s4493_s26 + $0x28] sm:$0xf0]  ;;  %v2790_v25 = vld [vmem:[%s4493_s26 + $0x30] sm:$0xf]  ;;  %v3463_v26 = vld [vmem:[%s4493_s26 + $0x30] sm:$0xf0] }
  0x25   : > { %v3011_v27 = vld [vmem:[%s4493_s26 + $0x30] sm:$0xf0]  ;;  %v3471_v28 = vld [vmem:[%s4493_s26 + $0x38] sm:$0xf]  ;;  %v3479_v30 = vld [vmem:[%s4493_s26 + $0x38] sm:$0xf0] }
  0x26   : > { %v2794_v29 = vld [vmem:[%s4493_s26 + $0x38] sm:$0xf]  ;;  %v3013_v31 = vld [vmem:[%s4493_s26 + $0x38] sm:$0xf0]  ;;  %v3487_v32 = vld [vmem:[%s4493_s26 + $0x40] sm:$0xf] }
  0x27   : > { %4501 = vst [vmem:[#allocation13_spill] sm:$0xff] %v3487_v32  ;;  %v3492_v33 = vld [vmem:[%s4493_s26 + $0x40] sm:$0xf]  ;;  %v3497_v34 = vld [vmem:[%s4493_s26 + $0x40] sm:$0xf0] }
  0x28   : > { %4502 = vst [vmem:[#allocation14_spill] sm:$0xff] %v3497_v34  ;;  %v3502_v35 = vld [vmem:[%s4493_s26 + $0x40] sm:$0xf0]  ;;  %v3507_v36 = vld [vmem:[%s4493_s26 + $0x48] sm:$0xf] }
  0x29   : > { %4503 = vst [vmem:[#allocation15_spill] sm:$0xff] %v3507_v36  ;;  %v3512_v37 = vld [vmem:[%s4493_s26 + $0x48] sm:$0xf]  ;;  %v3517_v38 = vld [vmem:[%s4493_s26 + $0x48] sm:$0xf0] }
  0x2a   : > { %4504 = vst [vmem:[#allocation16_spill] sm:$0xff] %v3517_v38  ;;  %v3522_v39 = vld [vmem:[%s4493_s26 + $0x48] sm:$0xf0]  ;;  %v3527_v40 = vld [vmem:[%s4493_s26 + $0x50] sm:$0xf] }
  0x2b   : > { %4505 = vst [vmem:[#allocation17_spill] sm:$0xff] %v3527_v40  ;;  %v3532_v41 = vld [vmem:[%s4493_s26 + $0x50] sm:$0xf]  ;;  %v3537_v42 = vld [vmem:[%s4493_s26 + $0x50] sm:$0xf0] }
  0x2c   : > { %4506 = vst [vmem:[#allocation18_spill] sm:$0xff] %v3537_v42  ;;  %v3542_v43 = vld [vmem:[%s4493_s26 + $0x50] sm:$0xf0]  ;;  %v3547_v44 = vld [vmem:[%s4493_s26 + $0x58] sm:$0xf] }
  0x2d   : > { %v2810_v45 = vld [vmem:[%s4493_s26 + $0x58] sm:$0xf]  ;;  %v3555_v46 = vld [vmem:[%s4493_s26 + $0x58] sm:$0xf0]  ;;  %v3563_v48 = vld [vmem:[%s4493_s26 + $0x60] sm:$0xf] }
  0x2e   : > { %4507 = vst [vmem:[#allocation19_spill] sm:$0xff] %v3555_v46  ;;  %v3021_v47 = vld [vmem:[%s4493_s26 + $0x58] sm:$0xf0]  ;;  %v2814_v49 = vld [vmem:[%s4493_s26 + $0x60] sm:$0xf] }
  0x2f   : > { %v3571_v50 = vld [vmem:[%s4493_s26 + $0x60] sm:$0xf0]  ;;  %v3579_v52 = vld [vmem:[%s4493_s26 + $0x68] sm:$0xf]  ;;  %v3587_v54 = vld [vmem:[%s4493_s26 + $0x68] sm:$0xf0] }
  0x30   : > { %v3023_v51 = vld [vmem:[%s4493_s26 + $0x60] sm:$0xf0]  ;;  %v2818_v53 = vld [vmem:[%s4493_s26 + $0x68] sm:$0xf]  ;;  %v3025_v55 = vld [vmem:[%s4493_s26 + $0x68] sm:$0xf0] }
  0x31   : > { %v3595_v56 = vld [vmem:[%s4493_s26 + $0x70] sm:$0xf]  ;;  %v3603_v58 = vld [vmem:[%s4493_s26 + $0x70] sm:$0xf0]  ;;  %v3611_v60 = vld [vmem:[%s4493_s26 + $0x78] sm:$0xf] }
  0x32   : > { %v2822_v57 = vld [vmem:[%s4493_s26 + $0x70] sm:$0xf]  ;;  %v3027_v59 = vld [vmem:[%s4493_s26 + $0x70] sm:$0xf0]  ;;  %v2826_v61 = vld [vmem:[%s4493_s26 + $0x78] sm:$0xf] }
  0x33   : > { %v3619_v62 = vld [vmem:[%s4493_s26 + $0x78] sm:$0xf0]  ;;  %727 = sbr.rel (%p2761_p7) target bundleno = 61 (0x3d), region = 104 }
  0x34   : > { %v3029_v63 = vld [vmem:[%s4493_s26 + $0x78] sm:$0xf0] }
  0x38   : > { %v3186_v34 = vmov 0.0  }
  0x39   : > { %728 = vst [vmem:[#allocation2 + $0x10] sm:$0xff] %v3186_v34 }
  0x3a   : > { %729 = vst [vmem:[#allocation2] sm:$0xff] %v3186_v34 }
  0x3b   : > { %730 = vst [vmem:[#allocation2 + $0x18] sm:$0xff] %v3186_v34 }
  0x3c   : > { %731 = vst [vmem:[#allocation2 + $0x8] sm:$0xff] %v3186_v34 }
  0x3d PF: > { %p2762_p8 = scmp.ne.s32.totalorder %s3176_s1, 4 }
  0x3f   : > { %735 = sbr.rel (%p2762_p8) target bundleno = 70 (0x46), region = 108 }
  0x44   : > { %v3187_v32 = vmov 0.0  }
  0x45   : > { %736 = vst [vmem:[#allocation3] sm:$0xff] %v3187_v32 }
  0x46 PF: > { %p2763_p9 = scmp.ge.s32.totalorder %s3176_s1, 4 }
  0x47   : > { %s4508_s30 = sld [smem:[#allocation23_spill]] (!%p2763_p9) }
  0x48   : > { %740 = sbr.rel (%p2763_p9) target bundleno = 2021 (0x7e5), region = 112  ;;  %s4509_s24 = sld [smem:[#allocation22_spill]] (!%p2763_p9) }
  0x49   : > { %s4510_s25 = sld [smem:[#allocation24_spill]] (!%p2763_p9) }
  0x4d   : > { %v3627_v2 = vor.u32 %v3013_v31, %v2794_v29  ;;  %v3629_v0 = vor.u32 %v3029_v63, %v2826_v61  ;;  %v3633_v38 = vor.u32 %v3011_v27, %v2790_v25  ;;  %v3635_v34 = vor.u32 %v3027_v59, %v2822_v57 }
  0x4e   : > { %v3643_v29 = vor.u32 %v3450_v23, %v3440_v21  ;;  %v3645_v31 = vor.u32 %v3025_v55, %v2818_v53  ;;  %v3653_v25 = vor.u32 %v3430_v19, %v3420_v17  ;;  %v3655_v27 = vor.u32 %v3023_v51, %v2814_v49 }
  0x4f   : > { %806 = vmatpush.bf16.msra.mxu0 %v3627_v2  ;;  %898 = vmatpush.bf16.msra.mxu2 %v3629_v0  ;;  %v3663_v21 = vor.u32 %v3405_v15, %v3390_v13  ;;  %v3665_v23 = vor.u32 %v3021_v47, %v2810_v45  ;;  %v3673_v17 = vor.u32 %v3380_v11, %v3370_v9  ;;  %v3706_v15 = vld [vmem:[#allocation2 + $0x10] sm:$0xff]  ;;  %vm986_vm0 = vcmask 1043456  }
  0x50   : > { %826 = vmatpush.bf16.msra.mxu1 %v3627_v2  ;;  %918 = vmatpush.bf16.msra.mxu3 %v3629_v0  ;;  %v3677_v19 = vor.u32 %v3542_v43, %v3532_v41  ;;  %v3685_v13 = vor.u32 %v3358_v7, %v3348_v5  ;;  %v3689_v9 = vor.u32 %v3522_v39, %v3512_v37  ;;  %v3704_v7 = vld [vmem:[%s3395_s23] sm:$0xff]  ;;  %vm979_vm1 = vcmask 982016  }
  0x51   : > { %v3697_v11 = vor.u32 %v3335_v3, %v3325_v1  ;;  %v3701_v5 = vor.u32 %v3502_v35, %v3492_v33  ;;  %v3712_v32 = vpack.c.bf16 %v3706_v15, %v3704_v7  ;;  %v3728_v1 = vld [vmem:[#allocation2] sm:$0xff] }
  0x52   : > { %v757_v3 = vpack.c.bf16 %v3728_v1, %v3728_v1 }
  0x53   : > { %807 = vmatpush.bf16.msra.mxu0 %v3633_v38  ;;  %899 = vmatpush.bf16.msra.mxu2 %v3635_v34 }
  0x54   : > { %827 = vmatpush.bf16.msra.mxu1 %v3633_v38  ;;  %919 = vmatpush.bf16.msra.mxu3 %v3635_v34 }
  0x57   : > { %808 = vmatpush.bf16.msra.mxu0 %v3643_v29  ;;  %900 = vmatpush.bf16.msra.mxu2 %v3645_v31 }
  0x58   : > { %828 = vmatpush.bf16.msra.mxu1 %v3643_v29  ;;  %920 = vmatpush.bf16.msra.mxu3 %v3645_v31 }
  0x5b   : > { %809 = vmatpush.bf16.msra.mxu0 %v3653_v25  ;;  %901 = vmatpush.bf16.msra.mxu2 %v3655_v27 }
  0x5c   : > { %829 = vmatpush.bf16.msra.mxu1 %v3653_v25  ;;  %921 = vmatpush.bf16.msra.mxu3 %v3655_v27 }
  0x5f   : > { %810 = vmatpush.bf16.msra.mxu0 %v3663_v21  ;;  %902 = vmatpush.bf16.msra.mxu2 %v3665_v23 }
  0x60   : > { %830 = vmatpush.bf16.msra.mxu1 %v3663_v21  ;;  %922 = vmatpush.bf16.msra.mxu3 %v3665_v23 }
  0x63   : > { %811 = vmatpush.bf16.msra.mxu0 %v3673_v17  ;;  %903 = vmatpush.bf16.msra.mxu2 %v3677_v19 }
  0x64   : > { %831 = vmatpush.bf16.msra.mxu1 %v3673_v17  ;;  %923 = vmatpush.bf16.msra.mxu3 %v3677_v19 }
  0x67   : > { %812 = vmatpush.bf16.msra.mxu0 %v3685_v13  ;;  %904 = vmatpush.bf16.msra.mxu2 %v3689_v9 }
  0x68   : > { %832 = vmatpush.bf16.msra.mxu1 %v3685_v13  ;;  %924 = vmatpush.bf16.msra.mxu3 %v3689_v9 }
  0x6b   : > { %813 = vmatpush.bf16.msra.mxu0 %v3697_v11  ;;  %905 = vmatpush.bf16.msra.mxu2 %v3701_v5 }
  0x6c   : > { %833 = vmatpush.bf16.msra.mxu1 %v3697_v11  ;;  %925 = vmatpush.bf16.msra.mxu3 %v3701_v5 }
  0x6e   : > { %814 = vmatmul.bf16.vlgmr.msra.gmra.mxu0 %v3712_v32  ;;  %906 = vmatmul.bf16.vlgmr.msra.gmra.mxu2 %v3712_v32 }
  0x6f   : > { %1109 = vmatpush.bf16.msrb.mxu2 %v3627_v2 }
  0x70   : > { %1089 = vmatpush.bf16.msrb.mxu1 %v3627_v2  ;;  %1133 = vmatpush.bf16.msrb.mxu3 %v3629_v0 }
  0x73   : > { %1110 = vmatpush.bf16.msrb.mxu2 %v3633_v38 }
  0x74   : > { %1090 = vmatpush.bf16.msrb.mxu1 %v3633_v38  ;;  %1134 = vmatpush.bf16.msrb.mxu3 %v3635_v34 }
  0x77   : > { %1111 = vmatpush.bf16.msrb.mxu2 %v3643_v29 }
  0x78   : > { %1091 = vmatpush.bf16.msrb.mxu1 %v3643_v29  ;;  %1135 = vmatpush.bf16.msrb.mxu3 %v3645_v31 }
  0x7b   : > { %1112 = vmatpush.bf16.msrb.mxu2 %v3653_v25 }
  0x7c   : > { %1092 = vmatpush.bf16.msrb.mxu1 %v3653_v25  ;;  %1136 = vmatpush.bf16.msrb.mxu3 %v3655_v27 }
  0x7e   : > { %911 = vmatmul.bf16.gmra.mxu2 %v757_v3  ;;  %819 = vmatmul.bf16.gmra.mxu0 %v757_v3 }
  0x7f   : > { %1113 = vmatpush.bf16.msrb.mxu2 %v3663_v21 }
  0x80   : > { %1093 = vmatpush.bf16.msrb.mxu1 %v3663_v21  ;;  %1137 = vmatpush.bf16.msrb.mxu3 %v3665_v23 }
  0x83   : > { %1114 = vmatpush.bf16.msrb.mxu2 %v3673_v17 }
  0x84   : > { %1094 = vmatpush.bf16.msrb.mxu1 %v3673_v17  ;;  %1138 = vmatpush.bf16.msrb.mxu3 %v3677_v19 }
  0x87   : > { %1115 = vmatpush.bf16.msrb.mxu2 %v3685_v13 }
  0x88   : > { %1095 = vmatpush.bf16.msrb.mxu1 %v3685_v13  ;;  %1139 = vmatpush.bf16.msrb.mxu3 %v3689_v9 }
  0x8b   : > { %1116 = vmatpush.bf16.msrb.mxu2 %v3697_v11 }
  0x8c   : > { %1096 = vmatpush.bf16.msrb.mxu1 %v3697_v11  ;;  %1140 = vmatpush.bf16.msrb.mxu3 %v3701_v5 }
  0x8f   : > { %1248 = vmatpush.bf16.msra.mxu2 %v3627_v2 }
  0x93   : > { %1249 = vmatpush.bf16.msra.mxu2 %v3633_v38 }
  0x97   : > { %1250 = vmatpush.bf16.msra.mxu2 %v3643_v29 }
  0x9b   : > { %1251 = vmatpush.bf16.msra.mxu2 %v3653_v25 }
  0x9f   : > { %1252 = vmatpush.bf16.msra.mxu2 %v3663_v21 }
  0xa3   : > { %1253 = vmatpush.bf16.msra.mxu2 %v3673_v17 }
  0xa7   : > { %1254 = vmatpush.bf16.msra.mxu2 %v3685_v13 }
  0xab   : > { %1255 = vmatpush.bf16.msra.mxu2 %v3697_v11 }
  0xeb   : > { %v3756_v33 = vpop.f32.mrf.mxu0 }
  0xf1   : > { %v3758_v35 = vpop.f32.mrf.mxu2 }
  0xf3   : > { %v3760_v37 = vpop.f32.mrf.mxu0 }
  0xf4   : > { %v824_v39 = vpack.c.bf16 %v3760_v37, %v3756_v33 }
  0xf6   : > { %834 = vmatmul.bf16.vlgmr.msra.gmra.mxu1 %v824_v39 }
  0xf9   : > { %v909_v41 = vpop.f32.mrf.mxu2 }
  0xfa   : > { %v916_v43 = vpack.c.bf16 %v909_v41, %v3758_v35 }
  0xfb   : > { %v820_v45 = vpop.f32.mrf.mxu0 }
  0xfc   : > { %926 = vmatmul.bf16.vlgmr.msra.gmra.mxu3 %v916_v43  ;;  %v943_v47 = vpack.c.bf16 %v820_v45, %v3760_v37  ;;  %v825_v51 = vpack.c.bf16 %v820_v45, %v820_v45  ;;  %v3188_v43 = vmov 0  }
  0xfd   : > { %1269 = vmatpush.bf16.msra.mxu3 %v3627_v2  ;;  %3076 = vset.pattern.permute.xlu0 %v3188_v43 }
  0xfe   : > { %3077 = vset.pattern.permute.xlu1 %v3188_v43  ;;  %3078 = vset.pattern.permute.xlu2 %v3188_v43 }
 0x101   : > { %v912_v49 = vpop.f32.mrf.mxu2  ;;  %1270 = vmatpush.bf16.msra.mxu3 %v3633_v38 }
 0x102   : > { %v946_v53 = vpack.c.bf16 %v912_v49, %v909_v41  ;;  %v917_v57 = vpack.c.bf16 %v912_v49, %v912_v49  ;;  %v748_v41 = vld [vmem:[%s4508_s30] sm:$0xff] }
 0x103   : > { %v822_v55 = vpop.f32.mrf.mxu0  ;;  %951 = vperm.xlu0 %3076, %v748_v41   ;;  %v1238_v41 = vld [vmem:[%s4463_s7] sm:$0xff] }
 0x105   : > { %1271 = vmatpush.bf16.msra.mxu3 %v3643_v29 }
 0x106   : > { %839 = vmatmul.bf16.gmra.mxu1 %v825_v51  ;;  %v749_v51 = vld [vmem:[%s4508_s30 + $0x8] sm:$0xff] }
 0x109   : > { %v914_v59 = vpop.f32.mrf.mxu2  ;;  %1272 = vmatpush.bf16.msra.mxu3 %v3653_v25 }
 0x10b   : > { %956 = vperm.xlu0 %3076, %v749_v51  }
 0x10c   : > { %931 = vmatmul.bf16.gmra.mxu3 %v917_v57 }
 0x10d   : > { %1273 = vmatpush.bf16.msra.mxu3 %v3663_v21 }
 0x111   : > { %1274 = vmatpush.bf16.msra.mxu3 %v3673_v17 }
 0x113   : > { %1350 = vperm.xlu0 %3076, %v1238_v41  }
 0x115   : > { %1275 = vmatpush.bf16.msra.mxu3 %v3685_v13 }
 0x119   : > { %1276 = vmatpush.bf16.msra.mxu3 %v3697_v11 }
 0x173   : > { %v835_v61 = vpop.f32.mrf.mxu1 }
 0x174   : > { %v844_v51 = vmul.f32 2.0, %v835_v61  ;;  %v3030_v61 = vld [vmem:[%s4509_s24] sm:$0xff] }
 0x17b   : > { %v837_v63 = vpop.f32.mrf.mxu1 }
 0x17f   : > { %v927_v3 = vpop.f32.mrf.mxu3 }
 0x180   : > { %v936_v36 = vmul.f32 2.0, %v927_v3  ;;  %v845_v3 = vmul.f32 2.0, %v837_v63 }
 0x182   : > { %v939_v43 = vsub.f32 %v936_v36, %v3704_v7 }
 0x183   : > { %v840_v37 = vpop.f32.mrf.mxu1 }
 0x187   : > { %v929_v39 = vpop.f32.mrf.mxu3 }
 0x188   : > { %v937_v57 = vmul.f32 2.0, %v929_v39 }
 0x18a   : > { %v940_v4 = vsub.f32 %v937_v57, %v3706_v15  ;;  %v847_v57 = vsub.f32 %v844_v51, %v3704_v7  ;;  %v750_v51 = vld [vmem:[%s4508_s30 + $0x10] sm:$0xff] }
 0x18b   : > { %v842_v45 = vpop.f32.mrf.mxu1  ;;  %961 = vperm.xlu1 %3077, %v750_v51  }
 0x18c   : > { %v947_v39 = vpack.c.bf16 %v940_v4, %v939_v43 }
 0x18f   : > { %v932_v49 = vpop.f32.mrf.mxu3 }
 0x190   : > { %v938_v55 = vmul.f32 2.0, %v932_v49  ;;  %v846_v49 = vmul.f32 2.0, %v840_v37 }
 0x192   : > { %v941_v59 = vsub.f32 %v938_v55, %v3728_v1  ;;  %v849_v55 = vsub.f32 %v846_v49, %v3728_v1 }
 0x194   : > { %v948_v6 = vpack.c.bf16 %v941_v59, %v941_v59  ;;  %v848_v59 = vsub.f32 %v845_v3, %v3706_v15  ;;  %v945_v36 = vpack.c.bf16 %v3758_v35, %v849_v55 }
 0x196   : > { %v988_v42 = vsel %vm986_vm0, %v948_v6, 0  ;;  %v1241_v6 = vld [vmem:[%s4463_s7 + $0x18] sm:$0xff]  ;;  %v944_v4 = vpack.c.bf16 %v848_v59, %v847_v57 }
 0x197   : > { %v934_v45 = vpop.f32.mrf.mxu3  ;;  %990 = vmatpush.bf16.msrb.mxu0 %v988_v42  ;;  %1365 = vperm.xlu0 %3076, %v1241_v6   ;;  %v942_v42 = vpack.c.bf16 %v3756_v33, %v3728_v1 }
 0x19b   : > { %991 = vmatpush.bf16.msrb.mxu0 %v947_v39  ;;  %v3031_v39 = vld [vmem:[%s4509_s24 + $0x8] sm:$0xff] }
 0x19f   : > { %992 = vmatpush.bf16.msrb.mxu0 %v946_v53 }
 0x1a3   : > { %993 = vmatpush.bf16.msrb.mxu0 %v945_v36 }
 0x1a7   : > { %994 = vmatpush.bf16.msrb.mxu0 %v944_v4 }
 0x1ab   : > { %995 = vmatpush.bf16.msrb.mxu0 %v943_v47 }
 0x1af   : > { %996 = vmatpush.bf16.msrb.mxu0 %v942_v42  ;;  %v751_v42 = vld [vmem:[%s4508_s30 + $0x18] sm:$0xff] }
 0x1b0   : > { %966 = vperm.xlu1 %3077, %v751_v42  }
 0x1b3   : > { %997 = vmatpush.bf16.msrb.mxu0 %v3712_v32  ;;  %v952_v32 = vpop.permute.xlu0 %951 }
 0x1b6   : > { %2836 = vmatmul.msk.bf16.vlgmr.msrb.gmra.mxu0 %vm979_vm1, %v3030_v61 }
 0x1b7   : > { %1153 = vmatpush.bf16.msra.mxu0 %v3629_v0 }
 0x1bb   : > { %1154 = vmatpush.bf16.msra.mxu0 %v3635_v34  ;;  %v957_v53 = vpop.permute.xlu0 %956 }
 0x1bf   : > { %1155 = vmatpush.bf16.msra.mxu0 %v3645_v31 }
 0x1c3   : > { %1156 = vmatpush.bf16.msra.mxu0 %v3655_v27 }
 0x1c6   : > { %2837 = vmatmul.msk.bf16.gmra.mxu0 %vm979_vm1, %v3031_v39 }
 0x1c7   : > { %1157 = vmatpush.bf16.msra.mxu0 %v3665_v23 }
 0x1cb   : > { %1158 = vmatpush.bf16.msra.mxu0 %v3677_v19 }
 0x1cf   : > { %1159 = vmatpush.bf16.msra.mxu0 %v3689_v9 }
 0x1d3   : > { %1160 = vmatpush.bf16.msra.mxu0 %v3701_v5 }
 0x1d7   : > { %1296 = vmatpush.bf16.msrb.mxu0 %v3629_v0 }
 0x1db   : > { %1297 = vmatpush.bf16.msrb.mxu0 %v3635_v34 }
 0x1df   : > { %1298 = vmatpush.bf16.msrb.mxu0 %v3645_v31 }
 0x1e3   : > { %1299 = vmatpush.bf16.msrb.mxu0 %v3655_v27 }
 0x1e7   : > { %1300 = vmatpush.bf16.msrb.mxu0 %v3665_v23 }
 0x1eb   : > { %1301 = vmatpush.bf16.msrb.mxu0 %v3677_v19 }
 0x1ef   : > { %1302 = vmatpush.bf16.msrb.mxu0 %v3689_v9 }
 0x1f3   : > { %1303 = vmatpush.bf16.msrb.mxu0 %v3701_v5 }
 0x233   : > { %v999_v33 = vpop.f32.mrf.mxu0 }
 0x234   : > { %v1000_v35 = vadd.f32 %v999_v33, %v952_v32 }
 0x236   : > { %v2838_v47 = vmul.f32 -1.442695, %v1000_v35 }
 0x238   : > { %3079 = vpow2.f32 %v2838_v47 }
 0x23b   : > { %v1001_v63 = vpop.f32.mrf.mxu0 }
 0x23c   : > { %v1002_v37 = vadd.f32 %v1001_v63, %v957_v53 }
 0x23e   : > { %v3080_v41 = vpop.eup %3079  ;;  %v2839_v43 = vmul.f32 -1.442695, %v1002_v37 }
 0x23f   : > { %v1015_v45 = vadd.f32 1.0, %v3080_v41 }
 0x240   : > { %3081 = vpow2.f32 %v2839_v43 }
 0x241   : > { %3083 = vrcp.f32 %v1015_v45  ;;  %v1028_v59 = vand.u32 2147483648, %v1015_v45  ;;  %v1026_v4 = vand.u32 2147483647, %v1015_v45  ;;  %vm1022_vm3 = vweird.f32 %v1015_v45 }
 0x243   : > { %v1029_v33 = vor.u32 1.1754944e-38, %v1028_v59  ;;  %vm1027_vm5 = vcmp.eq.f32.partialorder %v1026_v4, 8.507059e+37 }
 0x246   : > { %v3082_v49 = vpop.eup %3081 }
 0x247   : > { %v3084_v3 = vpop.eup %3083  ;;  %v1016_v55 = vadd.f32 1.0, %v3082_v49 }
 0x248   : > { %v1018_v6 = vmul.f32 %v3084_v3, %v1015_v45  ;;  %vm1023_vm2 = vweird.f32 %v3084_v3 }
 0x249   : > { %3085 = vrcp.f32 %v1016_v55  ;;  %vm1024_vm4 = vmor %vm1022_vm3, %vm1023_vm2  ;;  %v1043_v49 = vand.u32 2147483648, %v1016_v55  ;;  %vm1037_vm7 = vweird.f32 %v1016_v55  ;;  %v1041_v39 = vand.u32 2147483647, %v1016_v55 }
 0x24a   : > { %v1019_v57 = vsub.f32 1.0, %v1018_v6  ;;  %vm1386_vm2 = vcmask 261120  }
 0x24b   : > { %vm1042_vm9 = vcmp.eq.f32.partialorder %v1041_v39, 8.507059e+37  ;;  %v3856_v39 = vpop.f32.mrf.mxu0 }
 0x24c   : > { %v1020_v36 = vmul.f32 %v3084_v3, %v1019_v57 }
 0x24e   : > { %v1021_v61 = vadd.f32 %v3084_v3, %v1020_v36 }
 0x24f   : > { %v3086_v32 = vpop.eup %3085 }
 0x250   : > { %v1033_v35 = vmul.f32 %v3086_v32, %v1016_v55  ;;  %v1025_v47 = vsel %vm1024_vm4, %v3084_v3, %v1021_v61  ;;  %vm1038_vm6 = vweird.f32 %v3086_v32  ;;  %v1044_v3 = vor.u32 1.1754944e-38, %v1043_v49 }
 0x251   : > { %v1030_v53 = vsel %vm1027_vm5, %v1029_v33, %v1025_v47  ;;  %vm1039_vm8 = vmor %vm1037_vm7, %vm1038_vm6 }
 0x252   : > { %v1034_v63 = vsub.f32 1.0, %v1033_v35  ;;  %v3828_v37 = vmul.f32 %v1030_v53, %v3706_v15 }
 0x254   : > { %v1035_v41 = vmul.f32 %v3086_v32, %v1034_v63  ;;  %v3832_v43 = vpack.c.bf16 %v3828_v37, %v3704_v7 }
 0x256   : > { %1097 = vmatmul.bf16.vlgmr.msrb.gmra.mxu1 %v3832_v43  ;;  %1141 = vmatmul.bf16.vlgmr.msrb.gmra.mxu3 %v3832_v43  ;;  %v1036_v45 = vadd.f32 %v3086_v32, %v1035_v41 }
 0x258   : > { %v1040_v51 = vsel %vm1039_vm8, %v3086_v32, %v1036_v45 }
 0x259   : > { %v1045_v6 = vsel %vm1042_vm9, %v1044_v3, %v1040_v51  ;;  %v3858_v51 = vpop.f32.mrf.mxu0 }
 0x25a   : > { %v3837_v57 = vmul.f32 %v1045_v6, %v3728_v1 }
 0x25c   : > { %v1088_v59 = vpack.c.bf16 %v3837_v57, %v3837_v57 }
 0x266   : > { %1102 = vmatmul.bf16.gmra.mxu1 %v1088_v59  ;;  %1146 = vmatmul.bf16.gmra.mxu3 %v1088_v59  ;;  %v1239_v59 = vld [vmem:[%s4463_s7 + $0x8] sm:$0xff] }
 0x267   : > { %1355 = vperm.xlu1 %3077, %v1239_v59   ;;  %v754_v59 = vld [vmem:[%s4461_s5] sm:$0xff] }
 0x268   : > { %1186 = vperm.xlu2 %3078, %v754_v59  }
 0x2c2   : > { %v1187_v59 = vpop.permute.xlu2 %1186 }
 0x2d3   : > { %v3841_v36 = vpop.f32.mrf.mxu1 }
 0x2d9   : > { %v1142_v4 = vpop.f32.mrf.mxu3 }
 0x2db   : > { %v3843_v42 = vpop.f32.mrf.mxu1 }
 0x2dc   : > { %v1107_v55 = vpack.c.bf16 %v3843_v42, %v3841_v36 }
 0x2de   : > { %1117 = vmatmul.bf16.vlgmr.msrb.gmra.mxu2 %v1107_v55 }
 0x2e1   : > { %v1144_v61 = vpop.f32.mrf.mxu3 }
 0x2e2   : > { %v1151_v32 = vpack.c.bf16 %v1144_v61, %v1142_v4 }
 0x2e3   : > { %v1103_v33 = vpop.f32.mrf.mxu1 }
 0x2e4   : > { %v1178_v35 = vpack.c.bf16 %v1103_v33, %v3843_v42  ;;  %1161 = vmatmul.bf16.vlgmr.msra.gmra.mxu0 %v1151_v32  ;;  %v1108_v41 = vpack.c.bf16 %v1103_v33, %v1103_v33 }
 0x2e5   : > { %1510 = vmatpush.bf16.msra.mxu0 %v3627_v2 }
 0x2e9   : > { %v1147_v47 = vpop.f32.mrf.mxu3  ;;  %1511 = vmatpush.bf16.msra.mxu0 %v3633_v38 }
 0x2ea   : > { %v1181_v53 = vpack.c.bf16 %v1147_v47, %v1144_v61  ;;  %v1152_v49 = vpack.c.bf16 %v1147_v47, %v1147_v47  ;;  %v1244_v61 = vld [vmem:[%s4465_s9] sm:$0xff] }
 0x2eb   : > { %v1105_v63 = vpop.f32.mrf.mxu1  ;;  %1612 = vperm.xlu1 %3077, %v1244_v61  }
 0x2ed   : > { %1512 = vmatpush.bf16.msra.mxu0 %v3643_v29 }
 0x2ee   : > { %1122 = vmatmul.bf16.gmra.mxu2 %v1108_v41 }
 0x2f1   : > { %v1149_v45 = vpop.f32.mrf.mxu3  ;;  %1513 = vmatpush.bf16.msra.mxu0 %v3653_v25 }
 0x2f4   : > { %1166 = vmatmul.bf16.gmra.mxu0 %v1152_v49 }
 0x2f5   : > { %1514 = vmatpush.bf16.msra.mxu0 %v3663_v21 }
 0x2f9   : > { %1515 = vmatpush.bf16.msra.mxu0 %v3673_v17 }
 0x2fd   : > { %1516 = vmatpush.bf16.msra.mxu0 %v3685_v13 }
 0x301   : > { %1517 = vmatpush.bf16.msra.mxu0 %v3697_v11 }
 0x361   : > { %v1118_v3 = vpop.f32.mrf.mxu2  ;;  %v1162_v6 = vpop.f32.mrf.mxu0 }
 0x362   : > { %v1171_v45 = vmul.f32 2.0, %v1162_v6  ;;  %v755_v6 = vld [vmem:[%s4461_s5 + $0x8] sm:$0xff] }
 0x363   : > { %1191 = vperm.xlu2 %3078, %v755_v6  }
 0x364   : > { %v1174_v8 = vsub.f32 %v1171_v45, %v3704_v7 }
 0x369   : > { %v1120_v42 = vpop.f32.mrf.mxu2  ;;  %v1164_v55 = vpop.f32.mrf.mxu0 }
 0x36a   : > { %v1172_v63 = vmul.f32 2.0, %v1164_v55 }
 0x36c   : > { %v1175_v40 = vsub.f32 %v1172_v63, %v3828_v37 }
 0x36e   : > { %v1182_v55 = vpack.c.bf16 %v1175_v40, %v1174_v8  ;;  %v1240_v8 = vld [vmem:[%s4463_s7 + $0x10] sm:$0xff]  ;;  %v1245_v40 = vld [vmem:[%s4465_s9 + $0x8] sm:$0xff] }
 0x36f   : > { %1360 = vperm.xlu2 %3078, %v1240_v8  }
 0x371   : > { %v1123_v32 = vpop.f32.mrf.mxu2  ;;  %v1167_v33 = vpop.f32.mrf.mxu0 }
 0x372   : > { %v1173_v47 = vmul.f32 2.0, %v1167_v33  ;;  %v1129_v33 = vmul.f32 2.0, %v1123_v32 }
 0x374   : > { %v1176_v41 = vsub.f32 %v1173_v47, %v3837_v57  ;;  %v1128_v47 = vmul.f32 2.0, %v1120_v42  ;;  %v1132_v63 = vsub.f32 %v1129_v33, %v3837_v57 }
 0x376   : > { %v1183_v49 = vpack.c.bf16 %v1176_v41, %v1176_v41  ;;  %v1127_v41 = vmul.f32 2.0, %v1118_v3  ;;  %v1180_v45 = vpack.c.bf16 %v1142_v4, %v1132_v63 }
 0x377   : > { %1617 = vperm.xlu2 %3078, %v1245_v40  }
 0x378   : > { %v1203_v10 = vsel %vm986_vm0, %v1183_v49, 0  ;;  %v1131_v49 = vsub.f32 %v1128_v47, %v3828_v37  ;;  %v962_v37 = vpop.permute.xlu1 %961 }
 0x379   : > { %v1125_v46 = vpop.f32.mrf.mxu2  ;;  %v1169_v61 = vpop.f32.mrf.mxu0  ;;  %1205 = vmatpush.bf16.msra.mxu1 %v1203_v10 }
 0x37a   : > { %v1130_v46 = vsub.f32 %v1127_v41, %v3704_v7  ;;  %v3032_v7 = vld [vmem:[%s4510_s25] sm:$0xff] }
 0x37c   : > { %v1179_v10 = vpack.c.bf16 %v1131_v49, %v1130_v46 }
 0x37d   : > { %1206 = vmatpush.bf16.msra.mxu1 %v1182_v55 }
 0x381   : > { %1207 = vmatpush.bf16.msra.mxu1 %v1181_v53  ;;  %v1177_v53 = vpack.c.bf16 %v3841_v36, %v3837_v57  ;;  %v967_v36 = vpop.permute.xlu1 %966 }
 0x385   : > { %1208 = vmatpush.bf16.msra.mxu1 %v1180_v45 }
 0x389   : > { %1209 = vmatpush.bf16.msra.mxu1 %v1179_v10 }
 0x38d   : > { %1210 = vmatpush.bf16.msra.mxu1 %v1178_v35 }
 0x391   : > { %1211 = vmatpush.bf16.msra.mxu1 %v1177_v53 }
 0x395   : > { %1212 = vmatpush.bf16.msra.mxu1 %v3832_v43  ;;  %v1005_v43 = vadd.f32 %v3856_v39, %v962_v37 }
 0x397   : > { %v2840_v57 = vmul.f32 -1.442695, %v1005_v43 }
 0x398   : > { %2846 = vmatmul.msk.bf16.vlgmr.msra.gmra.mxu1 %vm979_vm1, %v3032_v7 }
 0x399   : > { %1317 = vmatpush.bf16.msrb.mxu1 %v3629_v0  ;;  %3087 = vpow2.f32 %v2840_v57 }
 0x39d   : > { %1318 = vmatpush.bf16.msrb.mxu1 %v3635_v34 }
 0x3a1   : > { %1319 = vmatpush.bf16.msrb.mxu1 %v3645_v31 }
 0x3a5   : > { %1320 = vmatpush.bf16.msrb.mxu1 %v3655_v27 }
 0x3a9   : > { %1321 = vmatpush.bf16.msrb.mxu1 %v3665_v23 }
 0x3ad   : > { %1322 = vmatpush.bf16.msrb.mxu1 %v3677_v19 }
 0x3b1   : > { %1323 = vmatpush.bf16.msrb.mxu1 %v3689_v9 }
 0x3b5   : > { %1324 = vmatpush.bf16.msrb.mxu1 %v3701_v5 }
 0x3b9   : > { %1531 = vmatpush.bf16.msra.mxu1 %v3627_v2  ;;  %v1007_v2 = vadd.f32 %v3858_v51, %v967_v36 }
 0x3bd   : > { %1532 = vmatpush.bf16.msra.mxu1 %v3633_v38  ;;  %v2841_v38 = vmul.f32 -1.442695, %v1007_v2  ;;  %v1192_v8 = vpop.permute.xlu2 %1191 }
 0x3bf   : > { %3089 = vpow2.f32 %v2841_v38 }
 0x3c1   : > { %1533 = vmatpush.bf16.msra.mxu1 %v3643_v29  ;;  %v3088_v29 = vpop.eup %3087 }
 0x3c5   : > { %1534 = vmatpush.bf16.msra.mxu1 %v3653_v25  ;;  %v1053_v25 = vadd.f32 1.0, %v3088_v29 }
 0x3c7   : > { %3091 = vrcp.f32 %v1053_v25  ;;  %vm1060_vm10 = vweird.f32 %v1053_v25  ;;  %v1066_v39 = vand.u32 2147483648, %v1053_v25  ;;  %v1064_v61 = vand.u32 2147483647, %v1053_v25 }
 0x3c9   : > { %1535 = vmatpush.bf16.msra.mxu1 %v3663_v21  ;;  %v3090_v21 = vpop.eup %3089  ;;  %v1067_v55 = vor.u32 1.1754944e-38, %v1066_v39  ;;  %vm1065_vm13 = vcmp.eq.f32.partialorder %v1064_v61, 8.507059e+37 }
 0x3ca   : > { %v1054_v4 = vadd.f32 1.0, %v3090_v21 }
 0x3cc   : > { %3093 = vrcp.f32 %v1054_v4  ;;  %vm1075_vm14 = vweird.f32 %v1054_v4  ;;  %v1081_v41 = vand.u32 2147483648, %v1054_v4  ;;  %v1079_v46 = vand.u32 2147483647, %v1054_v4 }
 0x3cd   : > { %1536 = vmatpush.bf16.msra.mxu1 %v3673_v17  ;;  %v3092_v17 = vpop.eup %3091 }
 0x3ce   : > { %vm1061_vm11 = vweird.f32 %v3092_v17  ;;  %v1082_v7 = vor.u32 1.1754944e-38, %v1081_v41  ;;  %vm1080_vm1 = vcmp.eq.f32.partialorder %v1079_v46, 8.507059e+37 }
 0x3cf   : > { %vm1062_vm12 = vmor %vm1060_vm10, %vm1061_vm11 }
 0x3d1   : > { %1537 = vmatpush.bf16.msra.mxu1 %v3685_v13  ;;  %v1056_v13 = vmul.f32 %v3092_v17, %v1053_v25 }
 0x3d3   : > { %v1057_v35 = vsub.f32 1.0, %v1056_v13  ;;  %v3924_v13 = vld [vmem:[#allocation2 + $0x18] sm:$0xff] }
 0x3d5   : > { %1538 = vmatpush.bf16.msra.mxu1 %v3697_v11  ;;  %v3094_v11 = vpop.eup %3093  ;;  %v1058_v3 = vmul.f32 %v3092_v17, %v1057_v35  ;;  %v3926_v35 = vld [vmem:[#allocation2 + $0x8] sm:$0xff] }
 0x3d6   : > { %v1071_v42 = vmul.f32 %v3094_v11, %v1054_v4  ;;  %vm1076_vm15 = vweird.f32 %v3094_v11 }
 0x3d7   : > { %v1059_v51 = vadd.f32 %v3092_v17, %v1058_v3  ;;  %vm1077_vm0 = vmor %vm1075_vm14, %vm1076_vm15 }
 0x3d8   : > { %v1072_v32 = vsub.f32 1.0, %v1071_v42 }
 0x3d9   : > { %v1063_v63 = vsel %vm1062_vm12, %v3092_v17, %v1059_v51 }
 0x3da   : > { %v1073_v47 = vmul.f32 %v3094_v11, %v1072_v32  ;;  %v1068_v49 = vsel %vm1065_vm13, %v1067_v55, %v1063_v63 }
 0x3db   : > { %v1223_v10 = vsub.f32 1.0, %v1068_v49  ;;  %v1221_v43 = vmul.f32 %v1068_v49, %v3706_v15 }
 0x3dc   : > { %v1074_v45 = vadd.f32 %v3094_v11, %v1073_v47 }
 0x3de   : > { %v1078_v36 = vsel %vm1077_vm0, %v3094_v11, %v1074_v45 }
 0x3df   : > { %v1083_v38 = vsel %vm1080_vm1, %v1082_v7, %v1078_v36 }
 0x3e0   : > { %v1224_v29 = vsub.f32 1.0, %v1083_v38  ;;  %v1222_v21 = vmul.f32 %v1083_v38, %v3728_v1  ;;  %v3930_v1 = vpack.c.bf16 %v3926_v35, %v3924_v13 }
 0x415   : > { %v1214_v33 = vpop.f32.mrf.mxu1 }
 0x416   : > { %v1215_v6 = vadd.f32 %v1214_v33, %v1187_v59 }
 0x418   : > { %3095 = vtanh.f32 %v1215_v6 }
 0x41d   : > { %v1216_v40 = vpop.f32.mrf.mxu1 }
 0x41e   : > { %v3096_v53 = vpop.eup %3095  ;;  %v1217_v37 = vadd.f32 %v1216_v40, %v1192_v8 }
 0x41f   : > { %v1225_v57 = vmul.f32 %v3096_v53, %v1223_v10 }
 0x420   : > { %3097 = vtanh.f32 %v1217_v37 }
 0x421   : > { %v3911_v2 = vadd.f32 %v1225_v57, %v1221_v43 }
 0x423   : > { %1229 = vst [vmem:[#allocation2 + $0x10] sm:$0xff] %v3911_v2 }
 0x426   : > { %v3098_v25 = vpop.eup %3097 }
 0x427   : > { %v1226_v4 = vmul.f32 %v3098_v25, %v1224_v29 }
 0x429   : > { %v3915_v17 = vadd.f32 %v1226_v4, %v1222_v21 }
 0x42b   : > { %1230 = vst [vmem:[#allocation2] sm:$0xff] %v3915_v17  ;;  %v3920_v15 = vpack.c.bf16 %v3915_v17, %v3911_v2 }
 0x42d   : > { %1256 = vmatmul.bf16.vlgmr.msra.gmra.mxu2 %v3920_v15  ;;  %1304 = vmatmul.bf16.vlgmr.msrb.gmra.mxu0 %v3920_v15 }
 0x43d   : > { %1261 = vmatmul.bf16.gmra.mxu2 %v3930_v1  ;;  %1309 = vmatmul.bf16.gmra.mxu0 %v3930_v1 }
 0x44d   : > { %1518 = vmatmul.bf16.vlgmr.msra.gmra.mxu0 %v3920_v15 }
 0x4aa   : > { %v1305_v11 = vpop.f32.mrf.mxu0 }
 0x4b0   : > { %v1257_v3 = vpop.f32.mrf.mxu2 }
 0x4b2   : > { %v1307_v42 = vpop.f32.mrf.mxu0 }
 0x4b3   : > { %v1315_v39 = vpack.c.bf16 %v1307_v42, %v1305_v11  ;;  %v3033_v11 = vld [vmem:[%s4462_s6 + $0x4] sm:$0xf] }
 0x4b5   : > { %1325 = vmatmul.bf16.vlgmr.msrb.gmra.mxu1 %v1315_v39 }
 0x4b8   : > { %v1259_v32 = vpop.f32.mrf.mxu2 }
 0x4b9   : > { %v3935_v59 = vpack.c.bf16 %v1259_v32, %v1257_v3  ;;  %v2851_v3 = vld [vmem:[%s4462_s6 + $0x8] sm:$0xf0] }
 0x4ba   : > { %v1310_v51 = vpop.f32.mrf.mxu0 }
 0x4bb   : > { %1277 = vmatmul.bf16.vlgmr.msra.gmra.mxu3 %v3935_v59 }
 0x4c0   : > { %v1262_v61 = vpop.f32.mrf.mxu2 }
 0x4c2   : > { %v1312_v33 = vpop.f32.mrf.mxu0 }
 0x4c3   : > { %v1316_v55 = vpack.c.bf16 %v1312_v33, %v1310_v51 }
 0x4c5   : > { %1330 = vmatmul.bf16.gmra.mxu1 %v1316_v55  ;;  %1393 = vmatpush.bf16.msrb.mxu2 %v1316_v55 }
 0x4c8   : > { %v1264_v6 = vpop.f32.mrf.mxu2 }
 0x4c9   : > { %v1268_v47 = vpack.c.bf16 %v1264_v6, %v1262_v61  ;;  %1394 = vmatpush.bf16.msrb.mxu2 %v1315_v39  ;;  %v2854_v39 = vor.u32 %v3033_v11, %v2851_v3 }
 0x4ca   : > { %v1519_v63 = vpop.f32.mrf.mxu0 }
 0x4cb   : > { %1282 = vmatmul.bf16.gmra.mxu3 %v1268_v47 }
 0x4d2   : > { %v1521_v41 = vpop.f32.mrf.mxu0 }
 0x4d3   : > { %v3938_v49 = vpack.c.bf16 %v1521_v41, %v1519_v63 }
 0x4d5   : > { %1539 = vmatmul.bf16.vlgmr.msra.gmra.mxu1 %v3938_v49 }
 0x532   : > { %v1326_v45 = vpop.f32.mrf.mxu1 }
 0x533   : > { %v1336_v36 = vmul.f32 2.0, %v1326_v45 }
 0x535   : > { %v1340_v4 = vsub.f32 %v1336_v36, %v3911_v2 }
 0x53a   : > { %v1328_v46 = vpop.f32.mrf.mxu1 }
 0x53b   : > { %v1337_v37 = vmul.f32 2.0, %v1328_v46 }
 0x53d   : > { %v1341_v25 = vsub.f32 %v1337_v37, %v3915_v17  ;;  %v3034_v37 = vld [vmem:[%s4462_s6 + $0x4] sm:$0xf0] }
 0x53e   : > { %v1278_v8 = vpop.f32.mrf.mxu3 }
 0x53f   : > { %v1346_v42 = vpack.c.bf16 %v1341_v25, %v1340_v4  ;;  %v1288_v55 = vmul.f32 2.0, %v1278_v8  ;;  %v3035_v8 = vld [vmem:[%s4462_s6 + $0x14] sm:$0xf] }
 0x541   : > { %v1292_v46 = vsub.f32 %v1288_v55, %v3911_v2 }
 0x542   : > { %v1331_v10 = vpop.f32.mrf.mxu1 }
 0x543   : > { %v1338_v53 = vmul.f32 2.0, %v1331_v10 }
 0x545   : > { %v1342_v43 = vsub.f32 %v1338_v53, %v3924_v13 }
 0x546   : > { %v1280_v40 = vpop.f32.mrf.mxu3 }
 0x547   : > { %v1289_v61 = vmul.f32 2.0, %v1280_v40  ;;  %v2859_v40 = vld [vmem:[%s4462_s6 + $0x18] sm:$0xf0] }
 0x548   : > { %v2862_v53 = vor.u32 %v3035_v8, %v2859_v40 }
 0x549   : > { %v1293_v41 = vsub.f32 %v1289_v61, %v3915_v17 }
 0x54a   : > { %v1333_v7 = vpop.f32.mrf.mxu1 }
 0x54b   : > { %v1339_v57 = vmul.f32 2.0, %v1333_v7  ;;  %v1344_v10 = vpack.c.bf16 %v1293_v41, %v1292_v46  ;;  %v2849_v7 = vld [vmem:[%s4462_s6] sm:$0xf] }
 0x54d   : > { %v1343_v38 = vsub.f32 %v1339_v57, %v3926_v35 }
 0x54e   : > { %v1283_v29 = vpop.f32.mrf.mxu3 }
 0x54f   : > { %v1347_v21 = vpack.c.bf16 %v1343_v38, %v1342_v43  ;;  %v1290_v32 = vmul.f32 2.0, %v1283_v29  ;;  %v1356_v29 = vpop.permute.xlu1 %1355 }
 0x551   : > { %1418 = vmatpush.bf16.msrb.mxu3 %v1347_v21  ;;  %v1294_v6 = vsub.f32 %v1290_v32, %v3924_v13 }
 0x555   : > { %1419 = vmatpush.bf16.msrb.mxu3 %v1346_v42 }
 0x556   : > { %v1285_v51 = vpop.f32.mrf.mxu3 }
 0x557   : > { %v1291_v33 = vmul.f32 2.0, %v1285_v51 }
 0x558   : > { %2863 = vmatmul.msk.bf16.vlgmr.msrb.gmra.mxu3 %vm1386_vm2, %v2854_v39 }
 0x559   : > { %1579 = vmatpush.bf16.msra.mxu3 %v3629_v0  ;;  %v1295_v63 = vsub.f32 %v1291_v33, %v3926_v35 }
 0x55b   : > { %v1345_v45 = vpack.c.bf16 %v1295_v63, %v1294_v6 }
 0x55d   : > { %1580 = vmatpush.bf16.msra.mxu3 %v3635_v34  ;;  %1395 = vmatpush.bf16.msrb.mxu2 %v1345_v45 }
 0x561   : > { %1581 = vmatpush.bf16.msra.mxu3 %v3645_v31  ;;  %1396 = vmatpush.bf16.msrb.mxu2 %v1344_v10 }
 0x565   : > { %1582 = vmatpush.bf16.msra.mxu3 %v3655_v27  ;;  %1397 = vmatpush.bf16.msrb.mxu2 %v1268_v47  ;;  %v2850_v47 = vor.u32 %v3034_v37, %v2849_v7 }
 0x568   : > { %2864 = vmatmul.msk.bf16.gmra.mxu3 %vm1386_vm2, %v2862_v53 }
 0x569   : > { %1583 = vmatpush.bf16.msra.mxu3 %v3665_v23  ;;  %1398 = vmatpush.bf16.msrb.mxu2 %v3935_v59  ;;  %v3036_v59 = vld [vmem:[%s4462_s6 + $0x14] sm:$0xf0] }
 0x56d   : > { %1584 = vmatpush.bf16.msra.mxu3 %v3677_v19  ;;  %1399 = vmatpush.bf16.msrb.mxu2 %v3930_v1  ;;  %v2857_v1 = vld [vmem:[%s4462_s6 + $0x10] sm:$0xf] }
 0x56e   : > { %v2858_v43 = vor.u32 %v3036_v59, %v2857_v1 }
 0x571   : > { %1585 = vmatpush.bf16.msra.mxu3 %v3689_v9  ;;  %1400 = vmatpush.bf16.msrb.mxu2 %v3920_v15 }
 0x574   : > { %1401 = vmatmul.bf16.vlgmr.msrb.gmra.mxu2 %v2850_v47 }
 0x575   : > { %1558 = vmatpush.bf16.msra.mxu2 %v3629_v0  ;;  %1586 = vmatpush.bf16.msra.mxu3 %v3701_v5 }
 0x579   : > { %1559 = vmatpush.bf16.msra.mxu2 %v3635_v34  ;;  %v1351_v34 = vpop.permute.xlu0 %1350 }
 0x57d   : > { %1560 = vmatpush.bf16.msra.mxu2 %v3645_v31 }
 0x581   : > { %1561 = vmatpush.bf16.msra.mxu2 %v3655_v27 }
 0x584   : > { %1406 = vmatmul.bf16.gmra.mxu2 %v2858_v43 }
 0x585   : > { %1562 = vmatpush.bf16.msra.mxu2 %v3665_v23 }
 0x589   : > { %1563 = vmatpush.bf16.msra.mxu2 %v3677_v19 }
 0x58d   : > { %1564 = vmatpush.bf16.msra.mxu2 %v3689_v9  ;;  %v1361_v9 = vpop.permute.xlu2 %1360 }
 0x591   : > { %1565 = vmatpush.bf16.msra.mxu2 %v3701_v5 }
 0x594   : > { %1566 = vmatmul.bf16.vlgmr.msra.gmra.mxu2 %v3920_v15 }
 0x5db   : > { %v1421_v0 = vpop.f32.mrf.mxu3 }
 0x5e3   : > { %v1423_v27 = vpop.f32.mrf.mxu3 }
 0x5eb   : > { %v1426_v3 = vpop.f32.mrf.mxu3 }
 0x5f7   : > { %v1402_v31 = vpop.f32.mrf.mxu2 }
 0x5f8   : > { %v1403_v57 = vadd.f32 %v1402_v31, %v1351_v34 }
 0x5fa   : > { %v1422_v36 = vadd.f32 %v1421_v0, %v1403_v57 }
 0x5fc   : > { %v2865_v38 = vmul.f32 -1.442695, %v1422_v36 }
 0x5fe   : > { %3099 = vpow2.f32 %v2865_v38 }
 0x5ff   : > { %v1404_v25 = vpop.f32.mrf.mxu2 }
 0x600   : > { %v1405_v23 = vadd.f32 %v1404_v25, %v1356_v29 }
 0x602   : > { %v1424_v21 = vadd.f32 %v1423_v27, %v1405_v23 }
 0x604   : > { %v3100_v4 = vpop.eup %3099  ;;  %v2866_v19 = vmul.f32 -1.442695, %v1424_v21 }
 0x605   : > { %v1437_v11 = vadd.f32 1.0, %v3100_v4 }
 0x606   : > { %3101 = vpow2.f32 %v2866_v19 }
 0x607   : > { %3103 = vrcp.f32 %v1437_v11  ;;  %v1407_v5 = vpop.f32.mrf.mxu2  ;;  %v1450_v8 = vand.u32 2147483648, %v1437_v11  ;;  %vm1444_vm4 = vweird.f32 %v1437_v11  ;;  %v1448_v53 = vand.u32 2147483647, %v1437_v11 }
 0x608   : > { %v1408_v42 = vadd.f32 %v1407_v5, %v1361_v9  ;;  %v1540_v5 = vpop.f32.mrf.mxu1 }
 0x609   : > { %v1451_v59 = vor.u32 1.1754944e-38, %v1450_v8  ;;  %vm1449_vm7 = vcmp.eq.f32.partialorder %v1448_v53, 8.507059e+37 }
 0x60a   : > { %v3995_v39 = vadd.f32 %v1426_v3, %v1408_v42  ;;  %v1428_v3 = vpop.f32.mrf.mxu3 }
 0x60c   : > { %v3102_v32 = vpop.eup %3101 }
 0x60d   : > { %v3104_v51 = vpop.eup %3103  ;;  %v1438_v61 = vadd.f32 1.0, %v3102_v32 }
 0x60e   : > { %v1440_v33 = vmul.f32 %v3104_v51, %v1437_v11  ;;  %vm1445_vm3 = vweird.f32 %v3104_v51 }
 0x60f   : > { %3105 = vrcp.f32 %v1438_v61  ;;  %v3997_v55 = vpop.f32.mrf.mxu2  ;;  %vm1446_vm5 = vmor %vm1444_vm4, %vm1445_vm3  ;;  %v1465_v7 = vand.u32 2147483648, %v1438_v61  ;;  %v1463_v1 = vand.u32 2147483647, %v1438_v61  ;;  %vm1459_vm8 = vweird.f32 %v1438_v61 }
 0x610   : > { %v1441_v6 = vsub.f32 1.0, %v1440_v33  ;;  %v1542_v42 = vpop.f32.mrf.mxu1 }
 0x611   : > { %v1466_v34 = vor.u32 1.1754944e-38, %v1465_v7  ;;  %vm1464_vm10 = vcmp.eq.f32.partialorder %v1463_v1, 8.507059e+37 }
 0x612   : > { %v1442_v63 = vmul.f32 %v3104_v51, %v1441_v6 }
 0x614   : > { %v1443_v46 = vadd.f32 %v3104_v51, %v1442_v63  ;;  %v1551_v63 = vmul.f32 2.0, %v1542_v42 }
 0x615   : > { %v3106_v41 = vpop.eup %3105 }
 0x616   : > { %v1455_v45 = vmul.f32 %v3106_v41, %v1438_v61  ;;  %v1447_v37 = vsel %vm1446_vm5, %v3104_v51, %v1443_v46  ;;  %vm1460_vm6 = vweird.f32 %v3106_v41 }
 0x617   : > { %v1567_v10 = vpop.f32.mrf.mxu2  ;;  %v1452_v0 = vsel %vm1449_vm7, %v1451_v59, %v1447_v37  ;;  %vm1461_vm9 = vmor %vm1459_vm8, %vm1460_vm6 }
 0x618   : > { %v1456_v40 = vsub.f32 1.0, %v1455_v45  ;;  %v1507_v29 = vmul.f32 %v1452_v0, %v3924_v13  ;;  %v1550_v45 = vmul.f32 2.0, %v1540_v5 }
 0x61a   : > { %v1457_v47 = vmul.f32 %v3106_v41, %v1456_v40  ;;  %v1555_v40 = vsub.f32 %v1551_v63, %v3915_v17  ;;  %v1554_v7 = vsub.f32 %v1550_v45, %v3911_v2  ;;  %v1613_v45 = vpop.permute.xlu1 %1612 }
 0x61c   : > { %v1458_v43 = vadd.f32 %v3106_v41, %v1457_v47  ;;  %v1606_v37 = vpack.c.bf16 %v1555_v40, %v1554_v7 }
 0x61e   : > { %v1462_v31 = vsel %vm1461_vm9, %v3106_v41, %v1458_v43 }
 0x61f   : > { %v1569_v57 = vpop.f32.mrf.mxu2  ;;  %v1467_v36 = vsel %vm1464_vm10, %v1466_v34, %v1462_v31 }
 0x620   : > { %v1577_v38 = vpack.c.bf16 %v1569_v57, %v1567_v10  ;;  %v1508_v27 = vmul.f32 %v1467_v36, %v3926_v35 }
 0x622   : > { %1587 = vmatmul.bf16.vlgmr.msra.gmra.mxu3 %v1577_v38  ;;  %v1509_v25 = vpack.c.bf16 %v1508_v27, %v1507_v29 }
 0x624   : > { %1523 = vmatmul.bf16.gmra.mxu0 %v1509_v25  ;;  %1571 = vmatmul.bf16.gmra.mxu2 %v1509_v25 }
 0x6a1   : > { %v1524_v23 = vpop.f32.mrf.mxu0 }
 0x6a5   : > { %v1588_v32 = vpop.f32.mrf.mxu3 }
 0x6a6   : > { %v1598_v0 = vmul.f32 2.0, %v1588_v32 }
 0x6a7   : > { %v1572_v21 = vpop.f32.mrf.mxu2 }
 0x6a9   : > { %v1526_v4 = vpop.f32.mrf.mxu0 }
 0x6aa   : > { %v1530_v19 = vpack.c.bf16 %v1526_v4, %v1524_v23  ;;  %v3037_v23 = vld [vmem:[%s4464_s8 + $0x4] sm:$0xf] }
 0x6ac   : > { %1544 = vmatmul.bf16.gmra.mxu1 %v1530_v19 }
 0x6ad   : > { %v1590_v61 = vpop.f32.mrf.mxu3 }
 0x6ae   : > { %v1599_v59 = vmul.f32 2.0, %v1590_v61 }
 0x6af   : > { %v1574_v11 = vpop.f32.mrf.mxu2 }
 0x6b0   : > { %v1578_v9 = vpack.c.bf16 %v1574_v11, %v1572_v21  ;;  %v1603_v57 = vsub.f32 %v1599_v59, %v3915_v17  ;;  %v2873_v21 = vld [vmem:[%s4464_s8 + $0x8] sm:$0xf0]  ;;  %v2871_v17 = vld [vmem:[%s4464_s8] sm:$0xf]  ;;  %v1618_v59 = vpop.permute.xlu2 %1617 }
 0x6b2   : > { %1592 = vmatmul.bf16.gmra.mxu3 %v1578_v9  ;;  %1632 = vmatpush.bf16.msrb.mxu0 %v1578_v9 }
 0x6b6   : > { %1633 = vmatpush.bf16.msrb.mxu0 %v1577_v38  ;;  %v1602_v38 = vsub.f32 %v1598_v0, %v3911_v2  ;;  %v3038_v2 = vld [vmem:[%s4464_s8 + $0x4] sm:$0xf0] }
 0x6b8   : > { %v1608_v4 = vpack.c.bf16 %v1603_v57, %v1602_v38 }
 0x729   : > { %v1545_v51 = vpop.f32.mrf.mxu1 }
 0x72a   : > { %v1552_v33 = vmul.f32 2.0, %v1545_v51 }
 0x72c   : > { %v1556_v46 = vsub.f32 %v1552_v33, %v1507_v29 }
 0x731   : > { %v1547_v6 = vpop.f32.mrf.mxu1 }
 0x732   : > { %v1553_v41 = vmul.f32 2.0, %v1547_v6 }
 0x734   : > { %v1557_v10 = vsub.f32 %v1553_v41, %v1508_v27 }
 0x735   : > { %v1593_v8 = vpop.f32.mrf.mxu3 }
 0x736   : > { %v1607_v53 = vpack.c.bf16 %v1557_v10, %v1556_v46  ;;  %v1600_v47 = vmul.f32 2.0, %v1593_v8 }
 0x738   : > { %1634 = vmatpush.bf16.msrb.mxu0 %v1607_v53  ;;  %v1604_v34 = vsub.f32 %v1600_v47, %v1507_v29  ;;  %v2876_v29 = vor.u32 %v3037_v23, %v2873_v21 }
 0x73c   : > { %1635 = vmatpush.bf16.msrb.mxu0 %v1606_v37 }
 0x73d   : > { %v1595_v1 = vpop.f32.mrf.mxu3 }
 0x73e   : > { %v1601_v43 = vmul.f32 2.0, %v1595_v1 }
 0x740   : > { %v1605_v31 = vsub.f32 %v1601_v43, %v1508_v27  ;;  %1636 = vmatpush.bf16.msrb.mxu0 %v1530_v19  ;;  %v1366_v27 = vpop.permute.xlu0 %1365  ;;  %v2867_v19 = vmul.f32 -1.442695, %v3995_v39 }
 0x742   : > { %v1609_v36 = vpack.c.bf16 %v1605_v31, %v1604_v34  ;;  %3107 = vpow2.f32 %v2867_v19 }
 0x744   : > { %1637 = vmatpush.bf16.msrb.mxu0 %v3938_v49  ;;  %1652 = vmatpush.bf16.msrb.mxu1 %v1609_v36  ;;  %v2872_v49 = vor.u32 %v3038_v2, %v2871_v17 }
 0x748   : > { %1638 = vmatpush.bf16.msrb.mxu0 %v1509_v25  ;;  %1653 = vmatpush.bf16.msrb.mxu1 %v1608_v4  ;;  %v1410_v25 = vadd.f32 %v3997_v55, %v1366_v27  ;;  %v3108_v5 = vpop.eup %3107 }
 0x749   : > { %v1475_v42 = vadd.f32 1.0, %v3108_v5 }
 0x74a   : > { %v1429_v11 = vadd.f32 %v1428_v3, %v1410_v25 }
 0x74b   : > { %2877 = vmatmul.msk.bf16.vlgmr.msrb.gmra.mxu1 %vm1386_vm2, %v2876_v29  ;;  %v1488_v10 = vand.u32 2147483648, %v1475_v42  ;;  %vm1482_vm12 = vweird.f32 %v1475_v42  ;;  %v1486_v40 = vand.u32 2147483647, %v1475_v42 }
 0x74c   : > { %1639 = vmatpush.bf16.msrb.mxu0 %v3920_v15  ;;  %v2868_v9 = vmul.f32 -1.442695, %v1429_v11 }
 0x74d   : > { %v1489_v47 = vor.u32 1.1754944e-38, %v1488_v10  ;;  %vm1487_vm14 = vcmp.eq.f32.partialorder %v1486_v40, 8.507059e+37 }
 0x74e   : > { %3109 = vpow2.f32 %v2868_v9 }
 0x74f   : > { %1640 = vmatmul.bf16.vlgmr.msrb.gmra.mxu0 %v2872_v49  ;;  %3111 = vrcp.f32 %v1475_v42 }
 0x754   : > { %v3110_v32 = vpop.eup %3109 }
 0x755   : > { %v1476_v51 = vadd.f32 1.0, %v3110_v32  ;;  %v3112_v61 = vpop.eup %3111 }
 0x756   : > { %v1478_v33 = vmul.f32 %v3112_v61, %v1475_v42  ;;  %vm1483_vm11 = vweird.f32 %v3112_v61 }
 0x757   : > { %3113 = vrcp.f32 %v1476_v51  ;;  %vm1484_vm13 = vmor %vm1482_vm12, %vm1483_vm11  ;;  %v1503_v34 = vand.u32 2147483648, %v1476_v51  ;;  %vm1497_vm0 = vweird.f32 %v1476_v51  ;;  %v1501_v36 = vand.u32 2147483647, %v1476_v51 }
 0x758   : > { %v1479_v6 = vsub.f32 1.0, %v1478_v33 }
 0x759   : > { %v1504_v2 = vor.u32 1.1754944e-38, %v1503_v34  ;;  %vm1502_vm2 = vcmp.eq.f32.partialorder %v1501_v36, 8.507059e+37 }
 0x75a   : > { %v1480_v63 = vmul.f32 %v3112_v61, %v1479_v6 }
 0x75c   : > { %v1481_v55 = vadd.f32 %v3112_v61, %v1480_v63 }
 0x75d   : > { %v3114_v15 = vpop.eup %3113 }
 0x75e   : > { %v1493_v41 = vmul.f32 %v3114_v15, %v1476_v51  ;;  %v1485_v37 = vsel %vm1484_vm13, %v3112_v61, %v1481_v55  ;;  %vm1498_vm15 = vweird.f32 %v3114_v15 }
 0x75f   : > { %v1490_v1 = vsel %vm1487_vm14, %v1489_v47, %v1485_v37  ;;  %vm1499_vm1 = vmor %vm1497_vm0, %vm1498_vm15 }
 0x760   : > { %v1494_v39 = vsub.f32 1.0, %v1493_v41  ;;  %v1664_v57 = vsub.f32 1.0, %v1490_v1  ;;  %v1662_v4 = vmul.f32 %v1490_v1, %v3924_v13 }
 0x762   : > { %v1495_v7 = vmul.f32 %v3114_v15, %v1494_v39 }
 0x764   : > { %v1496_v0 = vadd.f32 %v3114_v15, %v1495_v7 }
 0x766   : > { %v1500_v17 = vsel %vm1499_vm1, %v3114_v15, %v1496_v0 }
 0x767   : > { %v1505_v27 = vsel %vm1502_vm2, %v1504_v2, %v1500_v17 }
 0x768   : > { %v1665_v19 = vsub.f32 1.0, %v1505_v27  ;;  %v1663_v11 = vmul.f32 %v1505_v27, %v3926_v35 }
 0x7c8   : > { %v1655_v3 = vpop.f32.mrf.mxu1 }
 0x7cc   : > { %v1641_v46 = vpop.f32.mrf.mxu0 }
 0x7cd   : > { %v1642_v8 = vadd.f32 %v1641_v46, %v1613_v45 }
 0x7cf   : > { %v1656_v53 = vadd.f32 %v1655_v3, %v1642_v8 }
 0x7d0   : > { %v1657_v38 = vpop.f32.mrf.mxu1 }
 0x7d1   : > { %3115 = vtanh.f32 %v1656_v53 }
 0x7d4   : > { %v1643_v43 = vpop.f32.mrf.mxu0 }
 0x7d5   : > { %v1644_v31 = vadd.f32 %v1643_v43, %v1618_v59 }
 0x7d7   : > { %v3116_v23 = vpop.eup %3115  ;;  %v1658_v21 = vadd.f32 %v1657_v38, %v1644_v31 }
 0x7d8   : > { %v1666_v29 = vmul.f32 %v3116_v23, %v1664_v57 }
 0x7d9   : > { %3117 = vtanh.f32 %v1658_v21 }
 0x7da   : > { %v1668_v49 = vadd.f32 %v1666_v29, %v1662_v4 }
 0x7dc   : > { %1670 = vst [vmem:[#allocation2 + $0x18] sm:$0xff] %v1668_v49 }
 0x7df   : > { %v3118_v25 = vpop.eup %3117 }
 0x7e0   : > { %v1667_v9 = vmul.f32 %v3118_v25, %v1665_v19 }
 0x7e2   : > { %v1669_v5 = vadd.f32 %v1667_v9, %v1663_v11 }
 0x7e4   : > { %1671 = vst [vmem:[#allocation2 + $0x8] sm:$0xff] %v1669_v5 }
 0x7e5 PF: > { %p2878_p10 = scmp.lt.s32.totalorder %s3176_s1, 4 }
 0x7e6   : > { %s4524_s16 = sld [smem:[#allocation25_spill]] (!%p2878_p10) }
 0x7e7   : > { %1675 = sbr.rel (%p2878_p10) target bundleno = 4116 (0x1014), region = 116  ;;  %s4525_s29 = sld [smem:[#allocation26_spill]] (!%p2878_p10) }
 0x7ec   : > { %v4027_v13 = vor.u32 %v3479_v30, %v3471_v28  ;;  %v4031_v42 = vor.u32 %v3619_v62, %v3611_v60  ;;  %v4037_v35 = vor.u32 %v3463_v26, %v3455_v24  ;;  %v4041_v32 = vor.u32 %v3603_v58, %v3595_v56  ;;  %v4511_v30 = vld [vmem:[#allocation19_spill] sm:$0xff]  ;;  %v4519_v60 = vld [vmem:[#allocation16_spill] sm:$0xff]  ;;  %v4522_v6 = vld [vmem:[#allocation13_spill] sm:$0xff] }
 0x7ed   : > { %v4049_v28 = vor.u32 %v3445_v22, %v3435_v20  ;;  %v4053_v24 = vor.u32 %v3587_v54, %v3579_v52  ;;  %v4061_v26 = vor.u32 %v3425_v18, %v3415_v16  ;;  %v4065_v20 = vor.u32 %v3571_v50, %v3563_v48  ;;  %v4512_v18 = vld [vmem:[#allocation11_spill] sm:$0xff]  ;;  %v4513_v48 = vld [vmem:[#allocation12_spill] sm:$0xff]  ;;  %v4514_v52 = vld [vmem:[#allocation17_spill] sm:$0xff] }
 0x7ee   : > { %1741 = vmatpush.bf16.msra.mxu0 %v4027_v13  ;;  %1833 = vmatpush.bf16.msra.mxu2 %v4031_v42  ;;  %v4073_v22 = vor.u32 %v3400_v14, %v3385_v12  ;;  %v4077_v16 = vor.u32 %v4511_v30, %v3547_v44  ;;  %v4085_v50 = vor.u32 %v4513_v48, %v4512_v18  ;;  %v4515_v54 = vld [vmem:[#allocation18_spill] sm:$0xff]  ;;  %v4516_v14 = vld [vmem:[#allocation9_spill] sm:$0xff]  ;;  %v4518_v58 = vld [vmem:[#allocation15_spill] sm:$0xff]  ;;  %v3189_v21 = vmov 0  }
 0x7ef   : > { %1761 = vmatpush.bf16.msra.mxu1 %v4027_v13  ;;  %1853 = vmatpush.bf16.msra.mxu3 %v4031_v42  ;;  %v4089_v12 = vor.u32 %v4515_v54, %v4514_v52  ;;  %v4517_v44 = vld [vmem:[#allocation10_spill] sm:$0xff]  ;;  %v4101_v62 = vor.u32 %v4519_v60, %v4518_v58  ;;  %v4520_v51 = vld [vmem:[#allocation7_spill] sm:$0xff]  ;;  %v4521_v61 = vld [vmem:[#allocation8_spill] sm:$0xff]  ;;  %vm1921_vm3 = vcmask 1043456   ;;  %vm1914_vm4 = vcmask 982016  }
 0x7f0   : > { %v4097_v56 = vor.u32 %v4517_v44, %v4516_v14  ;;  %v4109_v33 = vor.u32 %v4521_v61, %v4520_v51  ;;  %v4523_v15 = vld [vmem:[#allocation14_spill] sm:$0xff]  ;;  %v4117_v45 = vld [vmem:[#allocation2 + $0x10] sm:$0xff]  ;;  %3119 = vset.pattern.permute.xlu0 %v3189_v21  ;;  %3120 = vset.pattern.permute.xlu1 %v3189_v21  ;;  %v1684_v17 = vld [vmem:[%s4467_s11 + $0x8] sm:$0xff] }
 0x7f1   : > { %v4113_v63 = vor.u32 %v4523_v15, %v4522_v6  ;;  %v4115_v41 = vld [vmem:[#allocation3] sm:$0xff]  ;;  %3121 = vset.pattern.permute.xlu2 %v3189_v21  ;;  %v2176_v48 = vld [vmem:[%s4471_s15 + $0x18] sm:$0xff] }
 0x7f2   : > { %1742 = vmatpush.bf16.msra.mxu0 %v4037_v35  ;;  %1834 = vmatpush.bf16.msra.mxu2 %v4041_v32  ;;  %v4123_v39 = vpack.c.bf16 %v4117_v45, %v4115_v41  ;;  %v4139_v46 = vld [vmem:[#allocation2] sm:$0xff] }
 0x7f3   : > { %1762 = vmatpush.bf16.msra.mxu1 %v4037_v35  ;;  %1854 = vmatpush.bf16.msra.mxu3 %v4041_v32  ;;  %v1692_v55 = vpack.c.bf16 %v4139_v46, %v4139_v46  ;;  %v1683_v23 = vld [vmem:[%s4467_s11] sm:$0xff] }
 0x7f4   : > { %1886 = vperm.xlu0 %3119, %v1683_v23   ;;  %v2173_v27 = vld [vmem:[%s4471_s15] sm:$0xff] }
 0x7f5   : > { %v2609_v61 = vld [vmem:[%s4475_s19] sm:$0xff] }
 0x7f6   : > { %1743 = vmatpush.bf16.msra.mxu0 %v4049_v28  ;;  %1835 = vmatpush.bf16.msra.mxu2 %v4053_v24 }
 0x7f7   : > { %1763 = vmatpush.bf16.msra.mxu1 %v4049_v28  ;;  %1855 = vmatpush.bf16.msra.mxu3 %v4053_v24 }
 0x7fa   : > { %1744 = vmatpush.bf16.msra.mxu0 %v4061_v26  ;;  %1836 = vmatpush.bf16.msra.mxu2 %v4065_v20 }
 0x7fb   : > { %1764 = vmatpush.bf16.msra.mxu1 %v4061_v26  ;;  %1856 = vmatpush.bf16.msra.mxu3 %v4065_v20 }
 0x7fc   : > { %1891 = vperm.xlu0 %3119, %v1684_v17  }
 0x7fe   : > { %1745 = vmatpush.bf16.msra.mxu0 %v4073_v22  ;;  %1837 = vmatpush.bf16.msra.mxu2 %v4077_v16 }
 0x7ff   : > { %1765 = vmatpush.bf16.msra.mxu1 %v4073_v22  ;;  %1857 = vmatpush.bf16.msra.mxu3 %v4077_v16 }
 0x802   : > { %1746 = vmatpush.bf16.msra.mxu0 %v4085_v50  ;;  %1838 = vmatpush.bf16.msra.mxu2 %v4089_v12 }
 0x803   : > { %1766 = vmatpush.bf16.msra.mxu1 %v4085_v50  ;;  %1858 = vmatpush.bf16.msra.mxu3 %v4089_v12 }
 0x804   : > { %2285 = vperm.xlu0 %3119, %v2173_v27  }
 0x806   : > { %1747 = vmatpush.bf16.msra.mxu0 %v4097_v56  ;;  %1839 = vmatpush.bf16.msra.mxu2 %v4101_v62 }
 0x807   : > { %1767 = vmatpush.bf16.msra.mxu1 %v4097_v56  ;;  %1859 = vmatpush.bf16.msra.mxu3 %v4101_v62 }
 0x80a   : > { %1748 = vmatpush.bf16.msra.mxu0 %v4109_v33  ;;  %1840 = vmatpush.bf16.msra.mxu2 %v4113_v63 }
 0x80b   : > { %1768 = vmatpush.bf16.msra.mxu1 %v4109_v33  ;;  %1860 = vmatpush.bf16.msra.mxu3 %v4113_v63 }
 0x80c   : > { %2300 = vperm.xlu0 %3119, %v2176_v48  }
 0x80d   : > { %1749 = vmatmul.bf16.vlgmr.msra.gmra.mxu0 %v4123_v39  ;;  %1841 = vmatmul.bf16.vlgmr.msra.gmra.mxu2 %v4123_v39 }
 0x80e   : > { %2044 = vmatpush.bf16.msrb.mxu2 %v4027_v13 }
 0x80f   : > { %2024 = vmatpush.bf16.msrb.mxu1 %v4027_v13  ;;  %2068 = vmatpush.bf16.msrb.mxu3 %v4031_v42 }
 0x812   : > { %2045 = vmatpush.bf16.msrb.mxu2 %v4037_v35 }
 0x813   : > { %2025 = vmatpush.bf16.msrb.mxu1 %v4037_v35  ;;  %2069 = vmatpush.bf16.msrb.mxu3 %v4041_v32 }
 0x814   : > { %2612 = vperm.xlu0 %3119, %v2609_v61  }
 0x816   : > { %2046 = vmatpush.bf16.msrb.mxu2 %v4049_v28 }
 0x817   : > { %2026 = vmatpush.bf16.msrb.mxu1 %v4049_v28  ;;  %2070 = vmatpush.bf16.msrb.mxu3 %v4053_v24 }
 0x81a   : > { %2047 = vmatpush.bf16.msrb.mxu2 %v4061_v26 }
 0x81b   : > { %2027 = vmatpush.bf16.msrb.mxu1 %v4061_v26  ;;  %2071 = vmatpush.bf16.msrb.mxu3 %v4065_v20 }
 0x81d   : > { %1846 = vmatmul.bf16.gmra.mxu2 %v1692_v55  ;;  %1754 = vmatmul.bf16.gmra.mxu0 %v1692_v55 }
 0x81e   : > { %2048 = vmatpush.bf16.msrb.mxu2 %v4073_v22 }
 0x81f   : > { %2028 = vmatpush.bf16.msrb.mxu1 %v4073_v22  ;;  %2072 = vmatpush.bf16.msrb.mxu3 %v4077_v16 }
 0x822   : > { %2049 = vmatpush.bf16.msrb.mxu2 %v4085_v50 }
 0x823   : > { %2029 = vmatpush.bf16.msrb.mxu1 %v4085_v50  ;;  %2073 = vmatpush.bf16.msrb.mxu3 %v4089_v12 }
 0x826   : > { %2050 = vmatpush.bf16.msrb.mxu2 %v4097_v56 }
 0x827   : > { %2030 = vmatpush.bf16.msrb.mxu1 %v4097_v56  ;;  %2074 = vmatpush.bf16.msrb.mxu3 %v4101_v62 }
 0x82a   : > { %2051 = vmatpush.bf16.msrb.mxu2 %v4109_v33 }
 0x82b   : > { %2031 = vmatpush.bf16.msrb.mxu1 %v4109_v33  ;;  %2075 = vmatpush.bf16.msrb.mxu3 %v4113_v63 }
 0x82e   : > { %2183 = vmatpush.bf16.msra.mxu2 %v4027_v13 }
 0x832   : > { %2184 = vmatpush.bf16.msra.mxu2 %v4037_v35 }
 0x836   : > { %2185 = vmatpush.bf16.msra.mxu2 %v4049_v28 }
 0x83a   : > { %2186 = vmatpush.bf16.msra.mxu2 %v4061_v26 }
 0x83e   : > { %2187 = vmatpush.bf16.msra.mxu2 %v4073_v22 }
 0x842   : > { %2188 = vmatpush.bf16.msra.mxu2 %v4085_v50 }
 0x846   : > { %2189 = vmatpush.bf16.msra.mxu2 %v4097_v56 }
 0x84a   : > { %2190 = vmatpush.bf16.msra.mxu2 %v4109_v33 }
 0x88a   : > { %v4167_v3 = vpop.f32.mrf.mxu0 }
 0x890   : > { %v4169_v10 = vpop.f32.mrf.mxu2 }
 0x892   : > { %v4171_v8 = vpop.f32.mrf.mxu0 }
 0x893   : > { %v1759_v40 = vpack.c.bf16 %v4171_v8, %v4167_v3 }
 0x895   : > { %1769 = vmatmul.bf16.vlgmr.msra.gmra.mxu1 %v1759_v40  ;;  %v1877_v40 = vpack.c.bf16 %v4167_v3, %v4139_v46 }
 0x898   : > { %v1844_v53 = vpop.f32.mrf.mxu2 }
 0x899   : > { %v1851_v7 = vpack.c.bf16 %v1844_v53, %v4169_v10 }
 0x89a   : > { %v4176_v37 = vpop.f32.mrf.mxu0 }
 0x89b   : > { %1861 = vmatmul.bf16.vlgmr.msra.gmra.mxu3 %v1851_v7  ;;  %v1878_v47 = vpack.c.bf16 %v4176_v37, %v4171_v8  ;;  %v1760_v59 = vpack.c.bf16 %v4176_v37, %v4176_v37 }
 0x89c   : > { %2204 = vmatpush.bf16.msra.mxu3 %v4027_v13 }
 0x8a0   : > { %v1847_v1 = vpop.f32.mrf.mxu2  ;;  %2205 = vmatpush.bf16.msra.mxu3 %v4037_v35 }
 0x8a1   : > { %v1881_v43 = vpack.c.bf16 %v1847_v1, %v1844_v53  ;;  %v1852_v34 = vpack.c.bf16 %v1847_v1, %v1847_v1  ;;  %v3039_v53 = vld [vmem:[%s4466_s10] sm:$0xff] }
 0x8a2   : > { %v1757_v0 = vpop.f32.mrf.mxu0 }
 0x8a4   : > { %2206 = vmatpush.bf16.msra.mxu3 %v4049_v28 }
 0x8a5   : > { %1774 = vmatmul.bf16.gmra.mxu1 %v1760_v59 }
 0x8a8   : > { %v1849_v31 = vpop.f32.mrf.mxu2  ;;  %2207 = vmatpush.bf16.msra.mxu3 %v4061_v26 }
 0x8a9   : > { %v3040_v31 = vld [vmem:[%s4466_s10 + $0x8] sm:$0xff] }
 0x8ab   : > { %1866 = vmatmul.bf16.gmra.mxu3 %v1852_v34 }
 0x8ac   : > { %2208 = vmatpush.bf16.msra.mxu3 %v4073_v22 }
 0x8b0   : > { %2209 = vmatpush.bf16.msra.mxu3 %v4085_v50 }
 0x8b4   : > { %2210 = vmatpush.bf16.msra.mxu3 %v4097_v56 }
 0x8b8   : > { %2211 = vmatpush.bf16.msra.mxu3 %v4109_v33 }
 0x912   : > { %v1770_v57 = vpop.f32.mrf.mxu1 }
 0x913   : > { %v1779_v58 = vmul.f32 2.0, %v1770_v57  ;;  %v1685_v57 = vld [vmem:[%s4467_s11 + $0x10] sm:$0xff] }
 0x914   : > { %1896 = vperm.xlu1 %3120, %v1685_v57   ;;  %v2174_v57 = vld [vmem:[%s4471_s15 + $0x8] sm:$0xff] }
 0x915   : > { %v1782_v6 = vsub.f32 %v1779_v58, %v4115_v41 }
 0x91a   : > { %v1772_v36 = vpop.f32.mrf.mxu1 }
 0x91b   : > { %v1780_v60 = vmul.f32 2.0, %v1772_v36 }
 0x91d   : > { %v1783_v15 = vsub.f32 %v1780_v60, %v4117_v45 }
 0x91e   : > { %v1862_v38 = vpop.f32.mrf.mxu3 }
 0x91f   : > { %v1871_v9 = vmul.f32 2.0, %v1862_v38  ;;  %v1879_v8 = vpack.c.bf16 %v1783_v15, %v1782_v6 }
 0x921   : > { %v1874_v52 = vsub.f32 %v1871_v9, %v4115_v41 }
 0x922   : > { %v1775_v4 = vpop.f32.mrf.mxu1 }
 0x923   : > { %v1781_v14 = vmul.f32 2.0, %v1775_v4 }
 0x925   : > { %v1784_v51 = vsub.f32 %v1781_v14, %v4139_v46 }
 0x926   : > { %v1864_v29 = vpop.f32.mrf.mxu3 }
 0x927   : > { %v1872_v25 = vmul.f32 2.0, %v1864_v29  ;;  %v1880_v55 = vpack.c.bf16 %v4169_v10, %v1784_v51 }
 0x929   : > { %v1875_v30 = vsub.f32 %v1872_v25, %v4117_v45 }
 0x92a   : > { %v1777_v2 = vpop.f32.mrf.mxu1 }
 0x92b   : > { %v1882_v44 = vpack.c.bf16 %v1875_v30, %v1874_v52  ;;  %v1686_v2 = vld [vmem:[%s4467_s11 + $0x18] sm:$0xff] }
 0x92c   : > { %1901 = vperm.xlu1 %3120, %v1686_v2  }
 0x92e   : > { %v1867_v49 = vpop.f32.mrf.mxu3 }
 0x92f   : > { %v1873_v19 = vmul.f32 2.0, %v1867_v49 }
 0x931   : > { %v1876_v11 = vsub.f32 %v1873_v19, %v4139_v46 }
 0x933   : > { %v1883_v5 = vpack.c.bf16 %v1876_v11, %v1876_v11 }
 0x934   : > { %2290 = vperm.xlu1 %3120, %v2174_v57  }
 0x935   : > { %v1923_v18 = vsel %vm1921_vm3, %v1883_v5, 0 }
 0x936   : > { %v1869_v54 = vpop.f32.mrf.mxu3  ;;  %1925 = vmatpush.bf16.msrb.mxu0 %v1923_v18 }
 0x93a   : > { %1926 = vmatpush.bf16.msrb.mxu0 %v1882_v44 }
 0x93e   : > { %1927 = vmatpush.bf16.msrb.mxu0 %v1881_v43 }
 0x942   : > { %1928 = vmatpush.bf16.msrb.mxu0 %v1880_v55 }
 0x946   : > { %1929 = vmatpush.bf16.msrb.mxu0 %v1879_v8 }
 0x94a   : > { %1930 = vmatpush.bf16.msrb.mxu0 %v1878_v47 }
 0x94e   : > { %1931 = vmatpush.bf16.msrb.mxu0 %v1877_v40 }
 0x952   : > { %1932 = vmatpush.bf16.msrb.mxu0 %v4123_v39  ;;  %v1887_v39 = vpop.permute.xlu0 %1886 }
 0x955   : > { %2951 = vmatmul.msk.bf16.vlgmr.msrb.gmra.mxu0 %vm1914_vm4, %v3039_v53 }
 0x956   : > { %2088 = vmatpush.bf16.msra.mxu0 %v4031_v42 }
 0x95a   : > { %2089 = vmatpush.bf16.msra.mxu0 %v4041_v32  ;;  %v1892_v37 = vpop.permute.xlu0 %1891 }
 0x95e   : > { %2090 = vmatpush.bf16.msra.mxu0 %v4053_v24 }
 0x962   : > { %2091 = vmatpush.bf16.msra.mxu0 %v4065_v20 }
 0x965   : > { %2952 = vmatmul.msk.bf16.gmra.mxu0 %vm1914_vm4, %v3040_v31 }
 0x966   : > { %2092 = vmatpush.bf16.msra.mxu0 %v4077_v16 }
 0x96a   : > { %2093 = vmatpush.bf16.msra.mxu0 %v4089_v12 }
 0x96e   : > { %2094 = vmatpush.bf16.msra.mxu0 %v4101_v62 }
 0x972   : > { %2095 = vmatpush.bf16.msra.mxu0 %v4113_v63 }
 0x976   : > { %2231 = vmatpush.bf16.msrb.mxu0 %v4031_v42 }
 0x97a   : > { %2232 = vmatpush.bf16.msrb.mxu0 %v4041_v32 }
 0x97e   : > { %2233 = vmatpush.bf16.msrb.mxu0 %v4053_v24 }
 0x982   : > { %2234 = vmatpush.bf16.msrb.mxu0 %v4065_v20 }
 0x986   : > { %2235 = vmatpush.bf16.msrb.mxu0 %v4077_v16 }
 0x98a   : > { %2236 = vmatpush.bf16.msrb.mxu0 %v4089_v12 }
 0x98e   : > { %2237 = vmatpush.bf16.msrb.mxu0 %v4101_v62 }
 0x992   : > { %2238 = vmatpush.bf16.msrb.mxu0 %v4113_v63 }
 0x9d2   : > { %v1934_v3 = vpop.f32.mrf.mxu0 }
 0x9d3   : > { %v1935_v10 = vadd.f32 %v1934_v3, %v1887_v39 }
 0x9d5   : > { %v2953_v7 = vmul.f32 -1.442695, %v1935_v10 }
 0x9d7   : > { %3122 = vpow2.f32 %v2953_v7 }
 0x9da   : > { %v1936_v47 = vpop.f32.mrf.mxu0 }
 0x9db   : > { %v1937_v1 = vadd.f32 %v1936_v47, %v1892_v37 }
 0x9dd   : > { %v3123_v59 = vpop.eup %3122  ;;  %v2954_v43 = vmul.f32 -1.442695, %v1937_v1 }
 0x9de   : > { %v1950_v0 = vadd.f32 1.0, %v3123_v59 }
 0x9df   : > { %3124 = vpow2.f32 %v2954_v43 }
 0x9e0   : > { %3126 = vrcp.f32 %v1950_v0  ;;  %v1963_v4 = vand.u32 2147483648, %v1950_v0  ;;  %v1961_v17 = vand.u32 2147483647, %v1950_v0  ;;  %vm1957_vm6 = vweird.f32 %v1950_v0 }
 0x9e2   : > { %v1964_v19 = vor.u32 1.1754944e-38, %v1963_v4  ;;  %vm1962_vm8 = vcmp.eq.f32.partialorder %v1961_v17, 8.507059e+37  ;;  %v4275_v43 = vpop.f32.mrf.mxu0 }
 0x9e5   : > { %v3125_v34 = vpop.eup %3124 }
 0x9e6   : > { %v3127_v36 = vpop.eup %3126  ;;  %v1951_v38 = vadd.f32 1.0, %v3125_v34 }
 0x9e7   : > { %v1953_v23 = vmul.f32 %v3127_v36, %v1950_v0  ;;  %vm1958_vm5 = vweird.f32 %v3127_v36 }
 0x9e8   : > { %3128 = vrcp.f32 %v1951_v38  ;;  %vm1959_vm7 = vmor %vm1957_vm6, %vm1958_vm5  ;;  %v1978_v54 = vand.u32 2147483648, %v1951_v38  ;;  %vm1972_vm10 = vweird.f32 %v1951_v38  ;;  %v1976_v14 = vand.u32 2147483647, %v1951_v38 }
 0x9e9   : > { %v1954_v21 = vsub.f32 1.0, %v1953_v23  ;;  %v2179_v23 = vld [vmem:[%s4473_s17] sm:$0xff]  ;;  %vm2321_vm5 = vcmask 261120  }
 0x9ea   : > { %v1979_v58 = vor.u32 1.1754944e-38, %v1978_v54  ;;  %vm1977_vm12 = vcmp.eq.f32.partialorder %v1976_v14, 8.507059e+37  ;;  %v4277_v0 = vpop.f32.mrf.mxu0  ;;  %2547 = vperm.xlu1 %3120, %v2179_v23   ;;  %v1690_v14 = vld [vmem:[%s4469_s13 + $0x8] sm:$0xff] }
 0x9eb   : > { %v1955_v29 = vmul.f32 %v3127_v36, %v1954_v21 }
 0x9ed   : > { %v1956_v49 = vadd.f32 %v3127_v36, %v1955_v29 }
 0x9ee   : > { %v3129_v27 = vpop.eup %3128 }
 0x9ef   : > { %v1968_v25 = vmul.f32 %v3129_v27, %v1951_v38  ;;  %v1960_v11 = vsel %vm1959_vm7, %v3127_v36, %v1956_v49  ;;  %vm1973_vm9 = vweird.f32 %v3129_v27 }
 0x9f0   : > { %v1965_v9 = vsel %vm1962_vm8, %v1964_v19, %v1960_v11  ;;  %vm1974_vm11 = vmor %vm1972_vm10, %vm1973_vm9  ;;  %v1689_v11 = vld [vmem:[%s4469_s13] sm:$0xff] }
 0x9f1   : > { %v1969_v5 = vsub.f32 1.0, %v1968_v25  ;;  %v4247_v30 = vmul.f32 %v1965_v9, %v4117_v45  ;;  %2121 = vperm.xlu2 %3121, %v1689_v11  }
 0x9f3   : > { %v1970_v18 = vmul.f32 %v3129_v27, %v1969_v5  ;;  %v4251_v48 = vpack.c.bf16 %v4247_v30, %v4115_v41 }
 0x9f5   : > { %2032 = vmatmul.bf16.vlgmr.msrb.gmra.mxu1 %v4251_v48  ;;  %2076 = vmatmul.bf16.vlgmr.msrb.gmra.mxu3 %v4251_v48  ;;  %v1971_v52 = vadd.f32 %v3129_v27, %v1970_v18 }
 0x9f7   : > { %v1975_v44 = vsel %vm1974_vm11, %v3129_v27, %v1971_v52 }
 0x9f8   : > { %v1980_v60 = vsel %vm1977_vm12, %v1979_v58, %v1975_v44 }
 0x9f9   : > { %v4256_v51 = vmul.f32 %v1980_v60, %v4139_v46  ;;  %2126 = vperm.xlu2 %3121, %v1690_v14  }
 0x9fb   : > { %v2023_v61 = vpack.c.bf16 %v4256_v51, %v4256_v51 }
 0xa05   : > { %2037 = vmatmul.bf16.gmra.mxu1 %v2023_v61  ;;  %2081 = vmatmul.bf16.gmra.mxu3 %v2023_v61 }
 0xa72   : > { %v4260_v6 = vpop.f32.mrf.mxu1 }
 0xa78   : > { %v2077_v15 = vpop.f32.mrf.mxu3 }
 0xa7a   : > { %v4262_v55 = vpop.f32.mrf.mxu1 }
 0xa7b   : > { %v2042_v8 = vpack.c.bf16 %v4262_v55, %v4260_v6 }
 0xa7d   : > { %2052 = vmatmul.bf16.vlgmr.msrb.gmra.mxu2 %v2042_v8 }
 0xa80   : > { %v2079_v40 = vpop.f32.mrf.mxu3 }
 0xa81   : > { %v2086_v53 = vpack.c.bf16 %v2079_v40, %v2077_v15 }
 0xa82   : > { %v2038_v39 = vpop.f32.mrf.mxu1 }
 0xa83   : > { %v2113_v3 = vpack.c.bf16 %v2038_v39, %v4262_v55  ;;  %2096 = vmatmul.bf16.vlgmr.msra.gmra.mxu0 %v2086_v53  ;;  %v2043_v47 = vpack.c.bf16 %v2038_v39, %v2038_v39  ;;  %v2180_v39 = vld [vmem:[%s4473_s17 + $0x8] sm:$0xff] }
 0xa84   : > { %2445 = vmatpush.bf16.msra.mxu0 %v4027_v13 }
 0xa88   : > { %v2082_v10 = vpop.f32.mrf.mxu3  ;;  %2446 = vmatpush.bf16.msra.mxu0 %v4037_v35 }
 0xa89   : > { %v2116_v7 = vpack.c.bf16 %v2082_v10, %v2079_v40  ;;  %v2087_v59 = vpack.c.bf16 %v2082_v10, %v2082_v10  ;;  %v2175_v40 = vld [vmem:[%s4471_s15 + $0x10] sm:$0xff]  ;;  %v2112_v10 = vpack.c.bf16 %v4260_v6, %v4256_v51 }
 0xa8a   : > { %v2040_v37 = vpop.f32.mrf.mxu1  ;;  %2295 = vperm.xlu2 %3121, %v2175_v40  }
 0xa8c   : > { %2447 = vmatpush.bf16.msra.mxu0 %v4049_v28 }
 0xa8d   : > { %2057 = vmatmul.bf16.gmra.mxu2 %v2043_v47 }
 0xa90   : > { %v2084_v1 = vpop.f32.mrf.mxu3  ;;  %2448 = vmatpush.bf16.msra.mxu0 %v4061_v26 }
 0xa92   : > { %2552 = vperm.xlu2 %3121, %v2180_v39  }
 0xa93   : > { %2101 = vmatmul.bf16.gmra.mxu0 %v2087_v59  ;;  %v2122_v59 = vpop.permute.xlu2 %2121 }
 0xa94   : > { %2449 = vmatpush.bf16.msra.mxu0 %v4073_v22 }
 0xa98   : > { %2450 = vmatpush.bf16.msra.mxu0 %v4085_v50 }
 0xa9c   : > { %2451 = vmatpush.bf16.msra.mxu0 %v4097_v56 }
 0xaa0   : > { %2452 = vmatpush.bf16.msra.mxu0 %v4109_v33 }
 0xb00   : > { %v2053_v34 = vpop.f32.mrf.mxu2  ;;  %v2097_v31 = vpop.f32.mrf.mxu0 }
 0xb01   : > { %v2106_v49 = vmul.f32 2.0, %v2097_v31  ;;  %v2062_v60 = vmul.f32 2.0, %v2053_v34 }
 0xb03   : > { %v2109_v9 = vsub.f32 %v2106_v49, %v4115_v41  ;;  %v2065_v8 = vsub.f32 %v2062_v60, %v4115_v41  ;;  %v3041_v41 = vld [vmem:[%s4468_s12] sm:$0xff] }
 0xb08   : > { %v2055_v36 = vpop.f32.mrf.mxu2  ;;  %v2099_v38 = vpop.f32.mrf.mxu0 }
 0xb09   : > { %v2107_v17 = vmul.f32 2.0, %v2099_v38  ;;  %v2063_v44 = vmul.f32 2.0, %v2055_v36 }
 0xb0b   : > { %v2110_v19 = vsub.f32 %v2107_v17, %v4247_v30  ;;  %v2066_v61 = vsub.f32 %v2063_v44, %v4247_v30  ;;  %v1897_v30 = vpop.permute.xlu1 %1896  ;;  %v2127_v17 = vpop.permute.xlu2 %2126 }
 0xb0d   : > { %v2117_v54 = vpack.c.bf16 %v2110_v19, %v2109_v9  ;;  %v2114_v53 = vpack.c.bf16 %v2066_v61, %v2065_v8  ;;  %v4343_v61 = vld [vmem:[#allocation2 + $0x18] sm:$0xff] }
 0xb10   : > { %v2058_v21 = vpop.f32.mrf.mxu2  ;;  %v2102_v4 = vpop.f32.mrf.mxu0 }
 0xb11   : > { %v2108_v29 = vmul.f32 2.0, %v2102_v4  ;;  %v2064_v52 = vmul.f32 2.0, %v2058_v21 }
 0xb13   : > { %v2111_v2 = vsub.f32 %v2108_v29, %v4256_v51  ;;  %v2067_v58 = vsub.f32 %v2064_v52, %v4256_v51  ;;  %v1902_v6 = vpop.permute.xlu1 %1901 }
 0xb15   : > { %v2118_v27 = vpack.c.bf16 %v2111_v2, %v2111_v2  ;;  %v2115_v55 = vpack.c.bf16 %v2077_v15, %v2067_v58 }
 0xb17   : > { %v2138_v25 = vsel %vm1921_vm3, %v2118_v27, 0 }
 0xb18   : > { %v2060_v5 = vpop.f32.mrf.mxu2  ;;  %v2104_v18 = vpop.f32.mrf.mxu0  ;;  %2140 = vmatpush.bf16.msra.mxu1 %v2138_v25 }
 0xb1c   : > { %2141 = vmatpush.bf16.msra.mxu1 %v2117_v54 }
 0xb20   : > { %2142 = vmatpush.bf16.msra.mxu1 %v2116_v7 }
 0xb24   : > { %2143 = vmatpush.bf16.msra.mxu1 %v2115_v55  ;;  %v4345_v55 = vld [vmem:[#allocation2 + $0x8] sm:$0xff] }
 0xb28   : > { %2144 = vmatpush.bf16.msra.mxu1 %v2114_v53 }
 0xb2c   : > { %2145 = vmatpush.bf16.msra.mxu1 %v2113_v3 }
 0xb30   : > { %2146 = vmatpush.bf16.msra.mxu1 %v2112_v10 }
 0xb34   : > { %2147 = vmatpush.bf16.msra.mxu1 %v4251_v48  ;;  %v1940_v48 = vadd.f32 %v4275_v43, %v1897_v30 }
 0xb36   : > { %v2955_v51 = vmul.f32 -1.442695, %v1940_v48 }
 0xb37   : > { %2961 = vmatmul.msk.bf16.vlgmr.msra.gmra.mxu1 %vm1914_vm4, %v3041_v41 }
 0xb38   : > { %2252 = vmatpush.bf16.msrb.mxu1 %v4031_v42  ;;  %3130 = vpow2.f32 %v2955_v51 }
 0xb3c   : > { %2253 = vmatpush.bf16.msrb.mxu1 %v4041_v32 }
 0xb40   : > { %2254 = vmatpush.bf16.msrb.mxu1 %v4053_v24 }
 0xb44   : > { %2255 = vmatpush.bf16.msrb.mxu1 %v4065_v20 }
 0xb48   : > { %2256 = vmatpush.bf16.msrb.mxu1 %v4077_v16 }
 0xb4c   : > { %2257 = vmatpush.bf16.msrb.mxu1 %v4089_v12 }
 0xb50   : > { %2258 = vmatpush.bf16.msrb.mxu1 %v4101_v62 }
 0xb54   : > { %2259 = vmatpush.bf16.msrb.mxu1 %v4113_v63 }
 0xb58   : > { %2466 = vmatpush.bf16.msra.mxu1 %v4027_v13  ;;  %v1942_v13 = vadd.f32 %v4277_v0, %v1902_v6 }
 0xb5c   : > { %2467 = vmatpush.bf16.msra.mxu1 %v4037_v35  ;;  %v2956_v35 = vmul.f32 -1.442695, %v1942_v13 }
 0xb5e   : > { %3132 = vpow2.f32 %v2956_v35 }
 0xb60   : > { %2468 = vmatpush.bf16.msra.mxu1 %v4049_v28  ;;  %v3131_v28 = vpop.eup %3130 }
 0xb64   : > { %2469 = vmatpush.bf16.msra.mxu1 %v4061_v26  ;;  %v1988_v26 = vadd.f32 1.0, %v3131_v28 }
 0xb66   : > { %3134 = vrcp.f32 %v1988_v26  ;;  %vm1995_vm13 = vweird.f32 %v1988_v26  ;;  %v2001_v47 = vand.u32 2147483648, %v1988_v26  ;;  %v1999_v0 = vand.u32 2147483647, %v1988_v26 }
 0xb68   : > { %2470 = vmatpush.bf16.msra.mxu1 %v4073_v22  ;;  %v3133_v22 = vpop.eup %3132  ;;  %v2002_v31 = vor.u32 1.1754944e-38, %v2001_v47  ;;  %vm2000_vm0 = vcmp.eq.f32.partialorder %v1999_v0, 8.507059e+37 }
 0xb69   : > { %v1989_v15 = vadd.f32 1.0, %v3133_v22 }
 0xb6b   : > { %3136 = vrcp.f32 %v1989_v15  ;;  %vm2010_vm1 = vweird.f32 %v1989_v15  ;;  %v2016_v23 = vand.u32 2147483648, %v1989_v15  ;;  %v2014_v29 = vand.u32 2147483647, %v1989_v15 }
 0xb6c   : > { %2471 = vmatpush.bf16.msra.mxu1 %v4085_v50  ;;  %v3135_v50 = vpop.eup %3134 }
 0xb6d   : > { %vm1996_vm14 = vweird.f32 %v3135_v50  ;;  %v2017_v19 = vor.u32 1.1754944e-38, %v2016_v23  ;;  %vm2015_vm4 = vcmp.eq.f32.partialorder %v2014_v29, 8.507059e+37  ;;  %v2966_v23 = vld [vmem:[%s4470_s14 + $0x8] sm:$0xf0] }
 0xb6e   : > { %vm1997_vm15 = vmor %vm1995_vm13, %vm1996_vm14 }
 0xb70   : > { %2472 = vmatpush.bf16.msra.mxu1 %v4097_v56  ;;  %v1991_v56 = vmul.f32 %v3135_v50, %v1988_v26 }
 0xb72   : > { %v1992_v3 = vsub.f32 1.0, %v1991_v56 }
 0xb74   : > { %2473 = vmatpush.bf16.msra.mxu1 %v4109_v33  ;;  %v3137_v33 = vpop.eup %3136  ;;  %v1993_v7 = vmul.f32 %v3135_v50, %v1992_v3 }
 0xb75   : > { %v2006_v37 = vmul.f32 %v3137_v33, %v1989_v15  ;;  %vm2011_vm2 = vweird.f32 %v3137_v33 }
 0xb76   : > { %v1994_v43 = vadd.f32 %v3135_v50, %v1993_v7  ;;  %vm2012_vm3 = vmor %vm2010_vm1, %vm2011_vm2 }
 0xb77   : > { %v2007_v1 = vsub.f32 1.0, %v2006_v37 }
 0xb78   : > { %v1998_v38 = vsel %vm1997_vm15, %v3135_v50, %v1994_v43 }
 0xb79   : > { %v2008_v36 = vmul.f32 %v3137_v33, %v2007_v1  ;;  %v2003_v21 = vsel %vm2000_vm0, %v2002_v31, %v1998_v38  ;;  %v3042_v38 = vld [vmem:[%s4470_s14 + $0x4] sm:$0xf] }
 0xb7a   : > { %v2158_v2 = vsub.f32 1.0, %v2003_v21  ;;  %v2156_v11 = vmul.f32 %v2003_v21, %v4117_v45 }
 0xb7b   : > { %v2009_v4 = vadd.f32 %v3137_v33, %v2008_v36 }
 0xb7d   : > { %v2013_v5 = vsel %vm2012_vm3, %v3137_v33, %v2009_v4  ;;  %v2969_v4 = vor.u32 %v3042_v38, %v2966_v23 }
 0xb7e   : > { %v2018_v52 = vsel %vm2015_vm4, %v2017_v19, %v2013_v5 }
 0xb7f   : > { %v2159_v54 = vsub.f32 1.0, %v2018_v52  ;;  %v2157_v44 = vmul.f32 %v2018_v52, %v4139_v46  ;;  %v4349_v46 = vpack.c.bf16 %v4345_v55, %v4343_v61 }
 0xbb4   : > { %v2149_v34 = vpop.f32.mrf.mxu1 }
 0xbb5   : > { %v2150_v57 = vadd.f32 %v2149_v34, %v2122_v59 }
 0xbb7   : > { %3138 = vtanh.f32 %v2150_v57 }
 0xbbc   : > { %v2151_v49 = vpop.f32.mrf.mxu1 }
 0xbbd   : > { %v3139_v27 = vpop.eup %3138  ;;  %v2152_v25 = vadd.f32 %v2151_v49, %v2127_v17 }
 0xbbe   : > { %v2160_v9 = vmul.f32 %v3139_v27, %v2158_v2 }
 0xbbf   : > { %3140 = vtanh.f32 %v2152_v25 }
 0xbc0   : > { %v4330_v18 = vadd.f32 %v2160_v9, %v2156_v11 }
 0xbc2   : > { %2164 = vst [vmem:[#allocation2 + $0x10] sm:$0xff] %v4330_v18 }
 0xbc5   : > { %v3141_v14 = vpop.eup %3140 }
 0xbc6   : > { %v2161_v58 = vmul.f32 %v3141_v14, %v2159_v54  ;;  %v3044_v54 = vld [vmem:[%s4470_s14 + $0x14] sm:$0xf]  ;;  %v2974_v14 = vld [vmem:[%s4470_s14 + $0x18] sm:$0xf0] }
 0xbc8   : > { %v4334_v60 = vadd.f32 %v2161_v58, %v2157_v44  ;;  %v2977_v44 = vor.u32 %v3044_v54, %v2974_v14  ;;  %v2964_v58 = vld [vmem:[%s4470_s14] sm:$0xf] }
 0xbca   : > { %2165 = vst [vmem:[#allocation2] sm:$0xff] %v4334_v60  ;;  %v4339_v45 = vpack.c.bf16 %v4334_v60, %v4330_v18 }
 0xbcc   : > { %2191 = vmatmul.bf16.vlgmr.msra.gmra.mxu2 %v4339_v45  ;;  %2239 = vmatmul.bf16.vlgmr.msrb.gmra.mxu0 %v4339_v45 }
 0xbdc   : > { %2196 = vmatmul.bf16.gmra.mxu2 %v4349_v46  ;;  %2244 = vmatmul.bf16.gmra.mxu0 %v4349_v46 }
 0xbec   : > { %2453 = vmatmul.bf16.vlgmr.msra.gmra.mxu0 %v4339_v45 }
 0xc49   : > { %v2240_v8 = vpop.f32.mrf.mxu0 }
 0xc4f   : > { %v2192_v40 = vpop.f32.mrf.mxu2 }
 0xc51   : > { %v2242_v53 = vpop.f32.mrf.mxu0 }
 0xc52   : > { %v2250_v39 = vpack.c.bf16 %v2242_v53, %v2240_v8  ;;  %v3043_v8 = vld [vmem:[%s4470_s14 + $0x4] sm:$0xf0]  ;;  %v3045_v53 = vld [vmem:[%s4470_s14 + $0x14] sm:$0xf0] }
 0xc54   : > { %2260 = vmatmul.bf16.vlgmr.msrb.gmra.mxu1 %v2250_v39 }
 0xc57   : > { %v2194_v10 = vpop.f32.mrf.mxu2 }
 0xc58   : > { %v4354_v41 = vpack.c.bf16 %v2194_v10, %v2192_v40  ;;  %v2965_v40 = vor.u32 %v3043_v8, %v2964_v58 }
 0xc59   : > { %v2245_v30 = vpop.f32.mrf.mxu0 }
 0xc5a   : > { %2212 = vmatmul.bf16.vlgmr.msra.gmra.mxu3 %v4354_v41 }
 0xc5f   : > { %v2197_v48 = vpop.f32.mrf.mxu2 }
 0xc61   : > { %v2247_v51 = vpop.f32.mrf.mxu0 }
 0xc62   : > { %v2251_v6 = vpack.c.bf16 %v2247_v51, %v2245_v30 }
 0xc64   : > { %2265 = vmatmul.bf16.gmra.mxu1 %v2251_v6  ;;  %2328 = vmatpush.bf16.msrb.mxu2 %v2251_v6 }
 0xc67   : > { %v2199_v13 = vpop.f32.mrf.mxu2 }
 0xc68   : > { %v2203_v35 = vpack.c.bf16 %v2199_v13, %v2197_v48  ;;  %2329 = vmatpush.bf16.msrb.mxu2 %v2250_v39  ;;  %v2291_v48 = vpop.permute.xlu1 %2290 }
 0xc69   : > { %v2454_v28 = vpop.f32.mrf.mxu0 }
 0xc6a   : > { %2217 = vmatmul.bf16.gmra.mxu3 %v2203_v35 }
 0xc71   : > { %v2456_v26 = vpop.f32.mrf.mxu0 }
 0xc72   : > { %v4357_v22 = vpack.c.bf16 %v2456_v26, %v2454_v28 }
 0xc74   : > { %2474 = vmatmul.bf16.vlgmr.msra.gmra.mxu1 %v4357_v22 }
 0xcd1   : > { %v2261_v15 = vpop.f32.mrf.mxu1 }
 0xcd2   : > { %v2271_v43 = vmul.f32 2.0, %v2261_v15 }
 0xcd4   : > { %v2275_v36 = vsub.f32 %v2271_v43, %v4330_v18 }
 0xcd9   : > { %v2263_v50 = vpop.f32.mrf.mxu1 }
 0xcda   : > { %v2272_v47 = vmul.f32 2.0, %v2263_v50 }
 0xcdc   : > { %v2276_v31 = vsub.f32 %v2272_v47, %v4334_v60 }
 0xcdd   : > { %v2213_v56 = vpop.f32.mrf.mxu3 }
 0xcde   : > { %v2281_v21 = vpack.c.bf16 %v2276_v31, %v2275_v36  ;;  %v2223_v27 = vmul.f32 2.0, %v2213_v56 }
 0xce0   : > { %v2227_v5 = vsub.f32 %v2223_v27, %v4330_v18 }
 0xce1   : > { %v2266_v3 = vpop.f32.mrf.mxu1 }
 0xce2   : > { %v2273_v7 = vmul.f32 2.0, %v2266_v3 }
 0xce4   : > { %v2277_v1 = vsub.f32 %v2273_v7, %v4343_v61 }
 0xce5   : > { %v2215_v33 = vpop.f32.mrf.mxu3 }
 0xce6   : > { %v2224_v2 = vmul.f32 2.0, %v2215_v33 }
 0xce8   : > { %v2228_v11 = vsub.f32 %v2224_v2, %v4334_v60 }
 0xce9   : > { %v2268_v37 = vpop.f32.mrf.mxu1 }
 0xcea   : > { %v2274_v59 = vmul.f32 2.0, %v2268_v37  ;;  %v2279_v52 = vpack.c.bf16 %v2228_v11, %v2227_v5 }
 0xcec   : > { %v2278_v0 = vsub.f32 %v2274_v59, %v4345_v55 }
 0xced   : > { %v2218_v34 = vpop.f32.mrf.mxu3 }
 0xcee   : > { %v2282_v57 = vpack.c.bf16 %v2278_v0, %v2277_v1  ;;  %v2225_v29 = vmul.f32 2.0, %v2218_v34 }
 0xcf0   : > { %2353 = vmatpush.bf16.msrb.mxu3 %v2282_v57  ;;  %v2229_v19 = vsub.f32 %v2225_v29, %v4343_v61 }
 0xcf4   : > { %2354 = vmatpush.bf16.msrb.mxu3 %v2281_v21 }
 0xcf5   : > { %v2220_v17 = vpop.f32.mrf.mxu3 }
 0xcf6   : > { %v2226_v49 = vmul.f32 2.0, %v2220_v17 }
 0xcf7   : > { %2978 = vmatmul.msk.bf16.vlgmr.msrb.gmra.mxu3 %vm2321_vm5, %v2969_v4 }
 0xcf8   : > { %2514 = vmatpush.bf16.msra.mxu3 %v4031_v42  ;;  %v2230_v25 = vsub.f32 %v2226_v49, %v4345_v55 }
 0xcfa   : > { %v2280_v9 = vpack.c.bf16 %v2230_v25, %v2229_v19 }
 0xcfc   : > { %2515 = vmatpush.bf16.msra.mxu3 %v4041_v32  ;;  %2330 = vmatpush.bf16.msrb.mxu2 %v2280_v9 }
 0xd00   : > { %2516 = vmatpush.bf16.msra.mxu3 %v4053_v24  ;;  %2331 = vmatpush.bf16.msrb.mxu2 %v2279_v52 }
 0xd04   : > { %2517 = vmatpush.bf16.msra.mxu3 %v4065_v20  ;;  %2332 = vmatpush.bf16.msrb.mxu2 %v2203_v35 }
 0xd07   : > { %2979 = vmatmul.msk.bf16.gmra.mxu3 %vm2321_vm5, %v2977_v44 }
 0xd08   : > { %2518 = vmatpush.bf16.msra.mxu3 %v4077_v16  ;;  %2333 = vmatpush.bf16.msrb.mxu2 %v4354_v41 }
 0xd0c   : > { %2519 = vmatpush.bf16.msra.mxu3 %v4089_v12  ;;  %2334 = vmatpush.bf16.msrb.mxu2 %v4349_v46  ;;  %v2972_v46 = vld [vmem:[%s4470_s14 + $0x10] sm:$0xf] }
 0xd0d   : > { %v2973_v39 = vor.u32 %v3045_v53, %v2972_v46 }
 0xd10   : > { %2520 = vmatpush.bf16.msra.mxu3 %v4101_v62  ;;  %2335 = vmatpush.bf16.msrb.mxu2 %v4339_v45 }
 0xd13   : > { %2336 = vmatmul.bf16.vlgmr.msrb.gmra.mxu2 %v2965_v40  ;;  %v2475_v40 = vpop.f32.mrf.mxu1 }
 0xd14   : > { %2493 = vmatpush.bf16.msra.mxu2 %v4031_v42  ;;  %2521 = vmatpush.bf16.msra.mxu3 %v4113_v63 }
 0xd18   : > { %2494 = vmatpush.bf16.msra.mxu2 %v4041_v32  ;;  %v2286_v32 = vpop.permute.xlu0 %2285 }
 0xd1b   : > { %v2477_v53 = vpop.f32.mrf.mxu1 }
 0xd1c   : > { %2495 = vmatpush.bf16.msra.mxu2 %v4053_v24 }
 0xd20   : > { %2496 = vmatpush.bf16.msra.mxu2 %v4065_v20 }
 0xd23   : > { %2341 = vmatmul.bf16.gmra.mxu2 %v2973_v39 }
 0xd24   : > { %2497 = vmatpush.bf16.msra.mxu2 %v4077_v16 }
 0xd28   : > { %2498 = vmatpush.bf16.msra.mxu2 %v4089_v12 }
 0xd2c   : > { %2499 = vmatpush.bf16.msra.mxu2 %v4101_v62  ;;  %v2296_v62 = vpop.permute.xlu2 %2295 }
 0xd30   : > { %2500 = vmatpush.bf16.msra.mxu2 %v4113_v63 }
 0xd33   : > { %2501 = vmatmul.bf16.vlgmr.msra.gmra.mxu2 %v4339_v45 }
 0xd7a   : > { %v2356_v42 = vpop.f32.mrf.mxu3 }
 0xd82   : > { %v2358_v20 = vpop.f32.mrf.mxu3 }
 0xd8a   : > { %v2361_v28 = vpop.f32.mrf.mxu3 }
 0xd92   : > { %v2363_v46 = vpop.f32.mrf.mxu3 }
 0xd96   : > { %v2337_v24 = vpop.f32.mrf.mxu2 }
 0xd97   : > { %v2338_v10 = vadd.f32 %v2337_v24, %v2286_v32 }
 0xd99   : > { %v2357_v41 = vadd.f32 %v2356_v42, %v2338_v10 }
 0xd9b   : > { %v2980_v30 = vmul.f32 -1.442695, %v2357_v41  ;;  %v2486_v41 = vmul.f32 2.0, %v2477_v53 }
 0xd9d   : > { %3142 = vpow2.f32 %v2980_v30 }
 0xd9e   : > { %v2339_v51 = vpop.f32.mrf.mxu2 }
 0xd9f   : > { %v2340_v16 = vadd.f32 %v2339_v51, %v2291_v48  ;;  %v2485_v48 = vmul.f32 2.0, %v2475_v40 }
 0xda1   : > { %v2359_v6 = vadd.f32 %v2358_v20, %v2340_v16 }
 0xda3   : > { %v3143_v13 = vpop.eup %3142  ;;  %v2981_v12 = vmul.f32 -1.442695, %v2359_v6  ;;  %v2490_v6 = vsub.f32 %v2486_v41, %v4334_v60 }
 0xda4   : > { %v2372_v35 = vadd.f32 1.0, %v3143_v13 }
 0xda5   : > { %3144 = vpow2.f32 %v2981_v12  ;;  %v2489_v12 = vsub.f32 %v2485_v48, %v4330_v18 }
 0xda6   : > { %3146 = vrcp.f32 %v2372_v35  ;;  %v2342_v63 = vpop.f32.mrf.mxu2  ;;  %v2385_v34 = vand.u32 2147483648, %v2372_v35  ;;  %vm2379_vm7 = vweird.f32 %v2372_v35  ;;  %v2383_v57 = vand.u32 2147483647, %v2372_v35 }
 0xda7   : > { %v2343_v26 = vadd.f32 %v2342_v63, %v2296_v62 }
 0xda8   : > { %v2386_v4 = vor.u32 1.1754944e-38, %v2385_v34  ;;  %vm2384_vm10 = vcmp.eq.f32.partialorder %v2383_v57, 8.507059e+37  ;;  %v2301_v34 = vpop.permute.xlu0 %2300 }
 0xda9   : > { %v4414_v15 = vadd.f32 %v2361_v28, %v2343_v26 }
 0xdab   : > { %v3145_v50 = vpop.eup %3144 }
 0xdac   : > { %v3147_v56 = vpop.eup %3146  ;;  %v2373_v3 = vadd.f32 1.0, %v3145_v50 }
 0xdad   : > { %v2375_v33 = vmul.f32 %v3147_v56, %v2372_v35  ;;  %vm2380_vm6 = vweird.f32 %v3147_v56  ;;  %v2541_v35 = vpack.c.bf16 %v2490_v6, %v2489_v12 }
 0xdae   : > { %3148 = vrcp.f32 %v2373_v3  ;;  %v4416_v7 = vpop.f32.mrf.mxu2  ;;  %vm2381_vm8 = vmor %vm2379_vm7, %vm2380_vm6  ;;  %v2400_v36 = vand.u32 2147483648, %v2373_v3  ;;  %v2398_v21 = vand.u32 2147483647, %v2373_v3  ;;  %vm2394_vm11 = vweird.f32 %v2373_v3 }
 0xdaf   : > { %v2376_v37 = vsub.f32 1.0, %v2375_v33  ;;  %v2345_v57 = vadd.f32 %v4416_v7, %v2301_v34  ;;  %vm2615_vm6 = vcmask 130048  }
 0xdb0   : > { %v2401_v2 = vor.u32 1.1754944e-38, %v2400_v36  ;;  %vm2399_vm13 = vcmp.eq.f32.partialorder %v2398_v21, 8.507059e+37 }
 0xdb1   : > { %v2377_v47 = vmul.f32 %v3147_v56, %v2376_v37  ;;  %v2364_v36 = vadd.f32 %v2363_v46, %v2345_v57  ;;  %v2553_v46 = vpop.permute.xlu2 %2552 }
 0xdb3   : > { %v2378_v43 = vadd.f32 %v3147_v56, %v2377_v47 }
 0xdb4   : > { %v3149_v1 = vpop.eup %3148 }
 0xdb5   : > { %v2390_v59 = vmul.f32 %v3149_v1, %v2373_v3  ;;  %v2382_v38 = vsel %vm2381_vm8, %v3147_v56, %v2378_v43  ;;  %vm2395_vm9 = vweird.f32 %v3149_v1 }
 0xdb6   : > { %v2502_v0 = vpop.f32.mrf.mxu2  ;;  %v2387_v17 = vsel %vm2384_vm10, %v2386_v4, %v2382_v38  ;;  %vm2396_vm12 = vmor %vm2394_vm11, %vm2395_vm9  ;;  %v2983_v38 = vmul.f32 -1.442695, %v2364_v36 }
 0xdb7   : > { %v2391_v31 = vsub.f32 1.0, %v2390_v59  ;;  %v2442_v11 = vmul.f32 %v2387_v17, %v4343_v61  ;;  %v2988_v59 = vld [vmem:[%s4524_s16 + $0x8] sm:$0xf0] }
 0xdb9   : > { %v2392_v23 = vmul.f32 %v3149_v1, %v2391_v31  ;;  %v2982_v31 = vmul.f32 -1.442695, %v4414_v15 }
 0xdbb   : > { %v2393_v29 = vadd.f32 %v3149_v1, %v2392_v23  ;;  %3150 = vpow2.f32 %v2982_v31 }
 0xdbc   : > { %3152 = vpow2.f32 %v2983_v38 }
 0xdbd   : > { %v2397_v49 = vsel %vm2396_vm12, %v3149_v1, %v2393_v29  ;;  %v3046_v1 = vld [vmem:[%s4524_s16 + $0x4] sm:$0xf] }
 0xdbe   : > { %v2504_v27 = vpop.f32.mrf.mxu2  ;;  %v2402_v19 = vsel %vm2399_vm13, %v2401_v2, %v2397_v49 }
 0xdbf   : > { %v2512_v25 = vpack.c.bf16 %v2504_v27, %v2502_v0  ;;  %v2443_v9 = vmul.f32 %v2402_v19, %v4345_v55  ;;  %v2991_v0 = vor.u32 %v3046_v1, %v2988_v59 }
 0xdc1   : > { %2522 = vmatmul.bf16.vlgmr.msra.gmra.mxu3 %v2512_v25  ;;  %v2444_v5 = vpack.c.bf16 %v2443_v9, %v2442_v11  ;;  %v3151_v23 = vpop.eup %3150 }
 0xdc2   : > { %v2410_v21 = vadd.f32 1.0, %v3151_v23  ;;  %v3153_v4 = vpop.eup %3152 }
 0xdc3   : > { %2458 = vmatmul.bf16.gmra.mxu0 %v2444_v5  ;;  %2506 = vmatmul.bf16.gmra.mxu2 %v2444_v5  ;;  %v2411_v29 = vadd.f32 1.0, %v3153_v4 }
 0xdc4   : > { %3154 = vrcp.f32 %v2410_v21  ;;  %vm2417_vm15 = vweird.f32 %v2410_v21 }
 0xdc5   : > { %3156 = vrcp.f32 %v2411_v29  ;;  %vm2432_vm3 = vweird.f32 %v2411_v29  ;;  %v2436_v41 = vand.u32 2147483647, %v2411_v29 }
 0xdca   : > { %v3155_v17 = vpop.eup %3154 }
 0xdcb   : > { %v2413_v2 = vmul.f32 %v3155_v17, %v2410_v21  ;;  %vm2418_vm14 = vweird.f32 %v3155_v17 }
 0xdcc   : > { %vm2419_vm0 = vmor %vm2417_vm15, %vm2418_vm14 }
 0xdcd   : > { %v2414_v49 = vsub.f32 1.0, %v2413_v2 }
 0xdcf   : > { %v2415_v27 = vmul.f32 %v3155_v17, %v2414_v49 }
 0xe40   : > { %v2459_v52 = vpop.f32.mrf.mxu0 }
 0xe44   : > { %v2523_v39 = vpop.f32.mrf.mxu3 }
 0xe45   : > { %v2533_v50 = vmul.f32 2.0, %v2523_v39 }
 0xe46   : > { %v2507_v54 = vpop.f32.mrf.mxu2 }
 0xe47   : > { %v2537_v47 = vsub.f32 %v2533_v50, %v4330_v18  ;;  %v3047_v18 = vld [vmem:[%s4524_s16 + $0x4] sm:$0xf0] }
 0xe48   : > { %v2461_v14 = vpop.f32.mrf.mxu0 }
 0xe49   : > { %v2465_v44 = vpack.c.bf16 %v2461_v14, %v2459_v52 }
 0xe4b   : > { %2479 = vmatmul.bf16.gmra.mxu1 %v2465_v44 }
 0xe4c   : > { %v2525_v32 = vpop.f32.mrf.mxu3 }
 0xe4d   : > { %v2534_v28 = vmul.f32 2.0, %v2525_v32 }
 0xe4e   : > { %v2509_v58 = vpop.f32.mrf.mxu2 }
 0xe4f   : > { %v2513_v8 = vpack.c.bf16 %v2509_v58, %v2507_v54  ;;  %v2538_v33 = vsub.f32 %v2534_v28, %v4334_v60  ;;  %v2986_v60 = vld [vmem:[%s4524_s16] sm:$0xf]  ;;  %v2421_v54 = vand.u32 2147483647, %v2410_v21 }
 0xe51   : > { %2527 = vmatmul.bf16.gmra.mxu3 %v2513_v8  ;;  %2567 = vmatpush.bf16.msrb.mxu0 %v2513_v8  ;;  %v2543_v43 = vpack.c.bf16 %v2538_v33, %v2537_v47  ;;  %vm2422_vm1 = vcmp.eq.f32.partialorder %v2421_v54, 8.507059e+37 }
 0xe55   : > { %2568 = vmatpush.bf16.msrb.mxu0 %v2512_v25  ;;  %v2548_v25 = vpop.permute.xlu1 %2547 }
 0xec8   : > { %v2480_v42 = vpop.f32.mrf.mxu1 }
 0xec9   : > { %v2487_v24 = vmul.f32 2.0, %v2480_v42  ;;  %v2438_v42 = vand.u32 2147483648, %v2411_v29 }
 0xecb   : > { %v2491_v20 = vsub.f32 %v2487_v24, %v2442_v11  ;;  %v2439_v6 = vor.u32 1.1754944e-38, %v2438_v42 }
 0xed0   : > { %v2482_v10 = vpop.f32.mrf.mxu1 }
 0xed1   : > { %v2488_v30 = vmul.f32 2.0, %v2482_v10 }
 0xed3   : > { %v2492_v51 = vsub.f32 %v2488_v30, %v2443_v9 }
 0xed4   : > { %v2528_v16 = vpop.f32.mrf.mxu3 }
 0xed5   : > { %v2542_v13 = vpack.c.bf16 %v2492_v51, %v2491_v20  ;;  %v2535_v62 = vmul.f32 2.0, %v2528_v16 }
 0xed7   : > { %2569 = vmatpush.bf16.msrb.mxu0 %v2542_v13  ;;  %v2539_v56 = vsub.f32 %v2535_v62, %v2442_v11  ;;  %v2416_v11 = vadd.f32 %v3155_v17, %v2415_v27 }
 0xed9   : > { %v2420_v58 = vsel %vm2419_vm0, %v3155_v17, %v2416_v11 }
 0xedb   : > { %2570 = vmatpush.bf16.msrb.mxu0 %v2541_v35 }
 0xedc   : > { %v2530_v63 = vpop.f32.mrf.mxu3 }
 0xedd   : > { %v2536_v26 = vmul.f32 2.0, %v2530_v63 }
 0xedf   : > { %v2540_v3 = vsub.f32 %v2536_v26, %v2443_v9  ;;  %2571 = vmatpush.bf16.msrb.mxu0 %v2465_v44 }
 0xee1   : > { %v2544_v37 = vpack.c.bf16 %v2540_v3, %v2539_v56  ;;  %v2613_v56 = vpop.permute.xlu0 %2612 }
 0xee3   : > { %2572 = vmatpush.bf16.msrb.mxu0 %v4357_v22  ;;  %2587 = vmatpush.bf16.msrb.mxu1 %v2544_v37  ;;  %v2987_v22 = vor.u32 %v3047_v18, %v2986_v60 }
 0xee7   : > { %2573 = vmatpush.bf16.msrb.mxu0 %v2444_v5  ;;  %2588 = vmatpush.bf16.msrb.mxu1 %v2543_v43  ;;  %v2423_v5 = vand.u32 2147483648, %v2410_v21 }
 0xee9   : > { %v2424_v8 = vor.u32 1.1754944e-38, %v2423_v5 }
 0xeea   : > { %2992 = vmatmul.msk.bf16.vlgmr.msrb.gmra.mxu1 %vm2321_vm5, %v2991_v0  ;;  %vm2437_vm5 = vcmp.eq.f32.partialorder %v2436_v41, 8.507059e+37 }
 0xeeb   : > { %2574 = vmatpush.bf16.msrb.mxu0 %v4339_v45  ;;  %v3157_v45 = vpop.eup %3156  ;;  %v2425_v40 = vsel %vm2422_vm1, %v2424_v8, %v2420_v58 }
 0xeec   : > { %v2428_v19 = vmul.f32 %v3157_v45, %v2411_v29  ;;  %vm2433_vm2 = vweird.f32 %v3157_v45  ;;  %v2599_v24 = vsub.f32 1.0, %v2425_v40  ;;  %v2597_v16 = vmul.f32 %v2425_v40, %v4343_v61  ;;  %v2607_v61 = vld [vmem:[%s4525_s29] sm:$0xf] }
 0xeed   : > { %vm2434_vm4 = vmor %vm2432_vm3, %vm2433_vm2 }
 0xeee   : > { %2575 = vmatmul.bf16.vlgmr.msrb.gmra.mxu0 %v2987_v22  ;;  %v2429_v15 = vsub.f32 1.0, %v2428_v19 }
 0xef0   : > { %v2430_v44 = vmul.f32 %v3157_v45, %v2429_v15 }
 0xef2   : > { %v2431_v53 = vadd.f32 %v3157_v45, %v2430_v44 }
 0xef4   : > { %v2435_v51 = vsel %vm2434_vm4, %v3157_v45, %v2431_v53 }
 0xef5   : > { %v2440_v12 = vsel %vm2437_vm5, %v2439_v6, %v2435_v51 }
 0xef6   : > { %v2600_v35 = vsub.f32 1.0, %v2440_v12  ;;  %v2598_v28 = vmul.f32 %v2440_v12, %v4345_v55 }
 0xf67   : > { %v2590_v7 = vpop.f32.mrf.mxu1 }
 0xf6b   : > { %v2576_v9 = vpop.f32.mrf.mxu0 }
 0xf6c   : > { %v2577_v52 = vadd.f32 %v2576_v9, %v2548_v25 }
 0xf6e   : > { %v2591_v14 = vadd.f32 %v2590_v7, %v2577_v52 }
 0xf6f   : > { %v2592_v10 = vpop.f32.mrf.mxu1 }
 0xf70   : > { %3158 = vtanh.f32 %v2591_v14 }
 0xf73   : > { %v2578_v39 = vpop.f32.mrf.mxu0 }
 0xf74   : > { %v2579_v32 = vadd.f32 %v2578_v39, %v2553_v46 }
 0xf76   : > { %v3159_v30 = vpop.eup %3158  ;;  %v2593_v48 = vadd.f32 %v2592_v10, %v2579_v32 }
 0xf77   : > { %v2601_v20 = vmul.f32 %v3159_v30, %v2599_v24 }
 0xf78   : > { %3160 = vtanh.f32 %v2593_v48 }
 0xf79   : > { %v2603_v13 = vadd.f32 %v2601_v20, %v2597_v16 }
 0xf7b   : > { %2605 = vst [vmem:[#allocation2 + $0x18] sm:$0xff] %v2603_v13 }
 0xf7e   : > { %v3161_v62 = vpop.eup %3160 }
 0xf7f   : > { %v2602_v63 = vmul.f32 %v3161_v62, %v2600_v35 }
 0xf81   : > { %v2604_v26 = vadd.f32 %v2602_v63, %v2598_v28 }
 0xf83   : > { %2606 = vst [vmem:[#allocation2 + $0x8] sm:$0xff] %v2604_v26  ;;  %v2608_v50 = vpack.c.bf16 %v2604_v26, %v2603_v13 }
 0xf85   : > { %2626 = vmatpush.bf16.msrb.mxu2 %v2608_v50 }
 0xf88   : > { %2993 = vmatmul.msk.bf16.vlgmr.msrb.gmra.mxu2 %vm2615_vm6, %v2607_v61 }
0x100b   : > { %v2628_v3 = vpop.f32.mrf.mxu2 }
0x100c   : > { %v2629_v33 = vadd.f32 %v2628_v3, %v2613_v56 }
0x100e   : > { %2632 = vst [vmem:[%s3410_s28] sm:$0xff] %v2629_v33 }
0x100f   : > { %2633 = vst [vmem:[#allocation3] sm:$0xff] %v2629_v33 }
0x1013   : > { %v2630_v37 = vpop.f32.mrf.mxu2 }
0x1014 PF: > { %s4526_s0 = sld [smem:[#allocation5_spill]] }
0x1015   : > { %s4527_s1 = sld [smem:[#allocation4_spill]] }
0x1016   : > { %s4528_s22 = sld [smem:[#allocation6_spill]] }
0x101a   : > { %s30_s23 = sadd.s32 1, %s4526_s0  }
0x101b   : > { %p27_p11 = scmp.ge.s32.totalorder %s30_s23, 9  }
0x101d   :  { %29 = sbr.rel (!%p27_p11) target bundleno = 8 (0x8), region = 149 }

</bundles_post_ra>
